<compile_context>
chip_gen: v6e
topology: v6e:2x2x1
jax: 0.10.0
libtpu: 0.0.40
codegen_flags: <defaults>
</compile_context>

<pallas_src>
import functools

import jax
import jax.numpy as jnp
from jax.experimental import pallas as pl
from jax.experimental.pallas import tpu as pltpu


# ---------------------------------------------------------------------------
# Helpers
# ---------------------------------------------------------------------------
def _round_up(n, m):
    return ((n + m - 1) // m) * m


# PyTorch packs gates as (i, f, g, o); we repack to (i, f, o, g) so the three
# sigmoid gates are lane-contiguous.  Each gate block is zero-padded to Hp so
# the padded-column invariant (padded h/c stay exactly zero) is preserved.
_GATE_ORDER = (0, 1, 3, 2)


def _pack_gate_cols(w_t, rows_pad, H, Hp):
    """(rows, 4H) -> (rows_pad, 4*Hp), gate order (i,f,o,g), lane-aligned, bf16."""
    rows = w_t.shape[0]
    blocks = []
    for g in _GATE_ORDER:
        blk = w_t[:, g * H:(g + 1) * H]
        blocks.append(jnp.pad(blk, ((0, rows_pad - rows), (0, Hp - H))))
    return jnp.concatenate(blocks, axis=1).astype(jnp.bfloat16)


def _pack_gate_bias(b, H, Hp):
    """(4H,) -> (1, 4*Hp), gate order (i,f,o,g), lane-aligned, f32."""
    blocks = [jnp.pad(b[g * H:(g + 1) * H], (0, Hp - H)) for g in _GATE_ORDER]
    return jnp.concatenate(blocks).reshape(1, 4 * Hp).astype(jnp.float32)


def _vmem_limit_bytes():
    """Generation-aware scoped-VMEM budget (~half of physical)."""
    try:
        info = pltpu.get_tpu_info()
        cap = getattr(info, "vmem_capacity_bytes", None)
        if cap:
            return int(cap) // 2
    except Exception:
        pass
    return 32 * 1024 * 1024


# ---------------------------------------------------------------------------
# Fused Pallas kernel: all LSTM layers (wavefront) + final FC in one call
# ---------------------------------------------------------------------------
def _fused_can_lstm_kernel(num_layers, T, Bp, Hp, x_ref, *rest):
    """
    x_ref:      (T*Bp, Dp)  time-major, padded input, bf16 (VMEM)
    rest (in):  per layer: w_ih (rows_p, 4*Hp) bf16, w_hh (Hp, 4*Hp) bf16,
                b (1, 4*Hp) f32; then fc_w (Hp, Op) bf16, fc_b (1, Op) f32
    rest (out): out_ref (Bp, Op) f32
    rest (scratch): gx_ref (T, Bp, 4*Hp) f32  -- layer-0 input projection
    """
    G = 4 * Hp
    layer_refs = rest[: 3 * num_layers]
    fc_w_ref = rest[3 * num_layers + 0]
    fc_b_ref = rest[3 * num_layers + 1]
    out_ref = rest[3 * num_layers + 2]
    gx_ref = rest[3 * num_layers + 3]

    w_ih_refs = [layer_refs[3 * l + 0] for l in range(num_layers)]
    w_hh_refs = [layer_refs[3 * l + 1] for l in range(num_layers)]
    b_refs = [layer_refs[3 * l + 2] for l in range(num_layers)]

    # ---- (1) Layer-0 input projection for ALL timesteps: one dense MXU
    #          matmul (bf16 operands, f32 accumulation) off the recurrent path.
    gx0 = jnp.dot(x_ref[...], w_ih_refs[0][...],
                  preferred_element_type=jnp.float32)
    gx_ref[...] = (gx0 + b_refs[0][...]).reshape(T, Bp, G)

    def lstm_cell(gates, c):
        # Packed gate order (i, f, o, g): one fused sigmoid over the three
        # contiguous sigmoid gates (written via tanh -> single EUP push each),
        # one tanh for the candidate gate.  All elementwise math in f32.
        sig = 0.5 * jnp.tanh(0.5 * gates[:, : 3 * Hp]) + 0.5
        i = sig[:, 0 * Hp:1 * Hp]
        f = sig[:, 1 * Hp:2 * Hp]
        o = sig[:, 2 * Hp:3 * Hp]
        g = jnp.tanh(gates[:, 3 * Hp:4 * Hp])
        c_new = f * c + i * g
        h_new = o * jnp.tanh(c_new)
        return h_new, c_new

    # ---- (2) Wavefront recurrence over all layers.
    S = T + num_layers - 1

    def step(s, carry):
        hs, cs = carry
        new_hs, new_cs = [], []
        for l in range(num_layers):
            h, c = hs[l], cs[l]
            if l == 0:
                valid = s < T
                gx = gx_ref[jnp.minimum(s, T - 1)]
            else:
                t = s - l
                valid = jnp.logical_and(t >= 0, t < T)
                # Next layer's input projection folded into the loop: layer
                # l-1's carried hidden state (its output at time t) feeds
                # directly into layer l -- no hseq buffer, no inter-layer pass.
                gx = (
                    jnp.dot(hs[l - 1].astype(jnp.bfloat16), w_ih_refs[l][...],
                            preferred_element_type=jnp.float32)
                    + b_refs[l][...]
                )
            gates = gx + jnp.dot(h.astype(jnp.bfloat16), w_hh_refs[l][...],
                                 preferred_element_type=jnp.float32)
            h_new, c_new = lstm_cell(gates, c)
            new_hs.append(jnp.where(valid, h_new, h))
            new_cs.append(jnp.where(valid, c_new, c))
        return tuple(new_hs), tuple(new_cs)

    zeros = jnp.zeros((Bp, Hp), jnp.float32)
    init = (tuple(zeros for _ in range(num_layers)),
            tuple(zeros for _ in range(num_layers)))
    unroll = S if S <= 16 else 8
    hs, _ = jax.lax.fori_loop(0, S, step, init, unroll=unroll)

    # ---- (3) Final FC on the last layer's final hidden state (fused in VMEM).
    out_ref[...] = (
        jnp.dot(hs[num_layers - 1].astype(jnp.bfloat16), fc_w_ref[...],
                preferred_element_type=jnp.float32)
        + fc_b_ref[...]
    )


# ---------------------------------------------------------------------------
# Wrapper
# ---------------------------------------------------------------------------
_VMEM = pl.BlockSpec(memory_space=pltpu.MemorySpace.VMEM)


def can_lstm_forward(x, params):
    """Pallas equivalent of CAN_LSTM.forward. x: (B, T, input_size) float32."""
    B, T, D_in = x.shape
    num_layers = len(params["lstm"])
    H = params["lstm"][0]["w_hh"].shape[1]
    O = params["fc_w"].shape[0]

    Bp = _round_up(B, 8)      # sublane alignment
    Hp = _round_up(H, 128)    # lane alignment of each gate block
    Dp = _round_up(D_in, 128)
    Op = _round_up(O, 128)
    G = 4 * Hp

    # One-time layout pass: time-major + zero padding + bf16 (padding is exact:
    # padded hidden columns stay identically zero through the recurrence).
    xt = jnp.transpose(x, (1, 0, 2)).astype(jnp.float32)
    xt = jnp.pad(xt, ((0, 0), (0, Bp - B), (0, Dp - D_in)))
    xt = xt.reshape(T * Bp, Dp).astype(jnp.bfloat16)

    args = [xt]
    in_specs = [_VMEM]
    for layer_idx, layer in enumerate(params["lstm"]):
        rows_p = Dp if layer_idx == 0 else Hp
        w_ih_p = _pack_gate_cols(layer["w_ih"].T, rows_p, H, Hp)     # bf16
        w_hh_p = _pack_gate_cols(layer["w_hh"].T, Hp, H, Hp)         # bf16
        b_p = _pack_gate_bias(layer["b_ih"] + layer["b_hh"], H, Hp)  # f32
        args += [w_ih_p, w_hh_p, b_p]
        in_specs += [_VMEM, _VMEM, _VMEM]

    fc_w_p = jnp.pad(params["fc_w"].T, ((0, Hp - H), (0, Op - O))).astype(jnp.bfloat16)
    fc_b_p = jnp.pad(params["fc_b"], (0, Op - O)).reshape(1, Op).astype(jnp.float32)
    args += [fc_w_p, fc_b_p]
    in_specs += [_VMEM, _VMEM]

    kernel = functools.partial(_fused_can_lstm_kernel, num_layers, T, Bp, Hp)
    out_p = pl.pallas_call(
        kernel,
        out_shape=jax.ShapeDtypeStruct((Bp, Op), jnp.float32),
        in_specs=in_specs,
        out_specs=_VMEM,
        scratch_shapes=[
            pltpu.VMEM((T, Bp, G), jnp.float32),   # layer-0 input-gate precompute
        ],
        compiler_params=pltpu.CompilerParams(
            vmem_limit_bytes=_vmem_limit_bytes(),
        ),
    )(*args)
    return out_p[:B, :O]


# ---------------------------------------------------------------------------
# Deterministic parameter init (mirrors PyTorch shapes; uniform(-k, k))
# ---------------------------------------------------------------------------
def init_params(key, input_size, hidden_size, num_layers, output_size):
    params = {"lstm": []}
    for layer in range(num_layers):
        d_in = input_size if layer == 0 else hidden_size
        k = 1.0 / jnp.sqrt(jnp.float32(hidden_size))
        key, k1, k2, k3, k4 = jax.random.split(key, 5)
        params["lstm"].append({
            "w_ih": jax.random.uniform(k1, (4 * hidden_size, d_in), jnp.float32, -k, k),
            "w_hh": jax.random.uniform(k2, (4 * hidden_size, hidden_size), jnp.float32, -k, k),
            "b_ih": jax.random.uniform(k3, (4 * hidden_size,), jnp.float32, -k, k),
            "b_hh": jax.random.uniform(k4, (4 * hidden_size,), jnp.float32, -k, k),
        })
    kf = 1.0 / jnp.sqrt(jnp.float32(hidden_size))
    key, k5, k6 = jax.random.split(key, 3)
    params["fc_w"] = jax.random.uniform(k5, (output_size, hidden_size), jnp.float32, -kf, kf)
    params["fc_b"] = jax.random.uniform(k6, (output_size,), jnp.float32, -kf, kf)
    return params


# ---------------------------------------------------------------------------
# Pure-JAX reference (same math as PyTorch) for the correctness check
# ---------------------------------------------------------------------------
def reference_forward(x, params):
    seq = x
    for layer in params["lstm"]:
        H = layer["w_hh"].shape[1]
        w_ih_t, w_hh_t = layer["w_ih"].T, layer["w_hh"].T
        b = layer["b_ih"] + layer["b_hh"]

        def step(carry, xt):
            h, c = carry
            gates = xt @ w_ih_t + h @ w_hh_t + b
            i = jax.nn.sigmoid(gates[:, 0:H])
            f = jax.nn.sigmoid(gates[:, H:2 * H])
            g = jnp.tanh(gates[:, 2 * H:3 * H])
            o = jax.nn.sigmoid(gates[:, 3 * H:4 * H])
            c_new = f * c + i * g
            h_new = o * jnp.tanh(c_new)
            return (h_new, c_new), h_new

        B = seq.shape[0]
        h0 = jnp.zeros((B, H), jnp.float32)
        c0 = jnp.zeros((B, H), jnp.float32)
        _, hs = jax.lax.scan(step, (h0, c0), jnp.transpose(seq, (1, 0, 2)))
        seq = jnp.transpose(hs, (1, 0, 2))
    return seq[:, -1, :] @ params["fc_w"].T + params["fc_b"]


# ---------------------------------------------------------------------------
if __name__ == "__main__":
    B, T = 2, 8
    input_size, hidden_size, num_layers, output_size = 16, 32, 2, 4

    key = jax.random.PRNGKey(0)
    key, xkey = jax.random.split(key)
    x = jax.random.normal(xkey, (B, T, input_size), jnp.float32)
    params = init_params(key, input_size, hidden_size, num_layers, output_size)

    fwd = jax.jit(functools.partial(can_lstm_forward, params=params))
    out = fwd(x)
    jax.block_until_ready(out)

    ref = reference_forward(x, params)
    assert out.shape == (B, output_size)
    # Tolerance loosened vs. the pure-f32 reference because matmul operands are
    # cast to bf16 for the MXU (accumulation and all gate/cell math stay f32).
    assert jnp.allclose(out, ref, rtol=2e-2, atol=2e-2), (out, ref)

    print("KERNEL_OK")
</pallas_src>

<mosaic_0001>
module attributes {stable_mosaic.version = 11 : i64} {
  func.func @_fused_can_lstm_kernel(%arg0: memref<64x128xbf16, #tpu.memory_space<vmem>>, %arg1: memref<128x512xbf16, #tpu.memory_space<vmem>>, %arg2: memref<128x512xbf16, #tpu.memory_space<vmem>>, %arg3: memref<1x512xf32, #tpu.memory_space<vmem>>, %arg4: memref<128x512xbf16, #tpu.memory_space<vmem>>, %arg5: memref<128x512xbf16, #tpu.memory_space<vmem>>, %arg6: memref<1x512xf32, #tpu.memory_space<vmem>>, %arg7: memref<128x128xbf16, #tpu.memory_space<vmem>>, %arg8: memref<1x128xf32, #tpu.memory_space<vmem>>, %arg9: memref<8x128xf32, #tpu.memory_space<vmem>>, %arg10: memref<8x8x512xf32, #tpu.memory_space<vmem>>) attributes {dimension_semantics = [], scalar_prefetch = 0 : i64, scratch_operands = 1 : i64, tpu.core_type = #tpu.core_type<tc>} {
    %c0 = arith.constant 0 : index
    %c0_0 = arith.constant 0 : index
    %0 = vector.load %arg0[%c0, %c0_0] : memref<64x128xbf16, #tpu.memory_space<vmem>>, vector<64x128xbf16>
    %c0_1 = arith.constant 0 : index
    %c0_2 = arith.constant 0 : index
    %1 = vector.load %arg1[%c0_1, %c0_2] : memref<128x512xbf16, #tpu.memory_space<vmem>>, vector<128x512xbf16>
    %cst = arith.constant dense<0.000000e+00> : vector<64x512xf32>
    %2 = tpu.matmul %0, %1, %cst {dimension_numbers = #tpu.dot_dimension_numbers<[1], [0], [0], [1], [0, 0, 1, 1], [], []>} : vector<64x128xbf16>, vector<128x512xbf16>, vector<64x512xf32> -> vector<64x512xf32>
    %c0_3 = arith.constant 0 : index
    %c0_4 = arith.constant 0 : index
    %3 = vector.load %arg3[%c0_3, %c0_4] : memref<1x512xf32, #tpu.memory_space<vmem>>, vector<1x512xf32>
    %4 = vector.broadcast %3 : vector<1x512xf32> to vector<64x512xf32>
    %5 = arith.addf %2, %4 : vector<64x512xf32>
    %6 = vector.shape_cast %5 : vector<64x512xf32> to vector<8x8x512xf32>
    %c0_5 = arith.constant 0 : index
    %c0_6 = arith.constant 0 : index
    %c0_7 = arith.constant 0 : index
    %7 = vector.load %arg10[%c0_5, %c0_6, %c0_7] : memref<8x8x512xf32, #tpu.memory_space<vmem>>, vector<8x8x512xf32>
    tpu.vector_store %arg10[%c0_5, %c0_6, %c0_7], %6 {strides = array<i32>} : memref<8x8x512xf32, #tpu.memory_space<vmem>>, vector<8x8x512xf32>,
    %cst_8 = arith.constant 0.000000e+00 : f32
    %8 = vector.broadcast %cst_8 : f32 to vector<8x128xf32>
    %c0_i32 = arith.constant 0 : i32
    %c8_i32 = arith.constant 8 : i32
    %9 = arith.cmpi slt, %c0_i32, %c8_i32 : i32
    %c7_i32 = arith.constant 7 : i32
    %10 = arith.minsi %c0_i32, %c7_i32 : i32
    %11 = arith.index_cast %10 : i32 to index
    %c0_9 = arith.constant 0 : index
    %c0_10 = arith.constant 0 : index
    %12 = vector.load %arg10[%11, %c0_9, %c0_10] : memref<8x8x512xf32, #tpu.memory_space<vmem>>, vector<1x8x512xf32>
    %13 = vector.shape_cast %12 : vector<1x8x512xf32> to vector<8x512xf32>
    %14 = arith.truncf %8 : vector<8x128xf32> to vector<8x128xbf16>
    %c0_11 = arith.constant 0 : index
    %c0_12 = arith.constant 0 : index
    %15 = vector.load %arg2[%c0_11, %c0_12] : memref<128x512xbf16, #tpu.memory_space<vmem>>, vector<128x512xbf16>
    %cst_13 = arith.constant dense<0.000000e+00> : vector<8x512xf32>
    %16 = tpu.matmul %14, %15, %cst_13 {dimension_numbers = #tpu.dot_dimension_numbers<[1], [0], [0], [1], [0, 0, 1, 1], [], []>} : vector<8x128xbf16>, vector<128x512xbf16>, vector<8x512xf32> -> vector<8x512xf32>
    %17 = arith.addf %13, %16 : vector<8x512xf32>
    %18 = vector.extract_strided_slice %17 {offsets = [0, 0], sizes = [8, 384], strides = [1, 1]} : vector<8x512xf32> to vector<8x384xf32>
    %cst_14 = arith.constant 5.000000e-01 : f32
    %19 = vector.broadcast %cst_14 : f32 to vector<8x384xf32>
    %20 = arith.mulf %19, %18 : vector<8x384xf32>
    %21 = math.tanh %20 : vector<8x384xf32>
    %cst_15 = arith.constant 5.000000e-01 : f32
    %22 = vector.broadcast %cst_15 : f32 to vector<8x384xf32>
    %23 = arith.mulf %22, %21 : vector<8x384xf32>
    %cst_16 = arith.constant 5.000000e-01 : f32
    %24 = vector.broadcast %cst_16 : f32 to vector<8x384xf32>
    %25 = arith.addf %23, %24 : vector<8x384xf32>
    %26 = vector.extract_strided_slice %25 {offsets = [0, 0], sizes = [8, 128], strides = [1, 1]} : vector<8x384xf32> to vector<8x128xf32>
    %27 = vector.extract_strided_slice %25 {offsets = [0, 128], sizes = [8, 128], strides = [1, 1]} : vector<8x384xf32> to vector<8x128xf32>
    %28 = vector.extract_strided_slice %25 {offsets = [0, 256], sizes = [8, 128], strides = [1, 1]} : vector<8x384xf32> to vector<8x128xf32>
    %29 = vector.extract_strided_slice %17 {offsets = [0, 384], sizes = [8, 128], strides = [1, 1]} : vector<8x512xf32> to vector<8x128xf32>
    %30 = math.tanh %29 : vector<8x128xf32>
    %31 = arith.mulf %27, %8 : vector<8x128xf32>
    %32 = arith.mulf %26, %30 : vector<8x128xf32>
    %33 = arith.addf %31, %32 : vector<8x128xf32>
    %34 = math.tanh %33 : vector<8x128xf32>
    %35 = arith.mulf %28, %34 : vector<8x128xf32>
    %36 = arith.select %9, %35, %8 : vector<8x128xf32>
    %37 = arith.select %9, %33, %8 : vector<8x128xf32>
    %c1_i32 = arith.constant 1 : i32
    %38 = arith.subi %c0_i32, %c1_i32 : i32
    %c0_i32_17 = arith.constant 0 : i32
    %39 = arith.cmpi sge, %38, %c0_i32_17 : i32
    %c8_i32_18 = arith.constant 8 : i32
    %40 = arith.cmpi slt, %38, %c8_i32_18 : i32
    %41 = arith.andi %39, %40 : i1
    %42 = arith.truncf %8 : vector<8x128xf32> to vector<8x128xbf16>
    %c0_19 = arith.constant 0 : index
    %c0_20 = arith.constant 0 : index
    %43 = vector.load %arg4[%c0_19, %c0_20] : memref<128x512xbf16, #tpu.memory_space<vmem>>, vector<128x512xbf16>
    %cst_21 = arith.constant dense<0.000000e+00> : vector<8x512xf32>
    %44 = tpu.matmul %42, %43, %cst_21 {dimension_numbers = #tpu.dot_dimension_numbers<[1], [0], [0], [1], [0, 0, 1, 1], [], []>} : vector<8x128xbf16>, vector<128x512xbf16>, vector<8x512xf32> -> vector<8x512xf32>
    %c0_22 = arith.constant 0 : index
    %c0_23 = arith.constant 0 : index
    %45 = vector.load %arg6[%c0_22, %c0_23] : memref<1x512xf32, #tpu.memory_space<vmem>>, vector<1x512xf32>
    %46 = vector.broadcast %45 : vector<1x512xf32> to vector<8x512xf32>
    %47 = arith.addf %44, %46 : vector<8x512xf32>
    %48 = arith.truncf %8 : vector<8x128xf32> to vector<8x128xbf16>
    %c0_24 = arith.constant 0 : index
    %c0_25 = arith.constant 0 : index
    %49 = vector.load %arg5[%c0_24, %c0_25] : memref<128x512xbf16, #tpu.memory_space<vmem>>, vector<128x512xbf16>
    %cst_26 = arith.constant dense<0.000000e+00> : vector<8x512xf32>
    %50 = tpu.matmul %48, %49, %cst_26 {dimension_numbers = #tpu.dot_dimension_numbers<[1], [0], [0], [1], [0, 0, 1, 1], [], []>} : vector<8x128xbf16>, vector<128x512xbf16>, vector<8x512xf32> -> vector<8x512xf32>
    %51 = arith.addf %47, %50 : vector<8x512xf32>
    %52 = vector.extract_strided_slice %51 {offsets = [0, 0], sizes = [8, 384], strides = [1, 1]} : vector<8x512xf32> to vector<8x384xf32>
    %cst_27 = arith.constant 5.000000e-01 : f32
    %53 = vector.broadcast %cst_27 : f32 to vector<8x384xf32>
    %54 = arith.mulf %53, %52 : vector<8x384xf32>
    %55 = math.tanh %54 : vector<8x384xf32>
    %cst_28 = arith.constant 5.000000e-01 : f32
    %56 = vector.broadcast %cst_28 : f32 to vector<8x384xf32>
    %57 = arith.mulf %56, %55 : vector<8x384xf32>
    %cst_29 = arith.constant 5.000000e-01 : f32
    %58 = vector.broadcast %cst_29 : f32 to vector<8x384xf32>
    %59 = arith.addf %57, %58 : vector<8x384xf32>
    %60 = vector.extract_strided_slice %59 {offsets = [0, 0], sizes = [8, 128], strides = [1, 1]} : vector<8x384xf32> to vector<8x128xf32>
    %61 = vector.extract_strided_slice %59 {offsets = [0, 128], sizes = [8, 128], strides = [1, 1]} : vector<8x384xf32> to vector<8x128xf32>
    %62 = vector.extract_strided_slice %59 {offsets = [0, 256], sizes = [8, 128], strides = [1, 1]} : vector<8x384xf32> to vector<8x128xf32>
    %63 = vector.extract_strided_slice %51 {offsets = [0, 384], sizes = [8, 128], strides = [1, 1]} : vector<8x512xf32> to vector<8x128xf32>
    %64 = math.tanh %63 : vector<8x128xf32>
    %65 = arith.mulf %61, %8 : vector<8x128xf32>
    %66 = arith.mulf %60, %64 : vector<8x128xf32>
    %67 = arith.addf %65, %66 : vector<8x128xf32>
    %68 = math.tanh %67 : vector<8x128xf32>
    %69 = arith.mulf %62, %68 : vector<8x128xf32>
    %70 = arith.select %41, %69, %8 : vector<8x128xf32>
    %71 = arith.select %41, %67, %8 : vector<8x128xf32>
    %c1_i32_30 = arith.constant 1 : i32
    %c8_i32_31 = arith.constant 8 : i32
    %72 = arith.cmpi slt, %c1_i32_30, %c8_i32_31 : i32
    %c7_i32_32 = arith.constant 7 : i32
    %73 = arith.minsi %c1_i32_30, %c7_i32_32 : i32
    %74 = arith.index_cast %73 : i32 to index
    %c0_33 = arith.constant 0 : index
    %c0_34 = arith.constant 0 : index
    %75 = vector.load %arg10[%74, %c0_33, %c0_34] : memref<8x8x512xf32, #tpu.memory_space<vmem>>, vector<1x8x512xf32>
    %76 = vector.shape_cast %75 : vector<1x8x512xf32> to vector<8x512xf32>
    %77 = arith.truncf %36 : vector<8x128xf32> to vector<8x128xbf16>
    %c0_35 = arith.constant 0 : index
    %c0_36 = arith.constant 0 : index
    %78 = vector.load %arg2[%c0_35, %c0_36] : memref<128x512xbf16, #tpu.memory_space<vmem>>, vector<128x512xbf16>
    %cst_37 = arith.constant dense<0.000000e+00> : vector<8x512xf32>
    %79 = tpu.matmul %77, %78, %cst_37 {dimension_numbers = #tpu.dot_dimension_numbers<[1], [0], [0], [1], [0, 0, 1, 1], [], []>} : vector<8x128xbf16>, vector<128x512xbf16>, vector<8x512xf32> -> vector<8x512xf32>
    %80 = arith.addf %76, %79 : vector<8x512xf32>
    %81 = vector.extract_strided_slice %80 {offsets = [0, 0], sizes = [8, 384], strides = [1, 1]} : vector<8x512xf32> to vector<8x384xf32>
    %cst_38 = arith.constant 5.000000e-01 : f32
    %82 = vector.broadcast %cst_38 : f32 to vector<8x384xf32>
    %83 = arith.mulf %82, %81 : vector<8x384xf32>
    %84 = math.tanh %83 : vector<8x384xf32>
    %cst_39 = arith.constant 5.000000e-01 : f32
    %85 = vector.broadcast %cst_39 : f32 to vector<8x384xf32>
    %86 = arith.mulf %85, %84 : vector<8x384xf32>
    %cst_40 = arith.constant 5.000000e-01 : f32
    %87 = vector.broadcast %cst_40 : f32 to vector<8x384xf32>
    %88 = arith.addf %86, %87 : vector<8x384xf32>
    %89 = vector.extract_strided_slice %88 {offsets = [0, 0], sizes = [8, 128], strides = [1, 1]} : vector<8x384xf32> to vector<8x128xf32>
    %90 = vector.extract_strided_slice %88 {offsets = [0, 128], sizes = [8, 128], strides = [1, 1]} : vector<8x384xf32> to vector<8x128xf32>
    %91 = vector.extract_strided_slice %88 {offsets = [0, 256], sizes = [8, 128], strides = [1, 1]} : vector<8x384xf32> to vector<8x128xf32>
    %92 = vector.extract_strided_slice %80 {offsets = [0, 384], sizes = [8, 128], strides = [1, 1]} : vector<8x512xf32> to vector<8x128xf32>
    %93 = math.tanh %92 : vector<8x128xf32>
    %94 = arith.mulf %90, %37 : vector<8x128xf32>
    %95 = arith.mulf %89, %93 : vector<8x128xf32>
    %96 = arith.addf %94, %95 : vector<8x128xf32>
    %97 = math.tanh %96 : vector<8x128xf32>
    %98 = arith.mulf %91, %97 : vector<8x128xf32>
    %99 = arith.select %72, %98, %36 : vector<8x128xf32>
    %100 = arith.select %72, %96, %37 : vector<8x128xf32>
    %c1_i32_41 = arith.constant 1 : i32
    %101 = arith.subi %c1_i32_30, %c1_i32_41 : i32
    %c0_i32_42 = arith.constant 0 : i32
    %102 = arith.cmpi sge, %101, %c0_i32_42 : i32
    %c8_i32_43 = arith.constant 8 : i32
    %103 = arith.cmpi slt, %101, %c8_i32_43 : i32
    %104 = arith.andi %102, %103 : i1
    %105 = arith.truncf %36 : vector<8x128xf32> to vector<8x128xbf16>
    %c0_44 = arith.constant 0 : index
    %c0_45 = arith.constant 0 : index
    %106 = vector.load %arg4[%c0_44, %c0_45] : memref<128x512xbf16, #tpu.memory_space<vmem>>, vector<128x512xbf16>
    %cst_46 = arith.constant dense<0.000000e+00> : vector<8x512xf32>
    %107 = tpu.matmul %105, %106, %cst_46 {dimension_numbers = #tpu.dot_dimension_numbers<[1], [0], [0], [1], [0, 0, 1, 1], [], []>} : vector<8x128xbf16>, vector<128x512xbf16>, vector<8x512xf32> -> vector<8x512xf32>
    %c0_47 = arith.constant 0 : index
    %c0_48 = arith.constant 0 : index
    %108 = vector.load %arg6[%c0_47, %c0_48] : memref<1x512xf32, #tpu.memory_space<vmem>>, vector<1x512xf32>
    %109 = vector.broadcast %108 : vector<1x512xf32> to vector<8x512xf32>
    %110 = arith.addf %107, %109 : vector<8x512xf32>
    %111 = arith.truncf %70 : vector<8x128xf32> to vector<8x128xbf16>
    %c0_49 = arith.constant 0 : index
    %c0_50 = arith.constant 0 : index
    %112 = vector.load %arg5[%c0_49, %c0_50] : memref<128x512xbf16, #tpu.memory_space<vmem>>, vector<128x512xbf16>
    %cst_51 = arith.constant dense<0.000000e+00> : vector<8x512xf32>
    %113 = tpu.matmul %111, %112, %cst_51 {dimension_numbers = #tpu.dot_dimension_numbers<[1], [0], [0], [1], [0, 0, 1, 1], [], []>} : vector<8x128xbf16>, vector<128x512xbf16>, vector<8x512xf32> -> vector<8x512xf32>
    %114 = arith.addf %110, %113 : vector<8x512xf32>
    %115 = vector.extract_strided_slice %114 {offsets = [0, 0], sizes = [8, 384], strides = [1, 1]} : vector<8x512xf32> to vector<8x384xf32>
    %cst_52 = arith.constant 5.000000e-01 : f32
    %116 = vector.broadcast %cst_52 : f32 to vector<8x384xf32>
    %117 = arith.mulf %116, %115 : vector<8x384xf32>
    %118 = math.tanh %117 : vector<8x384xf32>
    %cst_53 = arith.constant 5.000000e-01 : f32
    %119 = vector.broadcast %cst_53 : f32 to vector<8x384xf32>
    %120 = arith.mulf %119, %118 : vector<8x384xf32>
    %cst_54 = arith.constant 5.000000e-01 : f32
    %121 = vector.broadcast %cst_54 : f32 to vector<8x384xf32>
    %122 = arith.addf %120, %121 : vector<8x384xf32>
    %123 = vector.extract_strided_slice %122 {offsets = [0, 0], sizes = [8, 128], strides = [1, 1]} : vector<8x384xf32> to vector<8x128xf32>
    %124 = vector.extract_strided_slice %122 {offsets = [0, 128], sizes = [8, 128], strides = [1, 1]} : vector<8x384xf32> to vector<8x128xf32>
    %125 = vector.extract_strided_slice %122 {offsets = [0, 256], sizes = [8, 128], strides = [1, 1]} : vector<8x384xf32> to vector<8x128xf32>
    %126 = vector.extract_strided_slice %114 {offsets = [0, 384], sizes = [8, 128], strides = [1, 1]} : vector<8x512xf32> to vector<8x128xf32>
    %127 = math.tanh %126 : vector<8x128xf32>
    %128 = arith.mulf %124, %71 : vector<8x128xf32>
    %129 = arith.mulf %123, %127 : vector<8x128xf32>
    %130 = arith.addf %128, %129 : vector<8x128xf32>
    %131 = math.tanh %130 : vector<8x128xf32>
    %132 = arith.mulf %125, %131 : vector<8x128xf32>
    %133 = arith.select %104, %132, %70 : vector<8x128xf32>
    %134 = arith.select %104, %130, %71 : vector<8x128xf32>
    %c2_i32 = arith.constant 2 : i32
    %c8_i32_55 = arith.constant 8 : i32
    %135 = arith.cmpi slt, %c2_i32, %c8_i32_55 : i32
    %c7_i32_56 = arith.constant 7 : i32
    %136 = arith.minsi %c2_i32, %c7_i32_56 : i32
    %137 = arith.index_cast %136 : i32 to index
    %c0_57 = arith.constant 0 : index
    %c0_58 = arith.constant 0 : index
    %138 = vector.load %arg10[%137, %c0_57, %c0_58] : memref<8x8x512xf32, #tpu.memory_space<vmem>>, vector<1x8x512xf32>
    %139 = vector.shape_cast %138 : vector<1x8x512xf32> to vector<8x512xf32>
    %140 = arith.truncf %99 : vector<8x128xf32> to vector<8x128xbf16>
    %c0_59 = arith.constant 0 : index
    %c0_60 = arith.constant 0 : index
    %141 = vector.load %arg2[%c0_59, %c0_60] : memref<128x512xbf16, #tpu.memory_space<vmem>>, vector<128x512xbf16>
    %cst_61 = arith.constant dense<0.000000e+00> : vector<8x512xf32>
    %142 = tpu.matmul %140, %141, %cst_61 {dimension_numbers = #tpu.dot_dimension_numbers<[1], [0], [0], [1], [0, 0, 1, 1], [], []>} : vector<8x128xbf16>, vector<128x512xbf16>, vector<8x512xf32> -> vector<8x512xf32>
    %143 = arith.addf %139, %142 : vector<8x512xf32>
    %144 = vector.extract_strided_slice %143 {offsets = [0, 0], sizes = [8, 384], strides = [1, 1]} : vector<8x512xf32> to vector<8x384xf32>
    %cst_62 = arith.constant 5.000000e-01 : f32
    %145 = vector.broadcast %cst_62 : f32 to vector<8x384xf32>
    %146 = arith.mulf %145, %144 : vector<8x384xf32>
    %147 = math.tanh %146 : vector<8x384xf32>
    %cst_63 = arith.constant 5.000000e-01 : f32
    %148 = vector.broadcast %cst_63 : f32 to vector<8x384xf32>
    %149 = arith.mulf %148, %147 : vector<8x384xf32>
    %cst_64 = arith.constant 5.000000e-01 : f32
    %150 = vector.broadcast %cst_64 : f32 to vector<8x384xf32>
    %151 = arith.addf %149, %150 : vector<8x384xf32>
    %152 = vector.extract_strided_slice %151 {offsets = [0, 0], sizes = [8, 128], strides = [1, 1]} : vector<8x384xf32> to vector<8x128xf32>
    %153 = vector.extract_strided_slice %151 {offsets = [0, 128], sizes = [8, 128], strides = [1, 1]} : vector<8x384xf32> to vector<8x128xf32>
    %154 = vector.extract_strided_slice %151 {offsets = [0, 256], sizes = [8, 128], strides = [1, 1]} : vector<8x384xf32> to vector<8x128xf32>
    %155 = vector.extract_strided_slice %143 {offsets = [0, 384], sizes = [8, 128], strides = [1, 1]} : vector<8x512xf32> to vector<8x128xf32>
    %156 = math.tanh %155 : vector<8x128xf32>
    %157 = arith.mulf %153, %100 : vector<8x128xf32>
    %158 = arith.mulf %152, %156 : vector<8x128xf32>
    %159 = arith.addf %157, %158 : vector<8x128xf32>
    %160 = math.tanh %159 : vector<8x128xf32>
    %161 = arith.mulf %154, %160 : vector<8x128xf32>
    %162 = arith.select %135, %161, %99 : vector<8x128xf32>
    %163 = arith.select %135, %159, %100 : vector<8x128xf32>
    %c1_i32_65 = arith.constant 1 : i32
    %164 = arith.subi %c2_i32, %c1_i32_65 : i32
    %c0_i32_66 = arith.constant 0 : i32
    %165 = arith.cmpi sge, %164, %c0_i32_66 : i32
    %c8_i32_67 = arith.constant 8 : i32
    %166 = arith.cmpi slt, %164, %c8_i32_67 : i32
    %167 = arith.andi %165, %166 : i1
    %168 = arith.truncf %99 : vector<8x128xf32> to vector<8x128xbf16>
    %c0_68 = arith.constant 0 : index
    %c0_69 = arith.constant 0 : index
    %169 = vector.load %arg4[%c0_68, %c0_69] : memref<128x512xbf16, #tpu.memory_space<vmem>>, vector<128x512xbf16>
    %cst_70 = arith.constant dense<0.000000e+00> : vector<8x512xf32>
    %170 = tpu.matmul %168, %169, %cst_70 {dimension_numbers = #tpu.dot_dimension_numbers<[1], [0], [0], [1], [0, 0, 1, 1], [], []>} : vector<8x128xbf16>, vector<128x512xbf16>, vector<8x512xf32> -> vector<8x512xf32>
    %c0_71 = arith.constant 0 : index
    %c0_72 = arith.constant 0 : index
    %171 = vector.load %arg6[%c0_71, %c0_72] : memref<1x512xf32, #tpu.memory_space<vmem>>, vector<1x512xf32>
    %172 = vector.broadcast %171 : vector<1x512xf32> to vector<8x512xf32>
    %173 = arith.addf %170, %172 : vector<8x512xf32>
    %174 = arith.truncf %133 : vector<8x128xf32> to vector<8x128xbf16>
    %c0_73 = arith.constant 0 : index
    %c0_74 = arith.constant 0 : index
    %175 = vector.load %arg5[%c0_73, %c0_74] : memref<128x512xbf16, #tpu.memory_space<vmem>>, vector<128x512xbf16>
    %cst_75 = arith.constant dense<0.000000e+00> : vector<8x512xf32>
    %176 = tpu.matmul %174, %175, %cst_75 {dimension_numbers = #tpu.dot_dimension_numbers<[1], [0], [0], [1], [0, 0, 1, 1], [], []>} : vector<8x128xbf16>, vector<128x512xbf16>, vector<8x512xf32> -> vector<8x512xf32>
    %177 = arith.addf %173, %176 : vector<8x512xf32>
    %178 = vector.extract_strided_slice %177 {offsets = [0, 0], sizes = [8, 384], strides = [1, 1]} : vector<8x512xf32> to vector<8x384xf32>
    %cst_76 = arith.constant 5.000000e-01 : f32
    %179 = vector.broadcast %cst_76 : f32 to vector<8x384xf32>
    %180 = arith.mulf %179, %178 : vector<8x384xf32>
    %181 = math.tanh %180 : vector<8x384xf32>
    %cst_77 = arith.constant 5.000000e-01 : f32
    %182 = vector.broadcast %cst_77 : f32 to vector<8x384xf32>
    %183 = arith.mulf %182, %181 : vector<8x384xf32>
    %cst_78 = arith.constant 5.000000e-01 : f32
    %184 = vector.broadcast %cst_78 : f32 to vector<8x384xf32>
    %185 = arith.addf %183, %184 : vector<8x384xf32>
    %186 = vector.extract_strided_slice %185 {offsets = [0, 0], sizes = [8, 128], strides = [1, 1]} : vector<8x384xf32> to vector<8x128xf32>
    %187 = vector.extract_strided_slice %185 {offsets = [0, 128], sizes = [8, 128], strides = [1, 1]} : vector<8x384xf32> to vector<8x128xf32>
    %188 = vector.extract_strided_slice %185 {offsets = [0, 256], sizes = [8, 128], strides = [1, 1]} : vector<8x384xf32> to vector<8x128xf32>
    %189 = vector.extract_strided_slice %177 {offsets = [0, 384], sizes = [8, 128], strides = [1, 1]} : vector<8x512xf32> to vector<8x128xf32>
    %190 = math.tanh %189 : vector<8x128xf32>
    %191 = arith.mulf %187, %134 : vector<8x128xf32>
    %192 = arith.mulf %186, %190 : vector<8x128xf32>
    %193 = arith.addf %191, %192 : vector<8x128xf32>
    %194 = math.tanh %193 : vector<8x128xf32>
    %195 = arith.mulf %188, %194 : vector<8x128xf32>
    %196 = arith.select %167, %195, %133 : vector<8x128xf32>
    %197 = arith.select %167, %193, %134 : vector<8x128xf32>
    %c3_i32 = arith.constant 3 : i32
    %c8_i32_79 = arith.constant 8 : i32
    %198 = arith.cmpi slt, %c3_i32, %c8_i32_79 : i32
    %c7_i32_80 = arith.constant 7 : i32
    %199 = arith.minsi %c3_i32, %c7_i32_80 : i32
    %200 = arith.index_cast %199 : i32 to index
    %c0_81 = arith.constant 0 : index
    %c0_82 = arith.constant 0 : index
    %201 = vector.load %arg10[%200, %c0_81, %c0_82] : memref<8x8x512xf32, #tpu.memory_space<vmem>>, vector<1x8x512xf32>
    %202 = vector.shape_cast %201 : vector<1x8x512xf32> to vector<8x512xf32>
    %203 = arith.truncf %162 : vector<8x128xf32> to vector<8x128xbf16>
    %c0_83 = arith.constant 0 : index
    %c0_84 = arith.constant 0 : index
    %204 = vector.load %arg2[%c0_83, %c0_84] : memref<128x512xbf16, #tpu.memory_space<vmem>>, vector<128x512xbf16>
    %cst_85 = arith.constant dense<0.000000e+00> : vector<8x512xf32>
    %205 = tpu.matmul %203, %204, %cst_85 {dimension_numbers = #tpu.dot_dimension_numbers<[1], [0], [0], [1], [0, 0, 1, 1], [], []>} : vector<8x128xbf16>, vector<128x512xbf16>, vector<8x512xf32> -> vector<8x512xf32>
    %206 = arith.addf %202, %205 : vector<8x512xf32>
    %207 = vector.extract_strided_slice %206 {offsets = [0, 0], sizes = [8, 384], strides = [1, 1]} : vector<8x512xf32> to vector<8x384xf32>
    %cst_86 = arith.constant 5.000000e-01 : f32
    %208 = vector.broadcast %cst_86 : f32 to vector<8x384xf32>
    %209 = arith.mulf %208, %207 : vector<8x384xf32>
    %210 = math.tanh %209 : vector<8x384xf32>
    %cst_87 = arith.constant 5.000000e-01 : f32
    %211 = vector.broadcast %cst_87 : f32 to vector<8x384xf32>
    %212 = arith.mulf %211, %210 : vector<8x384xf32>
    %cst_88 = arith.constant 5.000000e-01 : f32
    %213 = vector.broadcast %cst_88 : f32 to vector<8x384xf32>
    %214 = arith.addf %212, %213 : vector<8x384xf32>
    %215 = vector.extract_strided_slice %214 {offsets = [0, 0], sizes = [8, 128], strides = [1, 1]} : vector<8x384xf32> to vector<8x128xf32>
    %216 = vector.extract_strided_slice %214 {offsets = [0, 128], sizes = [8, 128], strides = [1, 1]} : vector<8x384xf32> to vector<8x128xf32>
    %217 = vector.extract_strided_slice %214 {offsets = [0, 256], sizes = [8, 128], strides = [1, 1]} : vector<8x384xf32> to vector<8x128xf32>
    %218 = vector.extract_strided_slice %206 {offsets = [0, 384], sizes = [8, 128], strides = [1, 1]} : vector<8x512xf32> to vector<8x128xf32>
    %219 = math.tanh %218 : vector<8x128xf32>
    %220 = arith.mulf %216, %163 : vector<8x128xf32>
    %221 = arith.mulf %215, %219 : vector<8x128xf32>
    %222 = arith.addf %220, %221 : vector<8x128xf32>
    %223 = math.tanh %222 : vector<8x128xf32>
    %224 = arith.mulf %217, %223 : vector<8x128xf32>
    %225 = arith.select %198, %224, %162 : vector<8x128xf32>
    %226 = arith.select %198, %222, %163 : vector<8x128xf32>
    %c1_i32_89 = arith.constant 1 : i32
    %227 = arith.subi %c3_i32, %c1_i32_89 : i32
    %c0_i32_90 = arith.constant 0 : i32
    %228 = arith.cmpi sge, %227, %c0_i32_90 : i32
    %c8_i32_91 = arith.constant 8 : i32
    %229 = arith.cmpi slt, %227, %c8_i32_91 : i32
    %230 = arith.andi %228, %229 : i1
    %231 = arith.truncf %162 : vector<8x128xf32> to vector<8x128xbf16>
    %c0_92 = arith.constant 0 : index
    %c0_93 = arith.constant 0 : index
    %232 = vector.load %arg4[%c0_92, %c0_93] : memref<128x512xbf16, #tpu.memory_space<vmem>>, vector<128x512xbf16>
    %cst_94 = arith.constant dense<0.000000e+00> : vector<8x512xf32>
    %233 = tpu.matmul %231, %232, %cst_94 {dimension_numbers = #tpu.dot_dimension_numbers<[1], [0], [0], [1], [0, 0, 1, 1], [], []>} : vector<8x128xbf16>, vector<128x512xbf16>, vector<8x512xf32> -> vector<8x512xf32>
    %c0_95 = arith.constant 0 : index
    %c0_96 = arith.constant 0 : index
    %234 = vector.load %arg6[%c0_95, %c0_96] : memref<1x512xf32, #tpu.memory_space<vmem>>, vector<1x512xf32>
    %235 = vector.broadcast %234 : vector<1x512xf32> to vector<8x512xf32>
    %236 = arith.addf %233, %235 : vector<8x512xf32>
    %237 = arith.truncf %196 : vector<8x128xf32> to vector<8x128xbf16>
    %c0_97 = arith.constant 0 : index
    %c0_98 = arith.constant 0 : index
    %238 = vector.load %arg5[%c0_97, %c0_98] : memref<128x512xbf16, #tpu.memory_space<vmem>>, vector<128x512xbf16>
    %cst_99 = arith.constant dense<0.000000e+00> : vector<8x512xf32>
    %239 = tpu.matmul %237, %238, %cst_99 {dimension_numbers = #tpu.dot_dimension_numbers<[1], [0], [0], [1], [0, 0, 1, 1], [], []>} : vector<8x128xbf16>, vector<128x512xbf16>, vector<8x512xf32> -> vector<8x512xf32>
    %240 = arith.addf %236, %239 : vector<8x512xf32>
    %241 = vector.extract_strided_slice %240 {offsets = [0, 0], sizes = [8, 384], strides = [1, 1]} : vector<8x512xf32> to vector<8x384xf32>
    %cst_100 = arith.constant 5.000000e-01 : f32
    %242 = vector.broadcast %cst_100 : f32 to vector<8x384xf32>
    %243 = arith.mulf %242, %241 : vector<8x384xf32>
    %244 = math.tanh %243 : vector<8x384xf32>
    %cst_101 = arith.constant 5.000000e-01 : f32
    %245 = vector.broadcast %cst_101 : f32 to vector<8x384xf32>
    %246 = arith.mulf %245, %244 : vector<8x384xf32>
    %cst_102 = arith.constant 5.000000e-01 : f32
    %247 = vector.broadcast %cst_102 : f32 to vector<8x384xf32>
    %248 = arith.addf %246, %247 : vector<8x384xf32>
    %249 = vector.extract_strided_slice %248 {offsets = [0, 0], sizes = [8, 128], strides = [1, 1]} : vector<8x384xf32> to vector<8x128xf32>
    %250 = vector.extract_strided_slice %248 {offsets = [0, 128], sizes = [8, 128], strides = [1, 1]} : vector<8x384xf32> to vector<8x128xf32>
    %251 = vector.extract_strided_slice %248 {offsets = [0, 256], sizes = [8, 128], strides = [1, 1]} : vector<8x384xf32> to vector<8x128xf32>
    %252 = vector.extract_strided_slice %240 {offsets = [0, 384], sizes = [8, 128], strides = [1, 1]} : vector<8x512xf32> to vector<8x128xf32>
    %253 = math.tanh %252 : vector<8x128xf32>
    %254 = arith.mulf %250, %197 : vector<8x128xf32>
    %255 = arith.mulf %249, %253 : vector<8x128xf32>
    %256 = arith.addf %254, %255 : vector<8x128xf32>
    %257 = math.tanh %256 : vector<8x128xf32>
    %258 = arith.mulf %251, %257 : vector<8x128xf32>
    %259 = arith.select %230, %258, %196 : vector<8x128xf32>
    %260 = arith.select %230, %256, %197 : vector<8x128xf32>
    %c4_i32 = arith.constant 4 : i32
    %c8_i32_103 = arith.constant 8 : i32
    %261 = arith.cmpi slt, %c4_i32, %c8_i32_103 : i32
    %c7_i32_104 = arith.constant 7 : i32
    %262 = arith.minsi %c4_i32, %c7_i32_104 : i32
    %263 = arith.index_cast %262 : i32 to index
    %c0_105 = arith.constant 0 : index
    %c0_106 = arith.constant 0 : index
    %264 = vector.load %arg10[%263, %c0_105, %c0_106] : memref<8x8x512xf32, #tpu.memory_space<vmem>>, vector<1x8x512xf32>
    %265 = vector.shape_cast %264 : vector<1x8x512xf32> to vector<8x512xf32>
    %266 = arith.truncf %225 : vector<8x128xf32> to vector<8x128xbf16>
    %c0_107 = arith.constant 0 : index
    %c0_108 = arith.constant 0 : index
    %267 = vector.load %arg2[%c0_107, %c0_108] : memref<128x512xbf16, #tpu.memory_space<vmem>>, vector<128x512xbf16>
    %cst_109 = arith.constant dense<0.000000e+00> : vector<8x512xf32>
    %268 = tpu.matmul %266, %267, %cst_109 {dimension_numbers = #tpu.dot_dimension_numbers<[1], [0], [0], [1], [0, 0, 1, 1], [], []>} : vector<8x128xbf16>, vector<128x512xbf16>, vector<8x512xf32> -> vector<8x512xf32>
    %269 = arith.addf %265, %268 : vector<8x512xf32>
    %270 = vector.extract_strided_slice %269 {offsets = [0, 0], sizes = [8, 384], strides = [1, 1]} : vector<8x512xf32> to vector<8x384xf32>
    %cst_110 = arith.constant 5.000000e-01 : f32
    %271 = vector.broadcast %cst_110 : f32 to vector<8x384xf32>
    %272 = arith.mulf %271, %270 : vector<8x384xf32>
    %273 = math.tanh %272 : vector<8x384xf32>
    %cst_111 = arith.constant 5.000000e-01 : f32
    %274 = vector.broadcast %cst_111 : f32 to vector<8x384xf32>
    %275 = arith.mulf %274, %273 : vector<8x384xf32>
    %cst_112 = arith.constant 5.000000e-01 : f32
    %276 = vector.broadcast %cst_112 : f32 to vector<8x384xf32>
    %277 = arith.addf %275, %276 : vector<8x384xf32>
    %278 = vector.extract_strided_slice %277 {offsets = [0, 0], sizes = [8, 128], strides = [1, 1]} : vector<8x384xf32> to vector<8x128xf32>
    %279 = vector.extract_strided_slice %277 {offsets = [0, 128], sizes = [8, 128], strides = [1, 1]} : vector<8x384xf32> to vector<8x128xf32>
    %280 = vector.extract_strided_slice %277 {offsets = [0, 256], sizes = [8, 128], strides = [1, 1]} : vector<8x384xf32> to vector<8x128xf32>
    %281 = vector.extract_strided_slice %269 {offsets = [0, 384], sizes = [8, 128], strides = [1, 1]} : vector<8x512xf32> to vector<8x128xf32>
    %282 = math.tanh %281 : vector<8x128xf32>
    %283 = arith.mulf %279, %226 : vector<8x128xf32>
    %284 = arith.mulf %278, %282 : vector<8x128xf32>
    %285 = arith.addf %283, %284 : vector<8x128xf32>
    %286 = math.tanh %285 : vector<8x128xf32>
    %287 = arith.mulf %280, %286 : vector<8x128xf32>
    %288 = arith.select %261, %287, %225 : vector<8x128xf32>
    %289 = arith.select %261, %285, %226 : vector<8x128xf32>
    %c1_i32_113 = arith.constant 1 : i32
    %290 = arith.subi %c4_i32, %c1_i32_113 : i32
    %c0_i32_114 = arith.constant 0 : i32
    %291 = arith.cmpi sge, %290, %c0_i32_114 : i32
    %c8_i32_115 = arith.constant 8 : i32
    %292 = arith.cmpi slt, %290, %c8_i32_115 : i32
    %293 = arith.andi %291, %292 : i1
    %294 = arith.truncf %225 : vector<8x128xf32> to vector<8x128xbf16>
    %c0_116 = arith.constant 0 : index
    %c0_117 = arith.constant 0 : index
    %295 = vector.load %arg4[%c0_116, %c0_117] : memref<128x512xbf16, #tpu.memory_space<vmem>>, vector<128x512xbf16>
    %cst_118 = arith.constant dense<0.000000e+00> : vector<8x512xf32>
    %296 = tpu.matmul %294, %295, %cst_118 {dimension_numbers = #tpu.dot_dimension_numbers<[1], [0], [0], [1], [0, 0, 1, 1], [], []>} : vector<8x128xbf16>, vector<128x512xbf16>, vector<8x512xf32> -> vector<8x512xf32>
    %c0_119 = arith.constant 0 : index
    %c0_120 = arith.constant 0 : index
    %297 = vector.load %arg6[%c0_119, %c0_120] : memref<1x512xf32, #tpu.memory_space<vmem>>, vector<1x512xf32>
    %298 = vector.broadcast %297 : vector<1x512xf32> to vector<8x512xf32>
    %299 = arith.addf %296, %298 : vector<8x512xf32>
    %300 = arith.truncf %259 : vector<8x128xf32> to vector<8x128xbf16>
    %c0_121 = arith.constant 0 : index
    %c0_122 = arith.constant 0 : index
    %301 = vector.load %arg5[%c0_121, %c0_122] : memref<128x512xbf16, #tpu.memory_space<vmem>>, vector<128x512xbf16>
    %cst_123 = arith.constant dense<0.000000e+00> : vector<8x512xf32>
    %302 = tpu.matmul %300, %301, %cst_123 {dimension_numbers = #tpu.dot_dimension_numbers<[1], [0], [0], [1], [0, 0, 1, 1], [], []>} : vector<8x128xbf16>, vector<128x512xbf16>, vector<8x512xf32> -> vector<8x512xf32>
    %303 = arith.addf %299, %302 : vector<8x512xf32>
    %304 = vector.extract_strided_slice %303 {offsets = [0, 0], sizes = [8, 384], strides = [1, 1]} : vector<8x512xf32> to vector<8x384xf32>
    %cst_124 = arith.constant 5.000000e-01 : f32
    %305 = vector.broadcast %cst_124 : f32 to vector<8x384xf32>
    %306 = arith.mulf %305, %304 : vector<8x384xf32>
    %307 = math.tanh %306 : vector<8x384xf32>
    %cst_125 = arith.constant 5.000000e-01 : f32
    %308 = vector.broadcast %cst_125 : f32 to vector<8x384xf32>
    %309 = arith.mulf %308, %307 : vector<8x384xf32>
    %cst_126 = arith.constant 5.000000e-01 : f32
    %310 = vector.broadcast %cst_126 : f32 to vector<8x384xf32>
    %311 = arith.addf %309, %310 : vector<8x384xf32>
    %312 = vector.extract_strided_slice %311 {offsets = [0, 0], sizes = [8, 128], strides = [1, 1]} : vector<8x384xf32> to vector<8x128xf32>
    %313 = vector.extract_strided_slice %311 {offsets = [0, 128], sizes = [8, 128], strides = [1, 1]} : vector<8x384xf32> to vector<8x128xf32>
    %314 = vector.extract_strided_slice %311 {offsets = [0, 256], sizes = [8, 128], strides = [1, 1]} : vector<8x384xf32> to vector<8x128xf32>
    %315 = vector.extract_strided_slice %303 {offsets = [0, 384], sizes = [8, 128], strides = [1, 1]} : vector<8x512xf32> to vector<8x128xf32>
    %316 = math.tanh %315 : vector<8x128xf32>
    %317 = arith.mulf %313, %260 : vector<8x128xf32>
    %318 = arith.mulf %312, %316 : vector<8x128xf32>
    %319 = arith.addf %317, %318 : vector<8x128xf32>
    %320 = math.tanh %319 : vector<8x128xf32>
    %321 = arith.mulf %314, %320 : vector<8x128xf32>
    %322 = arith.select %293, %321, %259 : vector<8x128xf32>
    %323 = arith.select %293, %319, %260 : vector<8x128xf32>
    %c5_i32 = arith.constant 5 : i32
    %c8_i32_127 = arith.constant 8 : i32
    %324 = arith.cmpi slt, %c5_i32, %c8_i32_127 : i32
    %c7_i32_128 = arith.constant 7 : i32
    %325 = arith.minsi %c5_i32, %c7_i32_128 : i32
    %326 = arith.index_cast %325 : i32 to index
    %c0_129 = arith.constant 0 : index
    %c0_130 = arith.constant 0 : index
    %327 = vector.load %arg10[%326, %c0_129, %c0_130] : memref<8x8x512xf32, #tpu.memory_space<vmem>>, vector<1x8x512xf32>
    %328 = vector.shape_cast %327 : vector<1x8x512xf32> to vector<8x512xf32>
    %329 = arith.truncf %288 : vector<8x128xf32> to vector<8x128xbf16>
    %c0_131 = arith.constant 0 : index
    %c0_132 = arith.constant 0 : index
    %330 = vector.load %arg2[%c0_131, %c0_132] : memref<128x512xbf16, #tpu.memory_space<vmem>>, vector<128x512xbf16>
    %cst_133 = arith.constant dense<0.000000e+00> : vector<8x512xf32>
    %331 = tpu.matmul %329, %330, %cst_133 {dimension_numbers = #tpu.dot_dimension_numbers<[1], [0], [0], [1], [0, 0, 1, 1], [], []>} : vector<8x128xbf16>, vector<128x512xbf16>, vector<8x512xf32> -> vector<8x512xf32>
    %332 = arith.addf %328, %331 : vector<8x512xf32>
    %333 = vector.extract_strided_slice %332 {offsets = [0, 0], sizes = [8, 384], strides = [1, 1]} : vector<8x512xf32> to vector<8x384xf32>
    %cst_134 = arith.constant 5.000000e-01 : f32
    %334 = vector.broadcast %cst_134 : f32 to vector<8x384xf32>
    %335 = arith.mulf %334, %333 : vector<8x384xf32>
    %336 = math.tanh %335 : vector<8x384xf32>
    %cst_135 = arith.constant 5.000000e-01 : f32
    %337 = vector.broadcast %cst_135 : f32 to vector<8x384xf32>
    %338 = arith.mulf %337, %336 : vector<8x384xf32>
    %cst_136 = arith.constant 5.000000e-01 : f32
    %339 = vector.broadcast %cst_136 : f32 to vector<8x384xf32>
    %340 = arith.addf %338, %339 : vector<8x384xf32>
    %341 = vector.extract_strided_slice %340 {offsets = [0, 0], sizes = [8, 128], strides = [1, 1]} : vector<8x384xf32> to vector<8x128xf32>
    %342 = vector.extract_strided_slice %340 {offsets = [0, 128], sizes = [8, 128], strides = [1, 1]} : vector<8x384xf32> to vector<8x128xf32>
    %343 = vector.extract_strided_slice %340 {offsets = [0, 256], sizes = [8, 128], strides = [1, 1]} : vector<8x384xf32> to vector<8x128xf32>
    %344 = vector.extract_strided_slice %332 {offsets = [0, 384], sizes = [8, 128], strides = [1, 1]} : vector<8x512xf32> to vector<8x128xf32>
    %345 = math.tanh %344 : vector<8x128xf32>
    %346 = arith.mulf %342, %289 : vector<8x128xf32>
    %347 = arith.mulf %341, %345 : vector<8x128xf32>
    %348 = arith.addf %346, %347 : vector<8x128xf32>
    %349 = math.tanh %348 : vector<8x128xf32>
    %350 = arith.mulf %343, %349 : vector<8x128xf32>
    %351 = arith.select %324, %350, %288 : vector<8x128xf32>
    %352 = arith.select %324, %348, %289 : vector<8x128xf32>
    %c1_i32_137 = arith.constant 1 : i32
    %353 = arith.subi %c5_i32, %c1_i32_137 : i32
    %c0_i32_138 = arith.constant 0 : i32
    %354 = arith.cmpi sge, %353, %c0_i32_138 : i32
    %c8_i32_139 = arith.constant 8 : i32
    %355 = arith.cmpi slt, %353, %c8_i32_139 : i32
    %356 = arith.andi %354, %355 : i1
    %357 = arith.truncf %288 : vector<8x128xf32> to vector<8x128xbf16>
    %c0_140 = arith.constant 0 : index
    %c0_141 = arith.constant 0 : index
    %358 = vector.load %arg4[%c0_140, %c0_141] : memref<128x512xbf16, #tpu.memory_space<vmem>>, vector<128x512xbf16>
    %cst_142 = arith.constant dense<0.000000e+00> : vector<8x512xf32>
    %359 = tpu.matmul %357, %358, %cst_142 {dimension_numbers = #tpu.dot_dimension_numbers<[1], [0], [0], [1], [0, 0, 1, 1], [], []>} : vector<8x128xbf16>, vector<128x512xbf16>, vector<8x512xf32> -> vector<8x512xf32>
    %c0_143 = arith.constant 0 : index
    %c0_144 = arith.constant 0 : index
    %360 = vector.load %arg6[%c0_143, %c0_144] : memref<1x512xf32, #tpu.memory_space<vmem>>, vector<1x512xf32>
    %361 = vector.broadcast %360 : vector<1x512xf32> to vector<8x512xf32>
    %362 = arith.addf %359, %361 : vector<8x512xf32>
    %363 = arith.truncf %322 : vector<8x128xf32> to vector<8x128xbf16>
    %c0_145 = arith.constant 0 : index
    %c0_146 = arith.constant 0 : index
    %364 = vector.load %arg5[%c0_145, %c0_146] : memref<128x512xbf16, #tpu.memory_space<vmem>>, vector<128x512xbf16>
    %cst_147 = arith.constant dense<0.000000e+00> : vector<8x512xf32>
    %365 = tpu.matmul %363, %364, %cst_147 {dimension_numbers = #tpu.dot_dimension_numbers<[1], [0], [0], [1], [0, 0, 1, 1], [], []>} : vector<8x128xbf16>, vector<128x512xbf16>, vector<8x512xf32> -> vector<8x512xf32>
    %366 = arith.addf %362, %365 : vector<8x512xf32>
    %367 = vector.extract_strided_slice %366 {offsets = [0, 0], sizes = [8, 384], strides = [1, 1]} : vector<8x512xf32> to vector<8x384xf32>
    %cst_148 = arith.constant 5.000000e-01 : f32
    %368 = vector.broadcast %cst_148 : f32 to vector<8x384xf32>
    %369 = arith.mulf %368, %367 : vector<8x384xf32>
    %370 = math.tanh %369 : vector<8x384xf32>
    %cst_149 = arith.constant 5.000000e-01 : f32
    %371 = vector.broadcast %cst_149 : f32 to vector<8x384xf32>
    %372 = arith.mulf %371, %370 : vector<8x384xf32>
    %cst_150 = arith.constant 5.000000e-01 : f32
    %373 = vector.broadcast %cst_150 : f32 to vector<8x384xf32>
    %374 = arith.addf %372, %373 : vector<8x384xf32>
    %375 = vector.extract_strided_slice %374 {offsets = [0, 0], sizes = [8, 128], strides = [1, 1]} : vector<8x384xf32> to vector<8x128xf32>
    %376 = vector.extract_strided_slice %374 {offsets = [0, 128], sizes = [8, 128], strides = [1, 1]} : vector<8x384xf32> to vector<8x128xf32>
    %377 = vector.extract_strided_slice %374 {offsets = [0, 256], sizes = [8, 128], strides = [1, 1]} : vector<8x384xf32> to vector<8x128xf32>
    %378 = vector.extract_strided_slice %366 {offsets = [0, 384], sizes = [8, 128], strides = [1, 1]} : vector<8x512xf32> to vector<8x128xf32>
    %379 = math.tanh %378 : vector<8x128xf32>
    %380 = arith.mulf %376, %323 : vector<8x128xf32>
    %381 = arith.mulf %375, %379 : vector<8x128xf32>
    %382 = arith.addf %380, %381 : vector<8x128xf32>
    %383 = math.tanh %382 : vector<8x128xf32>
    %384 = arith.mulf %377, %383 : vector<8x128xf32>
    %385 = arith.select %356, %384, %322 : vector<8x128xf32>
    %386 = arith.select %356, %382, %323 : vector<8x128xf32>
    %c6_i32 = arith.constant 6 : i32
    %c8_i32_151 = arith.constant 8 : i32
    %387 = arith.cmpi slt, %c6_i32, %c8_i32_151 : i32
    %c7_i32_152 = arith.constant 7 : i32
    %388 = arith.minsi %c6_i32, %c7_i32_152 : i32
    %389 = arith.index_cast %388 : i32 to index
    %c0_153 = arith.constant 0 : index
    %c0_154 = arith.constant 0 : index
    %390 = vector.load %arg10[%389, %c0_153, %c0_154] : memref<8x8x512xf32, #tpu.memory_space<vmem>>, vector<1x8x512xf32>
    %391 = vector.shape_cast %390 : vector<1x8x512xf32> to vector<8x512xf32>
    %392 = arith.truncf %351 : vector<8x128xf32> to vector<8x128xbf16>
    %c0_155 = arith.constant 0 : index
    %c0_156 = arith.constant 0 : index
    %393 = vector.load %arg2[%c0_155, %c0_156] : memref<128x512xbf16, #tpu.memory_space<vmem>>, vector<128x512xbf16>
    %cst_157 = arith.constant dense<0.000000e+00> : vector<8x512xf32>
    %394 = tpu.matmul %392, %393, %cst_157 {dimension_numbers = #tpu.dot_dimension_numbers<[1], [0], [0], [1], [0, 0, 1, 1], [], []>} : vector<8x128xbf16>, vector<128x512xbf16>, vector<8x512xf32> -> vector<8x512xf32>
    %395 = arith.addf %391, %394 : vector<8x512xf32>
    %396 = vector.extract_strided_slice %395 {offsets = [0, 0], sizes = [8, 384], strides = [1, 1]} : vector<8x512xf32> to vector<8x384xf32>
    %cst_158 = arith.constant 5.000000e-01 : f32
    %397 = vector.broadcast %cst_158 : f32 to vector<8x384xf32>
    %398 = arith.mulf %397, %396 : vector<8x384xf32>
    %399 = math.tanh %398 : vector<8x384xf32>
    %cst_159 = arith.constant 5.000000e-01 : f32
    %400 = vector.broadcast %cst_159 : f32 to vector<8x384xf32>
    %401 = arith.mulf %400, %399 : vector<8x384xf32>
    %cst_160 = arith.constant 5.000000e-01 : f32
    %402 = vector.broadcast %cst_160 : f32 to vector<8x384xf32>
    %403 = arith.addf %401, %402 : vector<8x384xf32>
    %404 = vector.extract_strided_slice %403 {offsets = [0, 0], sizes = [8, 128], strides = [1, 1]} : vector<8x384xf32> to vector<8x128xf32>
    %405 = vector.extract_strided_slice %403 {offsets = [0, 128], sizes = [8, 128], strides = [1, 1]} : vector<8x384xf32> to vector<8x128xf32>
    %406 = vector.extract_strided_slice %403 {offsets = [0, 256], sizes = [8, 128], strides = [1, 1]} : vector<8x384xf32> to vector<8x128xf32>
    %407 = vector.extract_strided_slice %395 {offsets = [0, 384], sizes = [8, 128], strides = [1, 1]} : vector<8x512xf32> to vector<8x128xf32>
    %408 = math.tanh %407 : vector<8x128xf32>
    %409 = arith.mulf %405, %352 : vector<8x128xf32>
    %410 = arith.mulf %404, %408 : vector<8x128xf32>
    %411 = arith.addf %409, %410 : vector<8x128xf32>
    %412 = math.tanh %411 : vector<8x128xf32>
    %413 = arith.mulf %406, %412 : vector<8x128xf32>
    %414 = arith.select %387, %413, %351 : vector<8x128xf32>
    %415 = arith.select %387, %411, %352 : vector<8x128xf32>
    %c1_i32_161 = arith.constant 1 : i32
    %416 = arith.subi %c6_i32, %c1_i32_161 : i32
    %c0_i32_162 = arith.constant 0 : i32
    %417 = arith.cmpi sge, %416, %c0_i32_162 : i32
    %c8_i32_163 = arith.constant 8 : i32
    %418 = arith.cmpi slt, %416, %c8_i32_163 : i32
    %419 = arith.andi %417, %418 : i1
    %420 = arith.truncf %351 : vector<8x128xf32> to vector<8x128xbf16>
    %c0_164 = arith.constant 0 : index
    %c0_165 = arith.constant 0 : index
    %421 = vector.load %arg4[%c0_164, %c0_165] : memref<128x512xbf16, #tpu.memory_space<vmem>>, vector<128x512xbf16>
    %cst_166 = arith.constant dense<0.000000e+00> : vector<8x512xf32>
    %422 = tpu.matmul %420, %421, %cst_166 {dimension_numbers = #tpu.dot_dimension_numbers<[1], [0], [0], [1], [0, 0, 1, 1], [], []>} : vector<8x128xbf16>, vector<128x512xbf16>, vector<8x512xf32> -> vector<8x512xf32>
    %c0_167 = arith.constant 0 : index
    %c0_168 = arith.constant 0 : index
    %423 = vector.load %arg6[%c0_167, %c0_168] : memref<1x512xf32, #tpu.memory_space<vmem>>, vector<1x512xf32>
    %424 = vector.broadcast %423 : vector<1x512xf32> to vector<8x512xf32>
    %425 = arith.addf %422, %424 : vector<8x512xf32>
    %426 = arith.truncf %385 : vector<8x128xf32> to vector<8x128xbf16>
    %c0_169 = arith.constant 0 : index
    %c0_170 = arith.constant 0 : index
    %427 = vector.load %arg5[%c0_169, %c0_170] : memref<128x512xbf16, #tpu.memory_space<vmem>>, vector<128x512xbf16>
    %cst_171 = arith.constant dense<0.000000e+00> : vector<8x512xf32>
    %428 = tpu.matmul %426, %427, %cst_171 {dimension_numbers = #tpu.dot_dimension_numbers<[1], [0], [0], [1], [0, 0, 1, 1], [], []>} : vector<8x128xbf16>, vector<128x512xbf16>, vector<8x512xf32> -> vector<8x512xf32>
    %429 = arith.addf %425, %428 : vector<8x512xf32>
    %430 = vector.extract_strided_slice %429 {offsets = [0, 0], sizes = [8, 384], strides = [1, 1]} : vector<8x512xf32> to vector<8x384xf32>
    %cst_172 = arith.constant 5.000000e-01 : f32
    %431 = vector.broadcast %cst_172 : f32 to vector<8x384xf32>
    %432 = arith.mulf %431, %430 : vector<8x384xf32>
    %433 = math.tanh %432 : vector<8x384xf32>
    %cst_173 = arith.constant 5.000000e-01 : f32
    %434 = vector.broadcast %cst_173 : f32 to vector<8x384xf32>
    %435 = arith.mulf %434, %433 : vector<8x384xf32>
    %cst_174 = arith.constant 5.000000e-01 : f32
    %436 = vector.broadcast %cst_174 : f32 to vector<8x384xf32>
    %437 = arith.addf %435, %436 : vector<8x384xf32>
    %438 = vector.extract_strided_slice %437 {offsets = [0, 0], sizes = [8, 128], strides = [1, 1]} : vector<8x384xf32> to vector<8x128xf32>
    %439 = vector.extract_strided_slice %437 {offsets = [0, 128], sizes = [8, 128], strides = [1, 1]} : vector<8x384xf32> to vector<8x128xf32>
    %440 = vector.extract_strided_slice %437 {offsets = [0, 256], sizes = [8, 128], strides = [1, 1]} : vector<8x384xf32> to vector<8x128xf32>
    %441 = vector.extract_strided_slice %429 {offsets = [0, 384], sizes = [8, 128], strides = [1, 1]} : vector<8x512xf32> to vector<8x128xf32>
    %442 = math.tanh %441 : vector<8x128xf32>
    %443 = arith.mulf %439, %386 : vector<8x128xf32>
    %444 = arith.mulf %438, %442 : vector<8x128xf32>
    %445 = arith.addf %443, %444 : vector<8x128xf32>
    %446 = math.tanh %445 : vector<8x128xf32>
    %447 = arith.mulf %440, %446 : vector<8x128xf32>
    %448 = arith.select %419, %447, %385 : vector<8x128xf32>
    %449 = arith.select %419, %445, %386 : vector<8x128xf32>
    %c7_i32_175 = arith.constant 7 : i32
    %c8_i32_176 = arith.constant 8 : i32
    %450 = arith.cmpi slt, %c7_i32_175, %c8_i32_176 : i32
    %c7_i32_177 = arith.constant 7 : i32
    %451 = arith.minsi %c7_i32_175, %c7_i32_177 : i32
    %452 = arith.index_cast %451 : i32 to index
    %c0_178 = arith.constant 0 : index
    %c0_179 = arith.constant 0 : index
    %453 = vector.load %arg10[%452, %c0_178, %c0_179] : memref<8x8x512xf32, #tpu.memory_space<vmem>>, vector<1x8x512xf32>
    %454 = vector.shape_cast %453 : vector<1x8x512xf32> to vector<8x512xf32>
    %455 = arith.truncf %414 : vector<8x128xf32> to vector<8x128xbf16>
    %c0_180 = arith.constant 0 : index
    %c0_181 = arith.constant 0 : index
    %456 = vector.load %arg2[%c0_180, %c0_181] : memref<128x512xbf16, #tpu.memory_space<vmem>>, vector<128x512xbf16>
    %cst_182 = arith.constant dense<0.000000e+00> : vector<8x512xf32>
    %457 = tpu.matmul %455, %456, %cst_182 {dimension_numbers = #tpu.dot_dimension_numbers<[1], [0], [0], [1], [0, 0, 1, 1], [], []>} : vector<8x128xbf16>, vector<128x512xbf16>, vector<8x512xf32> -> vector<8x512xf32>
    %458 = arith.addf %454, %457 : vector<8x512xf32>
    %459 = vector.extract_strided_slice %458 {offsets = [0, 0], sizes = [8, 384], strides = [1, 1]} : vector<8x512xf32> to vector<8x384xf32>
    %cst_183 = arith.constant 5.000000e-01 : f32
    %460 = vector.broadcast %cst_183 : f32 to vector<8x384xf32>
    %461 = arith.mulf %460, %459 : vector<8x384xf32>
    %462 = math.tanh %461 : vector<8x384xf32>
    %cst_184 = arith.constant 5.000000e-01 : f32
    %463 = vector.broadcast %cst_184 : f32 to vector<8x384xf32>
    %464 = arith.mulf %463, %462 : vector<8x384xf32>
    %cst_185 = arith.constant 5.000000e-01 : f32
    %465 = vector.broadcast %cst_185 : f32 to vector<8x384xf32>
    %466 = arith.addf %464, %465 : vector<8x384xf32>
    %467 = vector.extract_strided_slice %466 {offsets = [0, 0], sizes = [8, 128], strides = [1, 1]} : vector<8x384xf32> to vector<8x128xf32>
    %468 = vector.extract_strided_slice %466 {offsets = [0, 128], sizes = [8, 128], strides = [1, 1]} : vector<8x384xf32> to vector<8x128xf32>
    %469 = vector.extract_strided_slice %466 {offsets = [0, 256], sizes = [8, 128], strides = [1, 1]} : vector<8x384xf32> to vector<8x128xf32>
    %470 = vector.extract_strided_slice %458 {offsets = [0, 384], sizes = [8, 128], strides = [1, 1]} : vector<8x512xf32> to vector<8x128xf32>
    %471 = math.tanh %470 : vector<8x128xf32>
    %472 = arith.mulf %468, %415 : vector<8x128xf32>
    %473 = arith.mulf %467, %471 : vector<8x128xf32>
    %474 = arith.addf %472, %473 : vector<8x128xf32>
    %475 = math.tanh %474 : vector<8x128xf32>
    %476 = arith.mulf %469, %475 : vector<8x128xf32>
    %477 = arith.select %450, %476, %414 : vector<8x128xf32>
    %478 = arith.select %450, %474, %415 : vector<8x128xf32>
    %c1_i32_186 = arith.constant 1 : i32
    %479 = arith.subi %c7_i32_175, %c1_i32_186 : i32
    %c0_i32_187 = arith.constant 0 : i32
    %480 = arith.cmpi sge, %479, %c0_i32_187 : i32
    %c8_i32_188 = arith.constant 8 : i32
    %481 = arith.cmpi slt, %479, %c8_i32_188 : i32
    %482 = arith.andi %480, %481 : i1
    %483 = arith.truncf %414 : vector<8x128xf32> to vector<8x128xbf16>
    %c0_189 = arith.constant 0 : index
    %c0_190 = arith.constant 0 : index
    %484 = vector.load %arg4[%c0_189, %c0_190] : memref<128x512xbf16, #tpu.memory_space<vmem>>, vector<128x512xbf16>
    %cst_191 = arith.constant dense<0.000000e+00> : vector<8x512xf32>
    %485 = tpu.matmul %483, %484, %cst_191 {dimension_numbers = #tpu.dot_dimension_numbers<[1], [0], [0], [1], [0, 0, 1, 1], [], []>} : vector<8x128xbf16>, vector<128x512xbf16>, vector<8x512xf32> -> vector<8x512xf32>
    %c0_192 = arith.constant 0 : index
    %c0_193 = arith.constant 0 : index
    %486 = vector.load %arg6[%c0_192, %c0_193] : memref<1x512xf32, #tpu.memory_space<vmem>>, vector<1x512xf32>
    %487 = vector.broadcast %486 : vector<1x512xf32> to vector<8x512xf32>
    %488 = arith.addf %485, %487 : vector<8x512xf32>
    %489 = arith.truncf %448 : vector<8x128xf32> to vector<8x128xbf16>
    %c0_194 = arith.constant 0 : index
    %c0_195 = arith.constant 0 : index
    %490 = vector.load %arg5[%c0_194, %c0_195] : memref<128x512xbf16, #tpu.memory_space<vmem>>, vector<128x512xbf16>
    %cst_196 = arith.constant dense<0.000000e+00> : vector<8x512xf32>
    %491 = tpu.matmul %489, %490, %cst_196 {dimension_numbers = #tpu.dot_dimension_numbers<[1], [0], [0], [1], [0, 0, 1, 1], [], []>} : vector<8x128xbf16>, vector<128x512xbf16>, vector<8x512xf32> -> vector<8x512xf32>
    %492 = arith.addf %488, %491 : vector<8x512xf32>
    %493 = vector.extract_strided_slice %492 {offsets = [0, 0], sizes = [8, 384], strides = [1, 1]} : vector<8x512xf32> to vector<8x384xf32>
    %cst_197 = arith.constant 5.000000e-01 : f32
    %494 = vector.broadcast %cst_197 : f32 to vector<8x384xf32>
    %495 = arith.mulf %494, %493 : vector<8x384xf32>
    %496 = math.tanh %495 : vector<8x384xf32>
    %cst_198 = arith.constant 5.000000e-01 : f32
    %497 = vector.broadcast %cst_198 : f32 to vector<8x384xf32>
    %498 = arith.mulf %497, %496 : vector<8x384xf32>
    %cst_199 = arith.constant 5.000000e-01 : f32
    %499 = vector.broadcast %cst_199 : f32 to vector<8x384xf32>
    %500 = arith.addf %498, %499 : vector<8x384xf32>
    %501 = vector.extract_strided_slice %500 {offsets = [0, 0], sizes = [8, 128], strides = [1, 1]} : vector<8x384xf32> to vector<8x128xf32>
    %502 = vector.extract_strided_slice %500 {offsets = [0, 128], sizes = [8, 128], strides = [1, 1]} : vector<8x384xf32> to vector<8x128xf32>
    %503 = vector.extract_strided_slice %500 {offsets = [0, 256], sizes = [8, 128], strides = [1, 1]} : vector<8x384xf32> to vector<8x128xf32>
    %504 = vector.extract_strided_slice %492 {offsets = [0, 384], sizes = [8, 128], strides = [1, 1]} : vector<8x512xf32> to vector<8x128xf32>
    %505 = math.tanh %504 : vector<8x128xf32>
    %506 = arith.mulf %502, %449 : vector<8x128xf32>
    %507 = arith.mulf %501, %505 : vector<8x128xf32>
    %508 = arith.addf %506, %507 : vector<8x128xf32>
    %509 = math.tanh %508 : vector<8x128xf32>
    %510 = arith.mulf %503, %509 : vector<8x128xf32>
    %511 = arith.select %482, %510, %448 : vector<8x128xf32>
    %512 = arith.select %482, %508, %449 : vector<8x128xf32>
    %c8_i32_200 = arith.constant 8 : i32
    %c8_i32_201 = arith.constant 8 : i32
    %513 = arith.cmpi slt, %c8_i32_200, %c8_i32_201 : i32
    %c7_i32_202 = arith.constant 7 : i32
    %514 = arith.minsi %c8_i32_200, %c7_i32_202 : i32
    %515 = arith.index_cast %514 : i32 to index
    %c0_203 = arith.constant 0 : index
    %c0_204 = arith.constant 0 : index
    %516 = vector.load %arg10[%515, %c0_203, %c0_204] : memref<8x8x512xf32, #tpu.memory_space<vmem>>, vector<1x8x512xf32>
    %517 = vector.shape_cast %516 : vector<1x8x512xf32> to vector<8x512xf32>
    %518 = arith.truncf %477 : vector<8x128xf32> to vector<8x128xbf16>
    %c0_205 = arith.constant 0 : index
    %c0_206 = arith.constant 0 : index
    %519 = vector.load %arg2[%c0_205, %c0_206] : memref<128x512xbf16, #tpu.memory_space<vmem>>, vector<128x512xbf16>
    %cst_207 = arith.constant dense<0.000000e+00> : vector<8x512xf32>
    %520 = tpu.matmul %518, %519, %cst_207 {dimension_numbers = #tpu.dot_dimension_numbers<[1], [0], [0], [1], [0, 0, 1, 1], [], []>} : vector<8x128xbf16>, vector<128x512xbf16>, vector<8x512xf32> -> vector<8x512xf32>
    %521 = arith.addf %517, %520 : vector<8x512xf32>
    %522 = vector.extract_strided_slice %521 {offsets = [0, 0], sizes = [8, 384], strides = [1, 1]} : vector<8x512xf32> to vector<8x384xf32>
    %cst_208 = arith.constant 5.000000e-01 : f32
    %523 = vector.broadcast %cst_208 : f32 to vector<8x384xf32>
    %524 = arith.mulf %523, %522 : vector<8x384xf32>
    %525 = math.tanh %524 : vector<8x384xf32>
    %cst_209 = arith.constant 5.000000e-01 : f32
    %526 = vector.broadcast %cst_209 : f32 to vector<8x384xf32>
    %527 = arith.mulf %526, %525 : vector<8x384xf32>
    %cst_210 = arith.constant 5.000000e-01 : f32
    %528 = vector.broadcast %cst_210 : f32 to vector<8x384xf32>
    %529 = arith.addf %527, %528 : vector<8x384xf32>
    %530 = vector.extract_strided_slice %529 {offsets = [0, 0], sizes = [8, 128], strides = [1, 1]} : vector<8x384xf32> to vector<8x128xf32>
    %531 = vector.extract_strided_slice %529 {offsets = [0, 128], sizes = [8, 128], strides = [1, 1]} : vector<8x384xf32> to vector<8x128xf32>
    %532 = vector.extract_strided_slice %529 {offsets = [0, 256], sizes = [8, 128], strides = [1, 1]} : vector<8x384xf32> to vector<8x128xf32>
    %533 = vector.extract_strided_slice %521 {offsets = [0, 384], sizes = [8, 128], strides = [1, 1]} : vector<8x512xf32> to vector<8x128xf32>
    %534 = math.tanh %533 : vector<8x128xf32>
    %535 = arith.mulf %531, %478 : vector<8x128xf32>
    %536 = arith.mulf %530, %534 : vector<8x128xf32>
    %537 = arith.addf %535, %536 : vector<8x128xf32>
    %538 = math.tanh %537 : vector<8x128xf32>
    %539 = arith.mulf %532, %538 : vector<8x128xf32>
    %540 = arith.select %513, %539, %477 : vector<8x128xf32>
    %541 = arith.select %513, %537, %478 : vector<8x128xf32>
    %c1_i32_211 = arith.constant 1 : i32
    %542 = arith.subi %c8_i32_200, %c1_i32_211 : i32
    %c0_i32_212 = arith.constant 0 : i32
    %543 = arith.cmpi sge, %542, %c0_i32_212 : i32
    %c8_i32_213 = arith.constant 8 : i32
    %544 = arith.cmpi slt, %542, %c8_i32_213 : i32
    %545 = arith.andi %543, %544 : i1
    %546 = arith.truncf %477 : vector<8x128xf32> to vector<8x128xbf16>
    %c0_214 = arith.constant 0 : index
    %c0_215 = arith.constant 0 : index
    %547 = vector.load %arg4[%c0_214, %c0_215] : memref<128x512xbf16, #tpu.memory_space<vmem>>, vector<128x512xbf16>
    %cst_216 = arith.constant dense<0.000000e+00> : vector<8x512xf32>
    %548 = tpu.matmul %546, %547, %cst_216 {dimension_numbers = #tpu.dot_dimension_numbers<[1], [0], [0], [1], [0, 0, 1, 1], [], []>} : vector<8x128xbf16>, vector<128x512xbf16>, vector<8x512xf32> -> vector<8x512xf32>
    %c0_217 = arith.constant 0 : index
    %c0_218 = arith.constant 0 : index
    %549 = vector.load %arg6[%c0_217, %c0_218] : memref<1x512xf32, #tpu.memory_space<vmem>>, vector<1x512xf32>
    %550 = vector.broadcast %549 : vector<1x512xf32> to vector<8x512xf32>
    %551 = arith.addf %548, %550 : vector<8x512xf32>
    %552 = arith.truncf %511 : vector<8x128xf32> to vector<8x128xbf16>
    %c0_219 = arith.constant 0 : index
    %c0_220 = arith.constant 0 : index
    %553 = vector.load %arg5[%c0_219, %c0_220] : memref<128x512xbf16, #tpu.memory_space<vmem>>, vector<128x512xbf16>
    %cst_221 = arith.constant dense<0.000000e+00> : vector<8x512xf32>
    %554 = tpu.matmul %552, %553, %cst_221 {dimension_numbers = #tpu.dot_dimension_numbers<[1], [0], [0], [1], [0, 0, 1, 1], [], []>} : vector<8x128xbf16>, vector<128x512xbf16>, vector<8x512xf32> -> vector<8x512xf32>
    %555 = arith.addf %551, %554 : vector<8x512xf32>
    %556 = vector.extract_strided_slice %555 {offsets = [0, 0], sizes = [8, 384], strides = [1, 1]} : vector<8x512xf32> to vector<8x384xf32>
    %cst_222 = arith.constant 5.000000e-01 : f32
    %557 = vector.broadcast %cst_222 : f32 to vector<8x384xf32>
    %558 = arith.mulf %557, %556 : vector<8x384xf32>
    %559 = math.tanh %558 : vector<8x384xf32>
    %cst_223 = arith.constant 5.000000e-01 : f32
    %560 = vector.broadcast %cst_223 : f32 to vector<8x384xf32>
    %561 = arith.mulf %560, %559 : vector<8x384xf32>
    %cst_224 = arith.constant 5.000000e-01 : f32
    %562 = vector.broadcast %cst_224 : f32 to vector<8x384xf32>
    %563 = arith.addf %561, %562 : vector<8x384xf32>
    %564 = vector.extract_strided_slice %563 {offsets = [0, 0], sizes = [8, 128], strides = [1, 1]} : vector<8x384xf32> to vector<8x128xf32>
    %565 = vector.extract_strided_slice %563 {offsets = [0, 128], sizes = [8, 128], strides = [1, 1]} : vector<8x384xf32> to vector<8x128xf32>
    %566 = vector.extract_strided_slice %563 {offsets = [0, 256], sizes = [8, 128], strides = [1, 1]} : vector<8x384xf32> to vector<8x128xf32>
    %567 = vector.extract_strided_slice %555 {offsets = [0, 384], sizes = [8, 128], strides = [1, 1]} : vector<8x512xf32> to vector<8x128xf32>
    %568 = math.tanh %567 : vector<8x128xf32>
    %569 = arith.mulf %565, %512 : vector<8x128xf32>
    %570 = arith.mulf %564, %568 : vector<8x128xf32>
    %571 = arith.addf %569, %570 : vector<8x128xf32>
    %572 = math.tanh %571 : vector<8x128xf32>
    %573 = arith.mulf %566, %572 : vector<8x128xf32>
    %574 = arith.select %545, %573, %511 : vector<8x128xf32>
    %575 = arith.select %545, %571, %512 : vector<8x128xf32>
    %c9_i32 = arith.constant 9 : i32
    %576 = arith.truncf %574 : vector<8x128xf32> to vector<8x128xbf16>
    %c0_225 = arith.constant 0 : index
    %c0_226 = arith.constant 0 : index
    %577 = vector.load %arg7[%c0_225, %c0_226] : memref<128x128xbf16, #tpu.memory_space<vmem>>, vector<128x128xbf16>
    %cst_227 = arith.constant dense<0.000000e+00> : vector<8x128xf32>
    %578 = tpu.matmul %576, %577, %cst_227 {dimension_numbers = #tpu.dot_dimension_numbers<[1], [0], [0], [1], [0, 0, 1, 1], [], []>} : vector<8x128xbf16>, vector<128x128xbf16>, vector<8x128xf32> -> vector<8x128xf32>
    %c0_228 = arith.constant 0 : index
    %c0_229 = arith.constant 0 : index
    %579 = vector.load %arg8[%c0_228, %c0_229] : memref<1x128xf32, #tpu.memory_space<vmem>>, vector<1x128xf32>
    %580 = vector.broadcast %579 : vector<1x128xf32> to vector<8x128xf32>
    %581 = arith.addf %578, %580 : vector<8x128xf32>
    %c0_230 = arith.constant 0 : index
    %c0_231 = arith.constant 0 : index
    %582 = vector.load %arg9[%c0_230, %c0_231] : memref<8x128xf32, #tpu.memory_space<vmem>>, vector<8x128xf32>
    tpu.vector_store %arg9[%c0_230, %c0_231], %581 {strides = array<i32>} : memref<8x128xf32, #tpu.memory_space<vmem>>, vector<8x128xf32>,
    return
  }
}

</mosaic_0001>

<bundles_post_ra>
// kernel: can_lstm_forward.1
= control target key start
LH: loop header
LB: loop body
LE: loop exit
PB: predicated region body
PF: predicated region fallthrough
CT: control target
= control target key end

     0   :  { %14 = vsyncpa [#allocation4], 0  ;;  %s6252_s0 = inlined_call_operand.vmem [shape: bf16[64,128], index: 0, kind: input, shape index: {}]   ;;  %s6253_s1 = inlined_call_operand.hbm [shape: bf16[128,512], index: 1, kind: input, shape index: {}]   ;;  %s6254_s2 = inlined_call_operand.hbm [shape: bf16[128,512], index: 2, kind: input, shape index: {}]   ;;  %s6255_s3 = inlined_call_operand.vmem [shape: f32[1,512], index: 3, kind: input, shape index: {}]   ;;  %s6256_s4 = inlined_call_operand.hbm [shape: bf16[128,512], index: 4, kind: input, shape index: {}]   ;;  %s6257_s5 = inlined_call_operand.hbm [shape: bf16[128,512], index: 5, kind: input, shape index: {}]   ;;  %s6258_s6 = inlined_call_operand.vmem [shape: f32[1,512], index: 6, kind: input, shape index: {}]   ;;  %s6259_s7 = inlined_call_operand.vmem [shape: bf16[128,128], index: 7, kind: input, shape index: {}]   ;;  %s6260_s8 = inlined_call_operand.vmem [shape: f32[1,128], index: 8, kind: input, shape index: {}]   ;;  %s6261_s9 = inlined_call_operand.vmem [shape: f32[8,128], index: 9, kind: output, shape index: {}]  }
   0x1   :  { %15 = vsyncpa [#allocation6], 0 }
   0x2   :  { %16 = vsyncpa [#allocation9], 0  ;;  %s4425_s30 = smov [#allocation5]   ;;  %s4426_s11 = smov [#allocation3]  }
   0x3   :  { %s36_s10 = sshll.u32 %s4425_s30, 4  ;;  %s24_s12 = sshll.u32 %s4426_s11, 4  ;;  %s37_s10 = int_to_ptr.vmem [resolvable:$true] %s36_s10  ;;  %s25_s12 = int_to_ptr.vmem [resolvable:$true] %s24_s12 }
   0x4   :  { %s4347_s13 = scalar_lea.vmem %s37_s10, 4096  ;;  %p4352_p1 = scmp.lt.s32.totalorder %s37_s10, %s37_s10 }
   0x5   :  { %p4348_p0 = scmp.ne.s32.totalorder %s37_s10, %s4347_s13  ;;  %p4353_p2 = scmp.lt.s32.totalorder %s4347_s13, %s4347_s13 }
   0x7   :  { %p4354_p3 = por %p4353_p2, %p4352_p1 }
   0x9   :  { %p4355_p4 = pnand %p4354_p3, %p4348_p0 }
   0xb   :  { %4358 = shalt.err (!%p4355_p4)
}
   0xc   :  { %s4427_s14 = smov 256   ;;  %s4428_s15 = smov 16  }
   0xd   :  { %42 = dma.hbm_to_vmem [thread:$0]  %s6254_s2, 4096, %s37_s10, [#allocation6], %s4427_s14, %s4427_s14, %s4428_s15  }
   0xe   :  { %s4367_s18 = scalar_lea.vmem %s25_s12, 4096  ;;  %p4372_p6 = scmp.lt.s32.totalorder %s25_s12, %s25_s12 }
   0xf   :  { %p4368_p5 = scmp.ne.s32.totalorder %s25_s12, %s4367_s18  ;;  %p4373_p7 = scmp.lt.s32.totalorder %s4367_s18, %s4367_s18 }
  0x11   :  { %p4374_p8 = por %p4373_p7, %p4372_p6 }
  0x13   :  { %p4375_p9 = pnand %p4374_p8, %p4368_p5 }
  0x15   :  { %4378 = shalt.err (!%p4375_p9)
}
  0x16   :  { %30 = dma.hbm_to_vmem [thread:$0]  %s6253_s1, 4096, %s25_s12, [#allocation4], %s4427_s14, %s4427_s14, %s4428_s15  }
  0x17   :  { %s4429_s21 = smov [#allocation7]   ;;  %s4430_s23 = smov [#allocation8]  }
  0x18   :  { %s50_s22 = sshll.u32 %s4429_s21, 4  ;;  %s62_s24 = sshll.u32 %s4430_s23, 4  ;;  %s51_s22 = int_to_ptr.vmem [resolvable:$true] %s50_s22  ;;  %s63_s24 = int_to_ptr.vmem [resolvable:$true] %s62_s24 }
  0x19   :  { %s4387_s2 = scalar_lea.vmem %s51_s22, 4096  ;;  %p4392_p11 = scmp.lt.s32.totalorder %s51_s22, %s51_s22 }
  0x1a   :  { %p4388_p10 = scmp.ne.s32.totalorder %s51_s22, %s4387_s2  ;;  %p4393_p12 = scmp.lt.s32.totalorder %s4387_s2, %s4387_s2 }
  0x1c   :  { %p4394_p13 = por %p4393_p12, %p4392_p11 }
  0x1e   :  { %p4395_p0 = pnand %p4394_p13, %p4388_p10 }
  0x20   :  { %4398 = shalt.err (!%p4395_p0)
}
  0x21   :  { %56 = dma.hbm_to_vmem [thread:$0]  %s6256_s4, 4096, %s51_s22, [#allocation6], %s4427_s14, %s4427_s14, %s4428_s15  }
  0x22   :  { %s4407_s1 = scalar_lea.vmem %s63_s24, 4096  ;;  %p4412_p2 = scmp.lt.s32.totalorder %s63_s24, %s63_s24 }
  0x23   :  { %p4408_p1 = scmp.ne.s32.totalorder %s63_s24, %s4407_s1  ;;  %p4413_p3 = scmp.lt.s32.totalorder %s4407_s1, %s4407_s1 }
  0x25   :  { %p4414_p4 = por %p4413_p3, %p4412_p2 }
  0x27   :  { %p4415_p5 = pnand %p4414_p4, %p4408_p1 }
  0x29   :  { %4418 = shalt.err (!%p4415_p5)
}
  0x2a   :  { %68 = dma.hbm_to_vmem [thread:$0]  %s6257_s5, 4096, %s63_s24, [#allocation9], %s4427_s14, %s4427_s14, %s4428_s15  }
  0x2b   :  { %4419 = dma.done.wait [#allocation4], 4096  }
  0x2c   :  { %4420 = vsyncadd [#allocation4], 4294963200 }
  0x2d   :  { %4421 = dma.done.wait [#allocation6], 8192  }
  0x2e   :  { %4422 = vsyncadd [#allocation6], 4294959104 }
  0x2f   :  { %4423 = dma.done.wait [#allocation9], 4096  }
  0x30   :  { %4424 = vsyncadd [#allocation9], 4294963200  ;;  %v6266_v0 = vmov 0   ;;  %v3783_v1 = vld [vmem:[#allocation3 + $0xe4] ss:$16 sps:$4 sm:$0xff]   ;;  %v3844_v44 = vld [vmem:[%s6252_s0 + $0x8] sm:$0xff]  }
  0x31   :  { %366 = vmatprep.mubr.bf16.mxu0 %v6266_v0  ;;  %439 = vmatprep.mubr.bf16.mxu1 %v6266_v0  ;;  %v3785_v2 = vld [vmem:[#allocation3 + $0xec] ss:$16 sps:$4 sm:$0xff]   ;;  %v3787_v3 = vld [vmem:[#allocation3 + $0xe0] ss:$16 sps:$4 sm:$0xff]   ;;  %v3788_v4 = vld [vmem:[#allocation3 + $0xe8] ss:$16 sps:$4 sm:$0xff]  }
  0x32   :  { %334 = vmatprep.subr.bf16.mxu0 %v3783_v1  ;;  %407 = vmatprep.subr.bf16.mxu1 %v3785_v2  ;;  %v3789_v5 = vld [vmem:[#allocation3 + $0xc4] ss:$16 sps:$4 sm:$0xff]   ;;  %v3791_v6 = vld [vmem:[#allocation3 + $0xcc] ss:$16 sps:$4 sm:$0xff]   ;;  %v3793_v7 = vld [vmem:[#allocation3 + $0xc0] ss:$16 sps:$4 sm:$0xff]  }
  0x33   :  { %335 = vmatpush1.bf16.msra.mxu0 %v3787_v3  ;;  %408 = vmatpush1.bf16.msra.mxu1 %v3788_v4  ;;  %v3794_v8 = vld [vmem:[#allocation3 + $0xc8] ss:$16 sps:$4 sm:$0xff]   ;;  %v3795_v9 = vld [vmem:[#allocation3 + $0xa4] ss:$16 sps:$4 sm:$0xff]   ;;  %v3797_v10 = vld [vmem:[#allocation3 + $0xac] ss:$16 sps:$4 sm:$0xff]  }
  0x34   :  { %336 = vmatprep.subr.bf16.mxu0 %v3789_v5  ;;  %409 = vmatprep.subr.bf16.mxu1 %v3791_v6  ;;  %v3799_v11 = vld [vmem:[#allocation3 + $0xa0] ss:$16 sps:$4 sm:$0xff]   ;;  %v3800_v12 = vld [vmem:[#allocation3 + $0xa8] ss:$16 sps:$4 sm:$0xff]   ;;  %v3801_v13 = vld [vmem:[#allocation3 + $0x84] ss:$16 sps:$4 sm:$0xff]  }
  0x35   :  { %v3803_v14 = vld [vmem:[#allocation3 + $0x8c] ss:$16 sps:$4 sm:$0xff]   ;;  %v3805_v15 = vld [vmem:[#allocation3 + $0x80] ss:$16 sps:$4 sm:$0xff]   ;;  %v3806_v16 = vld [vmem:[#allocation3 + $0x88] ss:$16 sps:$4 sm:$0xff]  }
  0x36   :  { %v3807_v17 = vld [vmem:[#allocation3 + $0x64] ss:$16 sps:$4 sm:$0xff]   ;;  %v3809_v18 = vld [vmem:[#allocation3 + $0x6c] ss:$16 sps:$4 sm:$0xff]   ;;  %v3811_v19 = vld [vmem:[#allocation3 + $0x60] ss:$16 sps:$4 sm:$0xff]  }
  0x37   :  { %337 = vmatpush1.bf16.msra.mxu0 %v3793_v7  ;;  %410 = vmatpush1.bf16.msra.mxu1 %v3794_v8  ;;  %v3812_v20 = vld [vmem:[#allocation3 + $0x68] ss:$16 sps:$4 sm:$0xff]   ;;  %v3813_v21 = vld [vmem:[#allocation3 + $0x44] ss:$16 sps:$4 sm:$0xff]   ;;  %v3815_v22 = vld [vmem:[#allocation3 + $0x4c] ss:$16 sps:$4 sm:$0xff]   ;;  %v130_v8 = vlaneseq }
  0x38   :  { %338 = vmatprep.subr.bf16.mxu0 %v3795_v9  ;;  %411 = vmatprep.subr.bf16.mxu1 %v3797_v10  ;;  %v3817_v23 = vld [vmem:[#allocation3 + $0x40] ss:$16 sps:$4 sm:$0xff]   ;;  %v3818_v24 = vld [vmem:[#allocation3 + $0x48] ss:$16 sps:$4 sm:$0xff]   ;;  %v3819_v25 = vld [vmem:[#allocation3 + $0x24] ss:$16 sps:$4 sm:$0xff]  }
  0x39   :  { %v3821_v26 = vld [vmem:[#allocation3 + $0x2c] ss:$16 sps:$4 sm:$0xff]   ;;  %v3823_v27 = vld [vmem:[#allocation3 + $0x20] ss:$16 sps:$4 sm:$0xff]   ;;  %v3824_v28 = vld [vmem:[#allocation3 + $0x28] ss:$16 sps:$4 sm:$0xff]  }
  0x3a   :  { %v3825_v29 = vld [vmem:[#allocation3 + $0x4] ss:$16 sps:$4 sm:$0xff]   ;;  %v3827_v30 = vld [vmem:[#allocation3 + $0xc] ss:$16 sps:$4 sm:$0xff]   ;;  %v3829_v31 = vld [vmem:[#allocation3] ss:$16 sps:$4 sm:$0xff]  }
  0x3b   :  { %339 = vmatpush1.bf16.msra.mxu0 %v3799_v11  ;;  %412 = vmatpush1.bf16.msra.mxu1 %v3800_v12  ;;  %v3830_v32 = vld [vmem:[#allocation3 + $0x8] ss:$16 sps:$4 sm:$0xff]   ;;  %v4510_v33 = vld [vmem:[#allocation5 + $0xe4] ss:$16 sps:$4 sm:$0xff]   ;;  %v4512_v34 = vld [vmem:[#allocation5 + $0xec] ss:$16 sps:$4 sm:$0xff]  }
  0x3c   :  { %340 = vmatprep.subr.bf16.mxu0 %v3801_v13  ;;  %413 = vmatprep.subr.bf16.mxu1 %v3803_v14  ;;  %v3831_v35 = vld [vmem:[%s6252_s0] sm:$0xff]   ;;  %v4519_v37 = vld [vmem:[#allocation5 + $0xe8] ss:$16 sps:$4 sm:$0xff]   ;;  %v4525_v39 = vld [vmem:[#allocation5 + $0xcc] ss:$16 sps:$4 sm:$0xff]   ;;  %v4668_v9 = vshrl.u32 %v130_v8, 7 }
  0x3d   :  { %v4517_v36 = vld [vmem:[#allocation5 + $0xe0] ss:$16 sps:$4 sm:$0xff]   ;;  %v4523_v38 = vld [vmem:[#allocation5 + $0xc4] ss:$16 sps:$4 sm:$0xff]   ;;  %v4531_v41 = vld [vmem:[#allocation5 + $0xc8] ss:$16 sps:$4 sm:$0xff]  }
  0x3e   :  { %v4527_v40 = vld [vmem:[#allocation5 + $0xc0] ss:$16 sps:$4 sm:$0xff]   ;;  %v4535_v42 = vld [vmem:[#allocation5 + $0xa4] ss:$16 sps:$4 sm:$0xff]   ;;  %v4537_v43 = vld [vmem:[#allocation5 + $0xac] ss:$16 sps:$4 sm:$0xff]  }
  0x3f   :  { %341 = vmatpush1.bf16.msra.mxu0 %v3805_v15  ;;  %414 = vmatpush1.bf16.msra.mxu1 %v3806_v16  ;;  %v4544_v45 = vld [vmem:[#allocation5 + $0xa0] ss:$16 sps:$4 sm:$0xff]   ;;  %v4546_v46 = vld [vmem:[#allocation5 + $0xa8] ss:$16 sps:$4 sm:$0xff]   ;;  %v4550_v47 = vld [vmem:[#allocation5 + $0x84] ss:$16 sps:$4 sm:$0xff]  }
  0x40   :  { %342 = vmatprep.subr.bf16.mxu0 %v3807_v17  ;;  %415 = vmatprep.subr.bf16.mxu1 %v3809_v18  ;;  %v4554_v48 = vld [vmem:[#allocation5 + $0x8c] ss:$16 sps:$4 sm:$0xff]   ;;  %v4556_v49 = vld [vmem:[#allocation5 + $0x80] ss:$16 sps:$4 sm:$0xff]   ;;  %v4558_v50 = vld [vmem:[#allocation5 + $0x88] ss:$16 sps:$4 sm:$0xff]  }
  0x41   :  { %v4562_v51 = vld [vmem:[#allocation5 + $0x64] ss:$16 sps:$4 sm:$0xff]   ;;  %v4566_v52 = vld [vmem:[#allocation5 + $0x6c] ss:$16 sps:$4 sm:$0xff]   ;;  %v4573_v54 = vld [vmem:[#allocation5 + $0x60] ss:$16 sps:$4 sm:$0xff]  }
  0x42   :  { %v3857_v53 = vld [vmem:[%s6252_s0 + $0x10] sm:$0xff]   ;;  %v4575_v55 = vld [vmem:[#allocation5 + $0x68] ss:$16 sps:$4 sm:$0xff]   ;;  %v4579_v57 = vld [vmem:[#allocation5 + $0x4c] ss:$16 sps:$4 sm:$0xff]   ;;  %v6262_v10 = vsub.s32 2, %v4668_v9 }
  0x43   :  { %343 = vmatpush1.bf16.msra.mxu0 %v3811_v19  ;;  %416 = vmatpush1.bf16.msra.mxu1 %v3812_v20  ;;  %v4577_v56 = vld [vmem:[#allocation5 + $0x44] ss:$16 sps:$4 sm:$0xff]   ;;  %v4585_v58 = vld [vmem:[#allocation5 + $0x40] ss:$16 sps:$4 sm:$0xff]   ;;  %v4587_v59 = vld [vmem:[#allocation5 + $0x48] ss:$16 sps:$4 sm:$0xff]  }
  0x44   :  { %344 = vmatprep.subr.bf16.mxu0 %v3813_v21  ;;  %417 = vmatprep.subr.bf16.mxu1 %v3815_v22  ;;  %v4589_v60 = vld [vmem:[#allocation5 + $0x24] ss:$16 sps:$4 sm:$0xff]   ;;  %v4591_v61 = vld [vmem:[#allocation5 + $0x2c] ss:$16 sps:$4 sm:$0xff]   ;;  %v4602_v63 = vld [vmem:[#allocation5 + $0x20] ss:$16 sps:$4 sm:$0xff]  }
  0x45   :  { %v3870_v62 = vld [vmem:[%s6252_s0 + $0x18] sm:$0xff]   ;;  %v4606_v2 = vld [vmem:[#allocation5 + $0x4] ss:$16 sps:$4 sm:$0xff]   ;;  %v4614_v4 = vld [vmem:[#allocation5] ss:$16 sps:$4 sm:$0xff]   ;;  %v6265_v11 = vsub.s32 0, %v4668_v9 }
  0x46   :  { %v4604_v1 = vld [vmem:[#allocation5 + $0x28] ss:$16 sps:$4 sm:$0xff]   ;;  %v4608_v3 = vld [vmem:[#allocation5 + $0xc] ss:$16 sps:$4 sm:$0xff]   ;;  %v4662_v6 = vld [vmem:[#allocation7 + $0xe4] ss:$16 sps:$4 sm:$0xff]  }
  0x47   :  { %345 = vmatpush1.bf16.msra.mxu0 %v3817_v23  ;;  %418 = vmatpush1.bf16.msra.mxu1 %v3818_v24  ;;  %v4616_v5 = vld [vmem:[#allocation5 + $0x8] ss:$16 sps:$4 sm:$0xff]   ;;  %v4664_v7 = vld [vmem:[#allocation7 + $0xec] ss:$16 sps:$4 sm:$0xff]   ;;  %v6263_v12 = vsub.s32 3, %v4668_v9  ;;  %v6264_v23 = vsub.s32 1, %v4668_v9 }
  0x48   :  { %346 = vmatprep.subr.bf16.mxu0 %v3819_v25  ;;  %419 = vmatprep.subr.bf16.mxu1 %v3821_v26  ;;  %v128_v13 = vld [vmem:[%s6255_s3] sm:$0xf]  ;;  %vm4433_vm0 = vmmov 0  }
  0x49   :  { %v4680_v16 = vrot.slane %v128_v13, %v6262_v10  ;;  %v133_v19 = vrot.slane %v128_v13, %v6265_v11  ;;  %v4690_v20 = vrot.slane %v128_v13, %v6263_v12 }
  0x4b   :  { %347 = vmatpush1.bf16.msra.mxu0 %v3823_v27  ;;  %420 = vmatpush1.bf16.msra.mxu1 %v3824_v28 }
  0x4c   :  { %348 = vmatprep.subr.bf16.mxu0 %v3825_v29  ;;  %421 = vmatprep.subr.bf16.mxu1 %v3827_v30 }
  0x4f   :  { %349 = vmatpush1.bf16.msra.mxu0 %v3829_v31  ;;  %422 = vmatpush1.bf16.msra.mxu1 %v3830_v32  ;;  %v4705_v31 = vrot.slane %v128_v13, %v6264_v23 }
  0x50   :  { %708 = vmatprep.subr.bf16.mxu0 %v4510_v33  ;;  %749 = vmatprep.subr.bf16.mxu1 %v4512_v34 }
  0x52   :  { %367 = vmatmul.mubr.bf16.vlgmr.msra.gmra.mxu0 %v3831_v35  ;;  %440 = vmatmul.mubr.bf16.vlgmr.msra.gmra.mxu1 %v3831_v35 }
  0x53   :  { %709 = vmatpush1.bf16.msra.mxu0 %v4517_v36  ;;  %750 = vmatpush1.bf16.msra.mxu1 %v4519_v37 }
  0x54   :  { %710 = vmatprep.subr.bf16.mxu0 %v4523_v38  ;;  %751 = vmatprep.subr.bf16.mxu1 %v4525_v39 }
  0x55   :  { %376 = vmatprep.mubr.bf16.mxu0 %v6266_v0  ;;  %449 = vmatprep.mubr.bf16.mxu1 %v6266_v0 }
  0x57   :  { %711 = vmatpush1.bf16.msra.mxu0 %v4527_v40  ;;  %752 = vmatpush1.bf16.msra.mxu1 %v4531_v41 }
  0x58   :  { %712 = vmatprep.subr.bf16.mxu0 %v4535_v42  ;;  %753 = vmatprep.subr.bf16.mxu1 %v4537_v43 }
  0x5a   :  { %377 = vmatmul.mubr.bf16.gmra.mxu0 %v3844_v44  ;;  %450 = vmatmul.mubr.bf16.gmra.mxu1 %v3844_v44 }
  0x5b   :  { %713 = vmatpush1.bf16.msra.mxu0 %v4544_v45  ;;  %754 = vmatpush1.bf16.msra.mxu1 %v4546_v46 }
  0x5c   :  { %714 = vmatprep.subr.bf16.mxu0 %v4550_v47  ;;  %755 = vmatprep.subr.bf16.mxu1 %v4554_v48 }
  0x5d   :  { %386 = vmatprep.mubr.bf16.mxu0 %v6266_v0  ;;  %459 = vmatprep.mubr.bf16.mxu1 %v6266_v0 }
  0x5f   :  { %715 = vmatpush1.bf16.msra.mxu0 %v4556_v49  ;;  %756 = vmatpush1.bf16.msra.mxu1 %v4558_v50 }
  0x60   :  { %716 = vmatprep.subr.bf16.mxu0 %v4562_v51  ;;  %757 = vmatprep.subr.bf16.mxu1 %v4566_v52 }
  0x62   :  { %387 = vmatmul.mubr.bf16.gmra.mxu0 %v3857_v53  ;;  %460 = vmatmul.mubr.bf16.gmra.mxu1 %v3857_v53 }
  0x63   :  { %717 = vmatpush1.bf16.msra.mxu0 %v4573_v54  ;;  %758 = vmatpush1.bf16.msra.mxu1 %v4575_v55 }
  0x64   :  { %718 = vmatprep.subr.bf16.mxu0 %v4577_v56  ;;  %759 = vmatprep.subr.bf16.mxu1 %v4579_v57 }
  0x65   :  { %396 = vmatprep.mubr.bf16.mxu0 %v6266_v0  ;;  %469 = vmatprep.mubr.bf16.mxu1 %v6266_v0 }
  0x67   :  { %719 = vmatpush1.bf16.msra.mxu0 %v4585_v58  ;;  %760 = vmatpush1.bf16.msra.mxu1 %v4587_v59 }
  0x68   :  { %720 = vmatprep.subr.bf16.mxu0 %v4589_v60  ;;  %761 = vmatprep.subr.bf16.mxu1 %v4591_v61 }
  0x6a   :  { %397 = vmatmul.mubr.bf16.gmra.mxu0 %v3870_v62  ;;  %470 = vmatmul.mubr.bf16.gmra.mxu1 %v3870_v62 }
  0x6b   :  { %721 = vmatpush1.bf16.msra.mxu0 %v4602_v63  ;;  %762 = vmatpush1.bf16.msra.mxu1 %v4604_v1 }
  0x6c   :  { %722 = vmatprep.subr.bf16.mxu0 %v4606_v2  ;;  %763 = vmatprep.subr.bf16.mxu1 %v4608_v3 }
  0x6d   :  { %740 = vmatprep.mubr.bf16.mxu0 %v6266_v0  ;;  %781 = vmatprep.mubr.bf16.mxu1 %v6266_v0 }
  0x6f   :  { %723 = vmatpush1.bf16.msra.mxu0 %v4614_v4  ;;  %764 = vmatpush1.bf16.msra.mxu1 %v4616_v5 }
  0x70   :  { %818 = vmatprep.subr.bf16.mxu0 %v4510_v33  ;;  %859 = vmatprep.subr.bf16.mxu1 %v4512_v34 }
  0x72   :  { %741 = vmatmul.mubr.bf16.vlgmr.msra.gmra.mxu0 %v6266_v0  ;;  %782 = vmatmul.mubr.bf16.vlgmr.msra.gmra.mxu1 %v6266_v0 }
  0x73   :  { %819 = vmatpush1.bf16.msra.mxu0 %v4517_v36  ;;  %860 = vmatpush1.bf16.msra.mxu1 %v4519_v37 }
  0x74   :  { %820 = vmatprep.subr.bf16.mxu0 %v4523_v38  ;;  %861 = vmatprep.subr.bf16.mxu1 %v4525_v39 }
  0x75   :  { %850 = vmatprep.mubr.bf16.mxu0 %v6266_v0  ;;  %891 = vmatprep.mubr.bf16.mxu1 %v6266_v0 }
  0x77   :  { %821 = vmatpush1.bf16.msra.mxu0 %v4527_v40  ;;  %862 = vmatpush1.bf16.msra.mxu1 %v4531_v41 }
  0x78   :  { %822 = vmatprep.subr.bf16.mxu0 %v4535_v42  ;;  %863 = vmatprep.subr.bf16.mxu1 %v4537_v43 }
  0x7b   :  { %823 = vmatpush1.bf16.msra.mxu0 %v4544_v45  ;;  %864 = vmatpush1.bf16.msra.mxu1 %v4546_v46 }
  0x7c   :  { %824 = vmatprep.subr.bf16.mxu0 %v4550_v47  ;;  %865 = vmatprep.subr.bf16.mxu1 %v4554_v48 }
  0x7f   :  { %825 = vmatpush1.bf16.msra.mxu0 %v4556_v49  ;;  %866 = vmatpush1.bf16.msra.mxu1 %v4558_v50 }
  0x80   :  { %826 = vmatprep.subr.bf16.mxu0 %v4562_v51  ;;  %867 = vmatprep.subr.bf16.mxu1 %v4566_v52 }
  0x83   :  { %827 = vmatpush1.bf16.msra.mxu0 %v4573_v54  ;;  %868 = vmatpush1.bf16.msra.mxu1 %v4575_v55 }
  0x84   :  { %828 = vmatprep.subr.bf16.mxu0 %v4577_v56  ;;  %869 = vmatprep.subr.bf16.mxu1 %v4579_v57 }
  0x87   :  { %829 = vmatpush1.bf16.msra.mxu0 %v4585_v58  ;;  %870 = vmatpush1.bf16.msra.mxu1 %v4587_v59 }
  0x88   :  { %830 = vmatprep.subr.bf16.mxu0 %v4589_v60  ;;  %871 = vmatprep.subr.bf16.mxu1 %v4591_v61 }
  0x8b   :  { %831 = vmatpush1.bf16.msra.mxu0 %v4602_v63  ;;  %872 = vmatpush1.bf16.msra.mxu1 %v4604_v1 }
  0x8c   :  { %832 = vmatprep.subr.bf16.mxu0 %v4606_v2  ;;  %873 = vmatprep.subr.bf16.mxu1 %v4608_v3 }
  0x8f   :  { %833 = vmatpush1.bf16.msra.mxu0 %v4614_v4  ;;  %874 = vmatpush1.bf16.msra.mxu1 %v4616_v5 }
  0x90   :  { %1136 = vmatprep.subr.bf16.mxu0 %v4662_v6  ;;  %1177 = vmatprep.subr.bf16.mxu1 %v4664_v7 }
 0x112   :  { %v368_v14 = vpop.f32.mrf.mxu0  ;;  %v4676_v15 = vpop.f32.mrf.mxu1 }
 0x114   :  { %v4682_v17 = vpop.f32.mrf.mxu0  ;;  %v4684_v18 = vpop.f32.mrf.mxu1 }
 0x116   :  { %v372_v21 = vpop.f32.mrf.mxu0  ;;  %v445_v22 = vpop.f32.mrf.mxu1 }
 0x117   :  { %v4693_v24 = vadd.f32 %v372_v21, %v133_v19  ;;  %v4696_v25 = vadd.f32 %v445_v22, %v4680_v16 }
 0x118   :  { %v4698_v26 = vpop.f32.mrf.mxu0  ;;  %v447_v27 = vpop.f32.mrf.mxu1 }
 0x119   :  { %v4701_v28 = vadd.f32 %v447_v27, %v4690_v20 }
 0x11a   :  { %v378_v29 = vpop.f32.mrf.mxu0  ;;  %v451_v30 = vpop.f32.mrf.mxu1 }
 0x11b   :  { %v4707_v32 = vadd.f32 %v378_v29, %v133_v19  ;;  %v4710_v35 = vadd.f32 %v451_v30, %v4680_v16 }
 0x11c   :  { %v380_v44 = vpop.f32.mrf.mxu0  ;;  %v453_v53 = vpop.f32.mrf.mxu1 }
 0x11d   :  { %6562 = vst [vmem:[#allocation13_spill] sm:$0xff] %v4707_v32  ;;  %6563 = vst [vmem:[#allocation14_spill] sm:$0xff] %v4710_v35  ;;  %v4713_v62 = vadd.f32 %v380_v44, %v4705_v31  ;;  %v4716_v8 = vadd.f32 %v453_v53, %v4690_v20  ;;  %v4846_v32 = vld [vmem:[#allocation7 + $0x40] ss:$16 sps:$4 sm:$0xff]  }
 0x11e   :  { %v382_v21 = vpop.f32.mrf.mxu0  ;;  %v455_v22 = vpop.f32.mrf.mxu1  ;;  %6595 = vst [vmem:[#allocation45_spill] sm:$0xff] %v4846_v32 }
 0x11f   :  { %6564 = vst [vmem:[#allocation15_spill] sm:$0xff] %v4713_v62  ;;  %6565 = vst [vmem:[#allocation16_spill] sm:$0xff] %v4716_v8  ;;  %v4718_v27 = vadd.f32 %v382_v21, %v133_v19  ;;  %v4721_v13 = vadd.f32 %v455_v22, %v4680_v16  ;;  %v4842_v62 = vld [vmem:[#allocation7 + $0x4c] ss:$16 sps:$4 sm:$0xff]  }
 0x120   :  { %v384_v29 = vpop.f32.mrf.mxu0  ;;  %v457_v10 = vpop.f32.mrf.mxu1  ;;  %6594 = vst [vmem:[#allocation44_spill] sm:$0xff] %v4842_v62 }
 0x121   :  { %6566 = vst [vmem:[#allocation17_spill] sm:$0xff] %v4718_v27  ;;  %6567 = vst [vmem:[#allocation18_spill] sm:$0xff] %v4721_v13  ;;  %v4724_v30 = vadd.f32 %v384_v29, %v4705_v31  ;;  %v4727_v12 = vadd.f32 %v457_v10, %v4690_v20 }
 0x122   :  { %v388_v44 = vpop.f32.mrf.mxu0  ;;  %v461_v23 = vpop.f32.mrf.mxu1 }
 0x123   :  { %6568 = vst [vmem:[#allocation19_spill] sm:$0xff] %v4724_v30  ;;  %6569 = vst [vmem:[#allocation20_spill] sm:$0xff] %v4727_v12  ;;  %v4729_v11 = vadd.f32 %v388_v44, %v133_v19  ;;  %v4732_v53 = vadd.f32 %v461_v23, %v4680_v16 }
 0x124   :  { %v390_v21 = vpop.f32.mrf.mxu0  ;;  %v463_v0 = vpop.f32.mrf.mxu1 }
 0x125   :  { %6570 = vst [vmem:[#allocation21_spill] sm:$0xff] %v4729_v11  ;;  %6571 = vst [vmem:[#allocation22_spill] sm:$0xff] %v4732_v53  ;;  %v4735_v22 = vadd.f32 %v390_v21, %v4705_v31  ;;  %v4738_v13 = vadd.f32 %v463_v0, %v4690_v20 }
 0x126   :  { %v392_v29 = vpop.f32.mrf.mxu0  ;;  %v465_v30 = vpop.f32.mrf.mxu1 }
 0x127   :  { %6572 = vst [vmem:[#allocation23_spill] sm:$0xff] %v4735_v22  ;;  %6573 = vst [vmem:[#allocation24_spill] sm:$0xff] %v4738_v13  ;;  %v4740_v27 = vadd.f32 %v392_v29, %v133_v19  ;;  %v4743_v10 = vadd.f32 %v465_v30, %v4680_v16 }
 0x128   :  { %v394_v44 = vpop.f32.mrf.mxu0  ;;  %v467_v11 = vpop.f32.mrf.mxu1 }
 0x129   :  { %6574 = vst [vmem:[#allocation25_spill] sm:$0xff] %v4740_v27  ;;  %6575 = vst [vmem:[#allocation26_spill] sm:$0xff] %v4743_v10  ;;  %v4746_v23 = vadd.f32 %v394_v44, %v4705_v31  ;;  %v4749_v53 = vadd.f32 %v467_v11, %v4690_v20 }
 0x12a   :  { %v398_v21 = vpop.f32.mrf.mxu0  ;;  %v471_v22 = vpop.f32.mrf.mxu1 }
 0x12b   :  { %6576 = vst [vmem:[#allocation27_spill] sm:$0xff] %v4746_v23  ;;  %6577 = vst [vmem:[#allocation28_spill] sm:$0xff] %v4749_v53  ;;  %v4751_v12 = vadd.f32 %v398_v21, %v133_v19  ;;  %v4754_v0 = vadd.f32 %v471_v22, %v4680_v16  ;;  %v369_v53 = vadd.f32 %v368_v14, %v133_v19 }
 0x12c   :  { %v400_v29 = vpop.f32.mrf.mxu0  ;;  %v473_v27 = vpop.f32.mrf.mxu1  ;;  %v444_v14 = vadd.f32 %v4684_v18, %v4690_v20 }
 0x12d   :  { %6578 = vst [vmem:[#allocation29_spill] sm:$0xff] %v4751_v12  ;;  %6579 = vst [vmem:[#allocation30_spill] sm:$0xff] %v4754_v0  ;;  %v4757_v30 = vadd.f32 %v400_v29, %v4705_v31  ;;  %v4760_v10 = vadd.f32 %v473_v27, %v4690_v20  ;;  %v371_v27 = vadd.f32 %v4682_v17, %v4705_v31 }
 0x12e   :  { %v402_v44 = vpop.f32.mrf.mxu0  ;;  %v475_v23 = vpop.f32.mrf.mxu1 }
 0x12f   :  { %6580 = vst [vmem:[#allocation31_spill] sm:$0xff] %v4757_v30  ;;  %6581 = vst [vmem:[#allocation32_spill] sm:$0xff] %v4760_v10  ;;  %v4762_v13 = vadd.f32 %v402_v44, %v133_v19  ;;  %v4765_v11 = vadd.f32 %v475_v23, %v4680_v16 }
 0x130   :  { %v404_v21 = vpop.f32.mrf.mxu0  ;;  %v477_v12 = vpop.f32.mrf.mxu1 }
 0x131   :  { %6582 = vst [vmem:[#allocation33_spill] sm:$0xff] %v4762_v13  ;;  %6583 = vst [vmem:[#allocation34_spill] sm:$0xff] %v4765_v11  ;;  %v4768_v22 = vadd.f32 %v404_v21, %v4705_v31  ;;  %v4771_v0 = vadd.f32 %v477_v12, %v4690_v20 }
 0x132   :  { %v742_v29 = vpop.f32.mrf.mxu0  ;;  %v783_v30 = vpop.f32.mrf.mxu1 }
 0x133   :  { %6584 = vst [vmem:[#allocation35_spill] sm:$0xff] %v4768_v22  ;;  %6585 = vst [vmem:[#allocation36_spill] sm:$0xff] %v4771_v0  ;;  %v790_v10 = vadd.f32 %v742_v29, %v369_v53  ;;  %v442_v22 = vadd.f32 %v4676_v15, %v4680_v16 }
 0x134   :  { %v744_v44 = vpop.f32.mrf.mxu0  ;;  %v785_v13 = vpop.f32.mrf.mxu1 }
 0x135   :  { %v794_v35 = vmul.f32 0.5, %v790_v10  ;;  %v791_v23 = vadd.f32 %v744_v44, %v371_v27  ;;  %v793_v0 = vadd.f32 %v785_v13, %v444_v14  ;;  %v792_v17 = vadd.f32 %v783_v30, %v442_v22  ;;  %v4782_v30 = vld [vmem:[#allocation7 + $0xe0] ss:$16 sps:$4 sm:$0xff]   ;;  %v4784_v22 = vld [vmem:[#allocation7 + $0xe8] ss:$16 sps:$4 sm:$0xff]  }
 0x136   :  { %v746_v11 = vpop.f32.mrf.mxu0  ;;  %v787_v8 = vpop.f32.mrf.mxu1 }
 0x137   :  { %3987 = vtanh.f32 %v794_v35  ;;  %v795_v19 = vmul.f32 0.5, %v791_v23  ;;  %v796_v53 = vmul.f32 0.5, %v792_v17  ;;  %v4796_v17 = vld [vmem:[#allocation7 + $0xc0] ss:$16 sps:$4 sm:$0xff]  }
 0x138   :  { %v747_v21 = vpop.f32.mrf.mxu0  ;;  %v788_v12 = vpop.f32.mrf.mxu1 }
 0x139   :  { %3989 = vtanh.f32 %v795_v19  ;;  %v4788_v21 = vld [vmem:[#allocation7 + $0xc4] ss:$16 sps:$4 sm:$0xff]   ;;  %v4790_v12 = vld [vmem:[#allocation7 + $0xcc] ss:$16 sps:$4 sm:$0xff]  }
 0x13a   :  { %3991 = vtanh.f32 %v793_v0 }
 0x13b   :  { %3993 = vtanh.f32 %v796_v53  ;;  %v4798_v53 = vld [vmem:[#allocation7 + $0xc8] ss:$16 sps:$4 sm:$0xff]  }
 0x144   :  { %v3988_v29 = vpop.eup %3987 }
 0x145   :  { %v800_v10 = vmul.f32 0.5, %v3988_v29  ;;  %v4802_v29 = vld [vmem:[#allocation7 + $0xa4] ss:$16 sps:$4 sm:$0xff]  }
 0x146   :  { %v3990_v27 = vpop.eup %3989 }
 0x147   :  { %v803_v11 = vadd.f32 0.5, %v800_v10  ;;  %v801_v8 = vmul.f32 0.5, %v3990_v27  ;;  %v3992_v18 = vpop.eup %3991  ;;  %v4804_v10 = vld [vmem:[#allocation7 + $0xac] ss:$16 sps:$4 sm:$0xff]   ;;  %v6586_v27 = vmov 0  }
 0x148   :  { %v3994_v13 = vpop.eup %3993 }
 0x149   :  { %v804_v44 = vadd.f32 0.5, %v801_v8  ;;  %v808_v35 = vmul.f32 %v3992_v18, %v803_v11  ;;  %v802_v14 = vmul.f32 0.5, %v3994_v13  ;;  %v4810_v11 = vld [vmem:[#allocation7 + $0xa0] ss:$16 sps:$4 sm:$0xff]   ;;  %v4812_v8 = vld [vmem:[#allocation7 + $0xa8] ss:$16 sps:$4 sm:$0xff]  }
 0x14a   :  { %v4818_v18 = vld [vmem:[#allocation7 + $0x8c] ss:$16 sps:$4 sm:$0xff]   ;;  %v4828_v13 = vld [vmem:[#allocation7 + $0x64] ss:$16 sps:$4 sm:$0xff]  }
 0x14b   :  { %v807_v20 = vmul.f32 0.0, %v804_v44  ;;  %v805_v15 = vadd.f32 0.5, %v802_v14  ;;  %v4816_v44 = vld [vmem:[#allocation7 + $0x84] ss:$16 sps:$4 sm:$0xff]   ;;  %6589 = vst [vmem:[#allocation39_spill] sm:$0xff] %v4828_v13 }
 0x14c   :  { %v4830_v14 = vld [vmem:[#allocation7 + $0x6c] ss:$16 sps:$4 sm:$0xff]  }
 0x14d   :  { %v4779_v23 = vadd.f32 %v808_v35, %v807_v20  ;;  %v4822_v20 = vld [vmem:[#allocation7 + $0x80] ss:$16 sps:$4 sm:$0xff]   ;;  %v4824_v35 = vld [vmem:[#allocation7 + $0x88] ss:$16 sps:$4 sm:$0xff]   ;;  %6590 = vst [vmem:[#allocation40_spill] sm:$0xff] %v4830_v14 }
 0x14e   :  { %6587 = vst [vmem:[#allocation37_spill] sm:$0xff] %v4822_v20  ;;  %6588 = vst [vmem:[#allocation38_spill] sm:$0xff] %v4824_v35 }
 0x14f   :  { %3995 = vtanh.f32 %v4779_v23 }
 0x15c   :  { %v3996_v16 = vpop.eup %3995 }
 0x15d   :  { %v811_v0 = vmul.f32 %v3996_v16, %v805_v15  ;;  %v4834_v15 = vld [vmem:[#allocation7 + $0x60] ss:$16 sps:$4 sm:$0xff]   ;;  %v4836_v16 = vld [vmem:[#allocation7 + $0x68] ss:$16 sps:$4 sm:$0xff]  }
 0x15e   :  { %6591 = vst [vmem:[#allocation41_spill] sm:$0xff] %v4834_v15  ;;  %6592 = vst [vmem:[#allocation42_spill] sm:$0xff] %v4836_v16 }
 0x15f   :  { %v4786_v19 = vpack.c.bf16 %v811_v0, %v811_v0  ;;  %v4840_v0 = vld [vmem:[#allocation7 + $0x44] ss:$16 sps:$4 sm:$0xff]  }
 0x160   :  { %6593 = vst [vmem:[#allocation43_spill] sm:$0xff] %v4840_v0 }
 0x161   :  { %851 = vmatmul.mubr.bf16.vlgmr.msra.gmra.mxu0 %v4786_v19  ;;  %892 = vmatmul.mubr.bf16.vlgmr.msra.gmra.mxu1 %v4786_v19 }
 0x162   :  { %1137 = vmatpush1.bf16.msra.mxu0 %v4782_v30  ;;  %1178 = vmatpush1.bf16.msra.mxu1 %v4784_v22 }
 0x163   :  { %1138 = vmatprep.subr.bf16.mxu0 %v4788_v21  ;;  %1179 = vmatprep.subr.bf16.mxu1 %v4790_v12 }
 0x164   :  { %1168 = vmatprep.mubr.bf16.mxu0 %v6586_v27  ;;  %1209 = vmatprep.mubr.bf16.mxu1 %v6586_v27 }
 0x166   :  { %1139 = vmatpush1.bf16.msra.mxu0 %v4796_v17  ;;  %1180 = vmatpush1.bf16.msra.mxu1 %v4798_v53 }
 0x167   :  { %1140 = vmatprep.subr.bf16.mxu0 %v4802_v29  ;;  %1181 = vmatprep.subr.bf16.mxu1 %v4804_v10 }
 0x16a   :  { %1141 = vmatpush1.bf16.msra.mxu0 %v4810_v11  ;;  %1182 = vmatpush1.bf16.msra.mxu1 %v4812_v8 }
 0x16b   :  { %1142 = vmatprep.subr.bf16.mxu0 %v4816_v44  ;;  %1183 = vmatprep.subr.bf16.mxu1 %v4818_v18 }
 0x16e   :  { %1143 = vmatpush1.bf16.msra.mxu0 %v4822_v20  ;;  %1184 = vmatpush1.bf16.msra.mxu1 %v4824_v35  ;;  %v4848_v20 = vld [vmem:[#allocation7 + $0x48] ss:$16 sps:$4 sm:$0xff]   ;;  %v4852_v35 = vld [vmem:[#allocation7 + $0x24] ss:$16 sps:$4 sm:$0xff]  }
 0x16f   :  { %1144 = vmatprep.subr.bf16.mxu0 %v4828_v13  ;;  %1185 = vmatprep.subr.bf16.mxu1 %v4830_v14  ;;  %6596 = vst [vmem:[#allocation46_spill] sm:$0xff] %v4848_v20  ;;  %6597 = vst [vmem:[#allocation47_spill] sm:$0xff] %v4852_v35  ;;  %v4854_v13 = vld [vmem:[#allocation7 + $0x2c] ss:$16 sps:$4 sm:$0xff]   ;;  %v4858_v14 = vld [vmem:[#allocation7 + $0x20] ss:$16 sps:$4 sm:$0xff]  }
 0x170   :  { %6598 = vst [vmem:[#allocation48_spill] sm:$0xff] %v4854_v13  ;;  %6599 = vst [vmem:[#allocation49_spill] sm:$0xff] %v4858_v14 }
 0x172   :  { %1145 = vmatpush1.bf16.msra.mxu0 %v4834_v15  ;;  %1186 = vmatpush1.bf16.msra.mxu1 %v4836_v16  ;;  %v4860_v15 = vld [vmem:[#allocation7 + $0x28] ss:$16 sps:$4 sm:$0xff]   ;;  %v4864_v16 = vld [vmem:[#allocation7 + $0x4] ss:$16 sps:$4 sm:$0xff]  }
 0x173   :  { %1146 = vmatprep.subr.bf16.mxu0 %v4840_v0  ;;  %1187 = vmatprep.subr.bf16.mxu1 %v4842_v62  ;;  %6600 = vst [vmem:[#allocation50_spill] sm:$0xff] %v4860_v15  ;;  %6601 = vst [vmem:[#allocation51_spill] sm:$0xff] %v4864_v16  ;;  %v4866_v0 = vld [vmem:[#allocation7 + $0xc] ss:$16 sps:$4 sm:$0xff]   ;;  %v4870_v62 = vld [vmem:[#allocation7] ss:$16 sps:$4 sm:$0xff]  }
 0x174   :  { %6602 = vst [vmem:[#allocation52_spill] sm:$0xff] %v4870_v62 }
 0x176   :  { %1147 = vmatpush1.bf16.msra.mxu0 %v4846_v32  ;;  %1188 = vmatpush1.bf16.msra.mxu1 %v4848_v20  ;;  %v4872_v32 = vld [vmem:[#allocation7 + $0x8] ss:$16 sps:$4 sm:$0xff]   ;;  %v4876_v20 = vld [vmem:[#allocation8 + $0xe4] ss:$16 sps:$4 sm:$0xff]  }
 0x177   :  { %1148 = vmatprep.subr.bf16.mxu0 %v4852_v35  ;;  %1189 = vmatprep.subr.bf16.mxu1 %v4854_v13  ;;  %6603 = vst [vmem:[#allocation53_spill] sm:$0xff] %v4872_v32  ;;  %6604 = vst [vmem:[#allocation54_spill] sm:$0xff] %v4876_v20  ;;  %v4878_v35 = vld [vmem:[#allocation8 + $0xec] ss:$16 sps:$4 sm:$0xff]   ;;  %v4882_v13 = vld [vmem:[#allocation8 + $0xe0] ss:$16 sps:$4 sm:$0xff]  }
 0x178   :  { %6605 = vst [vmem:[#allocation55_spill] sm:$0xff] %v4878_v35  ;;  %6606 = vst [vmem:[#allocation56_spill] sm:$0xff] %v4882_v13 }
 0x17a   :  { %1149 = vmatpush1.bf16.msra.mxu0 %v4858_v14  ;;  %1190 = vmatpush1.bf16.msra.mxu1 %v4860_v15  ;;  %v4884_v14 = vld [vmem:[#allocation8 + $0xe8] ss:$16 sps:$4 sm:$0xff]   ;;  %v4888_v15 = vld [vmem:[#allocation8 + $0xc4] ss:$16 sps:$4 sm:$0xff]  }
 0x17b   :  { %1150 = vmatprep.subr.bf16.mxu0 %v4864_v16  ;;  %1191 = vmatprep.subr.bf16.mxu1 %v4866_v0  ;;  %6607 = vst [vmem:[#allocation57_spill] sm:$0xff] %v4884_v14  ;;  %6608 = vst [vmem:[#allocation58_spill] sm:$0xff] %v4888_v15  ;;  %v4890_v16 = vld [vmem:[#allocation8 + $0xcc] ss:$16 sps:$4 sm:$0xff]  }
 0x17c   :  { %6609 = vst [vmem:[#allocation59_spill] sm:$0xff] %v4890_v16 }
 0x17e   :  { %1151 = vmatpush1.bf16.msra.mxu0 %v4870_v62  ;;  %1192 = vmatpush1.bf16.msra.mxu1 %v4872_v32  ;;  %v4896_v32 = vld [vmem:[#allocation8 + $0xc0] ss:$16 sps:$4 sm:$0xff]   ;;  %v4898_v62 = vld [vmem:[#allocation8 + $0xc8] ss:$16 sps:$4 sm:$0xff]  }
 0x17f   :  { %1410 = vmatprep.subr.bf16.mxu0 %v4876_v20  ;;  %1451 = vmatprep.subr.bf16.mxu1 %v4878_v35  ;;  %6610 = vst [vmem:[#allocation60_spill] sm:$0xff] %v4896_v32  ;;  %6611 = vst [vmem:[#allocation61_spill] sm:$0xff] %v4898_v62  ;;  %v4902_v35 = vld [vmem:[#allocation8 + $0xa4] ss:$16 sps:$4 sm:$0xff]   ;;  %v4904_v20 = vld [vmem:[#allocation8 + $0xac] ss:$16 sps:$4 sm:$0xff]  }
 0x180   :  { %6612 = vst [vmem:[#allocation62_spill] sm:$0xff] %v4902_v35  ;;  %6613 = vst [vmem:[#allocation63_spill] sm:$0xff] %v4904_v20 }
 0x181   :  { %1169 = vmatmul.mubr.bf16.vlgmr.msra.gmra.mxu0 %v4786_v19  ;;  %1210 = vmatmul.mubr.bf16.vlgmr.msra.gmra.mxu1 %v4786_v19  ;;  %v4910_v19 = vld [vmem:[#allocation8 + $0xa0] ss:$16 sps:$4 sm:$0xff]  }
 0x182   :  { %1411 = vmatpush1.bf16.msra.mxu0 %v4882_v13  ;;  %1452 = vmatpush1.bf16.msra.mxu1 %v4884_v14  ;;  %6614 = vst [vmem:[#allocation64_spill] sm:$0xff] %v4910_v19  ;;  %v4912_v14 = vld [vmem:[#allocation8 + $0xa8] ss:$16 sps:$4 sm:$0xff]   ;;  %v4922_v13 = vld [vmem:[#allocation8 + $0x80] ss:$16 sps:$4 sm:$0xff]  }
 0x183   :  { %1412 = vmatprep.subr.bf16.mxu0 %v4888_v15  ;;  %1453 = vmatprep.subr.bf16.mxu1 %v4890_v16  ;;  %6615 = vst [vmem:[#allocation65_spill] sm:$0xff] %v4912_v14  ;;  %v4916_v16 = vld [vmem:[#allocation8 + $0x84] ss:$16 sps:$4 sm:$0xff]   ;;  %v4918_v15 = vld [vmem:[#allocation8 + $0x8c] ss:$16 sps:$4 sm:$0xff]   ;;  %6618 = vst [vmem:[#allocation68_spill] sm:$0xff] %v4922_v13 }
 0x184   :  { %1442 = vmatprep.mubr.bf16.mxu0 %v6586_v27  ;;  %1483 = vmatprep.mubr.bf16.mxu1 %v6586_v27  ;;  %6616 = vst [vmem:[#allocation66_spill] sm:$0xff] %v4916_v16  ;;  %6617 = vst [vmem:[#allocation67_spill] sm:$0xff] %v4918_v15 }
 0x186   :  { %1413 = vmatpush1.bf16.msra.mxu0 %v4896_v32  ;;  %1454 = vmatpush1.bf16.msra.mxu1 %v4898_v62  ;;  %v4924_v32 = vld [vmem:[#allocation8 + $0x88] ss:$16 sps:$4 sm:$0xff]   ;;  %v4928_v62 = vld [vmem:[#allocation8 + $0x64] ss:$16 sps:$4 sm:$0xff]  }
 0x187   :  { %1414 = vmatprep.subr.bf16.mxu0 %v4902_v35  ;;  %1455 = vmatprep.subr.bf16.mxu1 %v4904_v20  ;;  %6619 = vst [vmem:[#allocation69_spill] sm:$0xff] %v4924_v32  ;;  %6620 = vst [vmem:[#allocation70_spill] sm:$0xff] %v4928_v62  ;;  %v4930_v35 = vld [vmem:[#allocation8 + $0x6c] ss:$16 sps:$4 sm:$0xff]   ;;  %v4934_v20 = vld [vmem:[#allocation8 + $0x60] ss:$16 sps:$4 sm:$0xff]  }
 0x188   :  { %6621 = vst [vmem:[#allocation71_spill] sm:$0xff] %v4930_v35  ;;  %6622 = vst [vmem:[#allocation72_spill] sm:$0xff] %v4934_v20 }
 0x18a   :  { %1415 = vmatpush1.bf16.msra.mxu0 %v4910_v19  ;;  %1456 = vmatpush1.bf16.msra.mxu1 %v4912_v14  ;;  %v4936_v19 = vld [vmem:[#allocation8 + $0x68] ss:$16 sps:$4 sm:$0xff]   ;;  %v4940_v14 = vld [vmem:[#allocation8 + $0x44] ss:$16 sps:$4 sm:$0xff]  }
 0x18b   :  { %1416 = vmatprep.subr.bf16.mxu0 %v4916_v16  ;;  %1457 = vmatprep.subr.bf16.mxu1 %v4918_v15  ;;  %6623 = vst [vmem:[#allocation73_spill] sm:$0xff] %v4936_v19  ;;  %6624 = vst [vmem:[#allocation74_spill] sm:$0xff] %v4940_v14  ;;  %v4942_v16 = vld [vmem:[#allocation8 + $0x4c] ss:$16 sps:$4 sm:$0xff]   ;;  %v4946_v15 = vld [vmem:[#allocation8 + $0x40] ss:$16 sps:$4 sm:$0xff]  }
 0x18c   :  { %6625 = vst [vmem:[#allocation75_spill] sm:$0xff] %v4942_v16  ;;  %6626 = vst [vmem:[#allocation76_spill] sm:$0xff] %v4946_v15 }
 0x18e   :  { %1417 = vmatpush1.bf16.msra.mxu0 %v4922_v13  ;;  %1458 = vmatpush1.bf16.msra.mxu1 %v4924_v32  ;;  %v4948_v13 = vld [vmem:[#allocation8 + $0x48] ss:$16 sps:$4 sm:$0xff]   ;;  %v4952_v32 = vld [vmem:[#allocation8 + $0x24] ss:$16 sps:$4 sm:$0xff]  }
 0x18f   :  { %1418 = vmatprep.subr.bf16.mxu0 %v4928_v62  ;;  %1459 = vmatprep.subr.bf16.mxu1 %v4930_v35  ;;  %6627 = vst [vmem:[#allocation77_spill] sm:$0xff] %v4948_v13  ;;  %6628 = vst [vmem:[#allocation78_spill] sm:$0xff] %v4952_v32  ;;  %v4954_v62 = vld [vmem:[#allocation8 + $0x2c] ss:$16 sps:$4 sm:$0xff]   ;;  %v4958_v35 = vld [vmem:[#allocation8 + $0x20] ss:$16 sps:$4 sm:$0xff]  }
 0x190   :  { %6629 = vst [vmem:[#allocation79_spill] sm:$0xff] %v4954_v62  ;;  %6630 = vst [vmem:[#allocation80_spill] sm:$0xff] %v4958_v35 }
 0x192   :  { %1419 = vmatpush1.bf16.msra.mxu0 %v4934_v20  ;;  %1460 = vmatpush1.bf16.msra.mxu1 %v4936_v19  ;;  %v4960_v20 = vld [vmem:[#allocation8 + $0x28] ss:$16 sps:$4 sm:$0xff]   ;;  %v4964_v19 = vld [vmem:[#allocation8 + $0x4] ss:$16 sps:$4 sm:$0xff]  }
 0x193   :  { %1420 = vmatprep.subr.bf16.mxu0 %v4940_v14  ;;  %1461 = vmatprep.subr.bf16.mxu1 %v4942_v16  ;;  %6631 = vst [vmem:[#allocation81_spill] sm:$0xff] %v4960_v20  ;;  %6632 = vst [vmem:[#allocation82_spill] sm:$0xff] %v4964_v19  ;;  %v4966_v14 = vld [vmem:[#allocation8 + $0xc] ss:$16 sps:$4 sm:$0xff]   ;;  %v4970_v16 = vld [vmem:[#allocation8] ss:$16 sps:$4 sm:$0xff]  }
 0x194   :  { %6633 = vst [vmem:[#allocation83_spill] sm:$0xff] %v4966_v14  ;;  %6634 = vst [vmem:[#allocation84_spill] sm:$0xff] %v4970_v16 }
 0x196   :  { %1421 = vmatpush1.bf16.msra.mxu0 %v4946_v15  ;;  %1462 = vmatpush1.bf16.msra.mxu1 %v4948_v13  ;;  %v4972_v15 = vld [vmem:[#allocation8 + $0x8] ss:$16 sps:$4 sm:$0xff]  }
 0x197   :  { %1422 = vmatprep.subr.bf16.mxu0 %v4952_v32  ;;  %1463 = vmatprep.subr.bf16.mxu1 %v4954_v62  ;;  %6635 = vst [vmem:[#allocation85_spill] sm:$0xff] %v4972_v15 }
 0x19a   :  { %1423 = vmatpush1.bf16.msra.mxu0 %v4958_v35  ;;  %1464 = vmatpush1.bf16.msra.mxu1 %v4960_v20 }
 0x19b   :  { %1424 = vmatprep.subr.bf16.mxu0 %v4964_v19  ;;  %1465 = vmatprep.subr.bf16.mxu1 %v4966_v14 }
 0x19e   :  { %1425 = vmatpush1.bf16.msra.mxu0 %v4970_v16  ;;  %1466 = vmatpush1.bf16.msra.mxu1 %v4972_v15 }
 0x19f   :  { %1520 = vmatprep.subr.bf16.mxu0 %v4510_v33  ;;  %1561 = vmatprep.subr.bf16.mxu1 %v4512_v34 }
 0x1a1   :  { %1443 = vmatmul.mubr.bf16.vlgmr.msra.gmra.mxu0 %v6586_v27  ;;  %1484 = vmatmul.mubr.bf16.vlgmr.msra.gmra.mxu1 %v6586_v27 }
 0x1a2   :  { %1521 = vmatpush1.bf16.msra.mxu0 %v4517_v36  ;;  %1562 = vmatpush1.bf16.msra.mxu1 %v4519_v37  ;;  %v375_v36 = vadd.f32 %v4698_v26, %v4705_v31 }
 0x1a3   :  { %1522 = vmatprep.subr.bf16.mxu0 %v4523_v38  ;;  %1563 = vmatprep.subr.bf16.mxu1 %v4525_v39 }
 0x1a4   :  { %1552 = vmatprep.mubr.bf16.mxu0 %v6586_v27  ;;  %1593 = vmatprep.mubr.bf16.mxu1 %v6586_v27 }
 0x1a6   :  { %1523 = vmatpush1.bf16.msra.mxu0 %v4527_v40  ;;  %1564 = vmatpush1.bf16.msra.mxu1 %v4531_v41 }
 0x1a7   :  { %1524 = vmatprep.subr.bf16.mxu0 %v4535_v42  ;;  %1565 = vmatprep.subr.bf16.mxu1 %v4537_v43 }
 0x1aa   :  { %1525 = vmatpush1.bf16.msra.mxu0 %v4544_v45  ;;  %1566 = vmatpush1.bf16.msra.mxu1 %v4546_v46 }
 0x1ab   :  { %1526 = vmatprep.subr.bf16.mxu0 %v4550_v47  ;;  %1567 = vmatprep.subr.bf16.mxu1 %v4554_v48 }
 0x1ae   :  { %1527 = vmatpush1.bf16.msra.mxu0 %v4556_v49  ;;  %1568 = vmatpush1.bf16.msra.mxu1 %v4558_v50 }
 0x1af   :  { %1528 = vmatprep.subr.bf16.mxu0 %v4562_v51  ;;  %1569 = vmatprep.subr.bf16.mxu1 %v4566_v52 }
 0x1b2   :  { %1529 = vmatpush1.bf16.msra.mxu0 %v4573_v54  ;;  %1570 = vmatpush1.bf16.msra.mxu1 %v4575_v55 }
 0x1b3   :  { %1530 = vmatprep.subr.bf16.mxu0 %v4577_v56  ;;  %1571 = vmatprep.subr.bf16.mxu1 %v4579_v57 }
 0x1b6   :  { %1531 = vmatpush1.bf16.msra.mxu0 %v4585_v58  ;;  %1572 = vmatpush1.bf16.msra.mxu1 %v4587_v59 }
 0x1b7   :  { %1532 = vmatprep.subr.bf16.mxu0 %v4589_v60  ;;  %1573 = vmatprep.subr.bf16.mxu1 %v4591_v61 }
 0x1ba   :  { %1533 = vmatpush1.bf16.msra.mxu0 %v4602_v63  ;;  %1574 = vmatpush1.bf16.msra.mxu1 %v4604_v1 }
 0x1bb   :  { %1534 = vmatprep.subr.bf16.mxu0 %v4606_v2  ;;  %1575 = vmatprep.subr.bf16.mxu1 %v4608_v3 }
 0x1be   :  { %1535 = vmatpush1.bf16.msra.mxu0 %v4614_v4  ;;  %1576 = vmatpush1.bf16.msra.mxu1 %v4616_v5 }
 0x1bf   :  { %1624 = vmatprep.subr.bf16.mxu0 %v4662_v6  ;;  %1665 = vmatprep.subr.bf16.mxu1 %v4664_v7 }
 0x221   :  { %v852_v33 = vpop.f32.mrf.mxu0  ;;  %v893_v34 = vpop.f32.mrf.mxu1 }
 0x222   :  { %v900_v37 = vadd.f32 %v852_v33, %v4693_v24  ;;  %v902_v49 = vadd.f32 %v893_v34, %v4696_v25 }
 0x223   :  { %v854_v38 = vpop.f32.mrf.mxu0  ;;  %v895_v39 = vpop.f32.mrf.mxu1 }
 0x224   :  { %v904_v40 = vmul.f32 0.5, %v900_v37  ;;  %v901_v41 = vadd.f32 %v854_v38, %v375_v36  ;;  %v903_v46 = vadd.f32 %v895_v39, %v4701_v28  ;;  %v906_v50 = vmul.f32 0.5, %v902_v49  ;;  %v6638_v39 = vld [vmem:[#allocation37_spill] sm:$0xff] }
 0x225   :  { %v856_v42 = vpop.f32.mrf.mxu0  ;;  %v897_v43 = vpop.f32.mrf.mxu1  ;;  %v6636_v37 = vsub.s32 0, %v4668_v9  ;;  %v6644_v49 = vld [vmem:[#allocation41_spill] sm:$0xff] }
 0x226   :  { %3997 = vtanh.f32 %v904_v40  ;;  %v905_v45 = vmul.f32 0.5, %v901_v41  ;;  %v6639_v40 = vld [vmem:[#allocation38_spill] sm:$0xff]  ;;  %v6640_v41 = vsub.s32 1, %v4668_v9  ;;  %v6642_v43 = vld [vmem:[#allocation39_spill] sm:$0xff] }
 0x227   :  { %v857_v47 = vpop.f32.mrf.mxu0  ;;  %v898_v48 = vpop.f32.mrf.mxu1 }
 0x228   :  { %3999 = vtanh.f32 %v905_v45  ;;  %v6643_v45 = vld [vmem:[#allocation40_spill] sm:$0xff] }
 0x229   :  { %4001 = vtanh.f32 %v903_v46 }
 0x22a   :  { %4003 = vtanh.f32 %v906_v50  ;;  %v6645_v50 = vld [vmem:[#allocation42_spill] sm:$0xff] }
 0x233   :  { %v3998_v51 = vpop.eup %3997 }
 0x234   :  { %v910_v52 = vmul.f32 0.5, %v3998_v51 }
 0x235   :  { %v4000_v54 = vpop.eup %3999 }
 0x236   :  { %v913_v55 = vadd.f32 0.5, %v910_v52  ;;  %v911_v56 = vmul.f32 0.5, %v4000_v54  ;;  %v4002_v57 = vpop.eup %4001  ;;  %v6646_v52 = vsub.s32 3, %v4668_v9 }
 0x237   :  { %v4004_v2 = vpop.eup %4003 }
 0x238   :  { %v914_v58 = vadd.f32 0.5, %v911_v56  ;;  %v918_v59 = vmul.f32 %v4002_v57, %v913_v55  ;;  %v912_v25 = vmul.f32 0.5, %v4004_v2  ;;  %v6648_v56 = vld [vmem:[#allocation43_spill] sm:$0xff]  ;;  %v6649_v57 = vld [vmem:[#allocation44_spill] sm:$0xff] }
 0x23a   :  { %v917_v60 = vmul.f32 %v914_v58, %v4779_v23  ;;  %v915_v31 = vadd.f32 0.5, %v912_v25  ;;  %v954_v23 = vld [vmem:[%s6258_s6] sm:$0xf] }
 0x23b   :  { %v5050_v38 = vrot.slane %v954_v23, %v6636_v37  ;;  %v5056_v42 = vrot.slane %v954_v23, %v6640_v41  ;;  %v5066_v54 = vrot.slane %v954_v23, %v6646_v52  ;;  %v6654_v37 = vsub.s32 2, %v4668_v9  ;;  %v6658_v52 = vld [vmem:[#allocation51_spill] sm:$0xff] }
 0x23c   :  { %v5022_v61 = vadd.f32 %v918_v59, %v917_v60 }
 0x23d   :  { %6637 = vst [vmem:[#allocation86_spill] sm:$0xff] %v5050_v38  ;;  %6641 = vst [vmem:[#allocation37_spill] sm:$0xff] %v5056_v42  ;;  %v5077_v41 = vrot.slane %v954_v23, %v6654_v37  ;;  %v6661_v23 = vld [vmem:[#allocation54_spill] sm:$0xff] }
 0x23e   :  { %4005 = vtanh.f32 %v5022_v61  ;;  %6647 = vst [vmem:[#allocation38_spill] sm:$0xff] %v5066_v54 }
 0x23f   :  { %6655 = vst [vmem:[#allocation39_spill] sm:$0xff] %v5077_v41 }
 0x241   :  { %v1170_v63 = vpop.f32.mrf.mxu0  ;;  %v5025_v1 = vpop.f32.mrf.mxu1 }
 0x242   :  { %v1171_v46 = vadd.f32 %v1170_v63, %v5050_v38 }
 0x243   :  { %v1172_v3 = vpop.f32.mrf.mxu0  ;;  %v1213_v4 = vpop.f32.mrf.mxu1 }
 0x244   :  { %v1173_v51 = vadd.f32 %v1172_v3, %v5056_v42  ;;  %v1214_v3 = vadd.f32 %v1213_v4, %v5066_v54  ;;  %v1212_v4 = vadd.f32 %v5025_v1, %v5077_v41  ;;  %v6665_v1 = vld [vmem:[#allocation58_spill] sm:$0xff] }
 0x245   :  { %v1174_v5 = vpop.f32.mrf.mxu0  ;;  %v1215_v24 = vpop.f32.mrf.mxu1 }
 0x246   :  { %v6650_v5 = vld [vmem:[#allocation45_spill] sm:$0xff]  ;;  %v6651_v24 = vld [vmem:[#allocation46_spill] sm:$0xff] }
 0x247   :  { %v1175_v26 = vpop.f32.mrf.mxu0  ;;  %v1216_v28 = vpop.f32.mrf.mxu1 }
 0x248   :  { %v6652_v28 = vld [vmem:[#allocation47_spill] sm:$0xff] }
 0x24b   :  { %v4006_v33 = vpop.eup %4005 }
 0x24c   :  { %v921_v34 = vmul.f32 %v4006_v33, %v915_v31  ;;  %v6653_v31 = vld [vmem:[#allocation48_spill] sm:$0xff] }
 0x24e   :  { %v5027_v36 = vpack.c.bf16 %v921_v34, %v921_v34 }
 0x250   :  { %1553 = vmatmul.mubr.bf16.vlgmr.msra.gmra.mxu0 %v5027_v36  ;;  %1594 = vmatmul.mubr.bf16.vlgmr.msra.gmra.mxu1 %v5027_v36 }
 0x251   :  { %1625 = vmatpush1.bf16.msra.mxu0 %v4782_v30  ;;  %1666 = vmatpush1.bf16.msra.mxu1 %v4784_v22 }
 0x252   :  { %1626 = vmatprep.subr.bf16.mxu0 %v4788_v21  ;;  %1667 = vmatprep.subr.bf16.mxu1 %v4790_v12 }
 0x253   :  { %1656 = vmatprep.mubr.bf16.mxu0 %v6586_v27  ;;  %1697 = vmatprep.mubr.bf16.mxu1 %v6586_v27 }
 0x255   :  { %1627 = vmatpush1.bf16.msra.mxu0 %v4796_v17  ;;  %1668 = vmatpush1.bf16.msra.mxu1 %v4798_v53 }
 0x256   :  { %1628 = vmatprep.subr.bf16.mxu0 %v4802_v29  ;;  %1669 = vmatprep.subr.bf16.mxu1 %v4804_v10 }
 0x259   :  { %1629 = vmatpush1.bf16.msra.mxu0 %v4810_v11  ;;  %1670 = vmatpush1.bf16.msra.mxu1 %v4812_v8 }
 0x25a   :  { %1630 = vmatprep.subr.bf16.mxu0 %v4816_v44  ;;  %1671 = vmatprep.subr.bf16.mxu1 %v4818_v18 }
 0x25d   :  { %1631 = vmatpush1.bf16.msra.mxu0 %v6638_v39  ;;  %1672 = vmatpush1.bf16.msra.mxu1 %v6639_v40 }
 0x25e   :  { %1632 = vmatprep.subr.bf16.mxu0 %v6642_v43  ;;  %1673 = vmatprep.subr.bf16.mxu1 %v6643_v45 }
 0x261   :  { %v1444_v47 = vpop.f32.mrf.mxu0  ;;  %v1485_v48 = vpop.f32.mrf.mxu1  ;;  %1633 = vmatpush1.bf16.msra.mxu0 %v6644_v49  ;;  %1674 = vmatpush1.bf16.msra.mxu1 %v6645_v50 }
 0x262   :  { %v1492_v55 = vadd.f32 %v1444_v47, %v1171_v46  ;;  %1634 = vmatprep.subr.bf16.mxu0 %v6648_v56  ;;  %1675 = vmatprep.subr.bf16.mxu1 %v6649_v57  ;;  %v6656_v47 = vld [vmem:[#allocation49_spill] sm:$0xff]  ;;  %v1494_v9 = vadd.f32 %v1485_v48, %v1212_v4  ;;  %v6670_v4 = vld [vmem:[#allocation63_spill] sm:$0xff] }
 0x263   :  { %v1446_v58 = vpop.f32.mrf.mxu0  ;;  %v1487_v59 = vpop.f32.mrf.mxu1 }
 0x264   :  { %v1496_v60 = vmul.f32 0.5, %v1492_v55  ;;  %v1493_v63 = vadd.f32 %v1446_v58, %v1173_v51  ;;  %v1495_v46 = vadd.f32 %v1487_v59, %v1214_v3  ;;  %v6657_v51 = vld [vmem:[#allocation50_spill] sm:$0xff]  ;;  %v6659_v55 = vld [vmem:[#allocation52_spill] sm:$0xff]  ;;  %v6660_v58 = vld [vmem:[#allocation53_spill] sm:$0xff] }
 0x265   :  { %v1448_v2 = vpop.f32.mrf.mxu0  ;;  %1635 = vmatpush1.bf16.msra.mxu0 %v6650_v5  ;;  %1676 = vmatpush1.bf16.msra.mxu1 %v6651_v24  ;;  %v1489_v25 = vpop.f32.mrf.mxu1  ;;  %v6662_v59 = vld [vmem:[#allocation55_spill] sm:$0xff] }
 0x266   :  { %4007 = vtanh.f32 %v1496_v60  ;;  %v1497_v26 = vmul.f32 0.5, %v1493_v63  ;;  %1636 = vmatprep.subr.bf16.mxu0 %v6652_v28  ;;  %1677 = vmatprep.subr.bf16.mxu1 %v6653_v31  ;;  %v6663_v60 = vld [vmem:[#allocation56_spill] sm:$0xff]  ;;  %v6664_v63 = vld [vmem:[#allocation57_spill] sm:$0xff]  ;;  %v1498_v2 = vmul.f32 0.5, %v1494_v9  ;;  %v6666_v25 = vld [vmem:[#allocation59_spill] sm:$0xff] }
 0x267   :  { %v1449_v33 = vpop.f32.mrf.mxu0  ;;  %v1490_v34 = vpop.f32.mrf.mxu1 }
 0x268   :  { %4009 = vtanh.f32 %v1497_v26  ;;  %v6667_v33 = vld [vmem:[#allocation60_spill] sm:$0xff]  ;;  %v6668_v34 = vld [vmem:[#allocation61_spill] sm:$0xff] }
 0x269   :  { %1637 = vmatpush1.bf16.msra.mxu0 %v6656_v47  ;;  %1678 = vmatpush1.bf16.msra.mxu1 %v6657_v51  ;;  %4011 = vtanh.f32 %v1495_v46  ;;  %v6669_v46 = vld [vmem:[#allocation62_spill] sm:$0xff] }
 0x26a   :  { %1638 = vmatprep.subr.bf16.mxu0 %v6658_v52  ;;  %1679 = vmatprep.subr.bf16.mxu1 %v4866_v0  ;;  %4013 = vtanh.f32 %v1498_v2  ;;  %v6675_v2 = vld [vmem:[#allocation68_spill] sm:$0xff] }
 0x26d   :  { %1639 = vmatpush1.bf16.msra.mxu0 %v6659_v55  ;;  %1680 = vmatpush1.bf16.msra.mxu1 %v6660_v58 }
 0x26e   :  { %1707 = vmatprep.subr.bf16.mxu0 %v6661_v23  ;;  %1748 = vmatprep.subr.bf16.mxu1 %v6662_v59  ;;  %v6673_v59 = vld [vmem:[#allocation66_spill] sm:$0xff] }
 0x270   :  { %1657 = vmatmul.mubr.bf16.vlgmr.msra.gmra.mxu0 %v5027_v36  ;;  %1698 = vmatmul.mubr.bf16.vlgmr.msra.gmra.mxu1 %v5027_v36 }
 0x271   :  { %1708 = vmatpush1.bf16.msra.mxu0 %v6663_v60  ;;  %1749 = vmatpush1.bf16.msra.mxu1 %v6664_v63  ;;  %v6672_v63 = vld [vmem:[#allocation65_spill] sm:$0xff] }
 0x272   :  { %1709 = vmatprep.subr.bf16.mxu0 %v6665_v1  ;;  %1750 = vmatprep.subr.bf16.mxu1 %v6666_v25  ;;  %v6671_v1 = vld [vmem:[#allocation64_spill] sm:$0xff] }
 0x273   :  { %v4008_v3 = vpop.eup %4007  ;;  %1739 = vmatprep.mubr.bf16.mxu0 %v6586_v27  ;;  %1780 = vmatprep.mubr.bf16.mxu1 %v6586_v27 }
 0x274   :  { %v1502_v48 = vmul.f32 0.5, %v4008_v3 }
 0x275   :  { %v4010_v26 = vpop.eup %4009  ;;  %1710 = vmatpush1.bf16.msra.mxu0 %v6667_v33  ;;  %1751 = vmatpush1.bf16.msra.mxu1 %v6668_v34  ;;  %v6674_v33 = vld [vmem:[#allocation67_spill] sm:$0xff] }
 0x276   :  { %v1505_v36 = vadd.f32 0.5, %v1502_v48  ;;  %v1503_v37 = vmul.f32 0.5, %v4010_v26  ;;  %1711 = vmatprep.subr.bf16.mxu0 %v6669_v46  ;;  %1752 = vmatprep.subr.bf16.mxu1 %v6670_v4  ;;  %v4012_v25 = vpop.eup %4011  ;;  %v6676_v48 = vld [vmem:[#allocation69_spill] sm:$0xff]  ;;  %v6677_v26 = vld [vmem:[#allocation70_spill] sm:$0xff] }
 0x278   :  { %v1506_v9 = vadd.f32 0.5, %v1503_v37  ;;  %v1510_v3 = vmul.f32 %v4012_v25, %v1505_v36  ;;  %v6678_v37 = vld [vmem:[#allocation71_spill] sm:$0xff]  ;;  %v6681_v25 = vld [vmem:[#allocation74_spill] sm:$0xff] }
 0x279   :  { %1712 = vmatpush1.bf16.msra.mxu0 %v6671_v1  ;;  %1753 = vmatpush1.bf16.msra.mxu1 %v6672_v63  ;;  %v6679_v1 = vld [vmem:[#allocation72_spill] sm:$0xff]  ;;  %v6682_v36 = vld [vmem:[#allocation75_spill] sm:$0xff] }
 0x27a   :  { %v1509_v60 = vmul.f32 0.0, %v1506_v9  ;;  %1713 = vmatprep.subr.bf16.mxu0 %v6673_v59  ;;  %1754 = vmatprep.subr.bf16.mxu1 %v6674_v33  ;;  %v6680_v9 = vld [vmem:[#allocation73_spill] sm:$0xff] }
 0x27c   :  { %v5105_v34 = vadd.f32 %v1510_v3, %v1509_v60  ;;  %v4014_v60 = vpop.eup %4013  ;;  %v6683_v3 = vld [vmem:[#allocation76_spill] sm:$0xff] }
 0x27d   :  { %1714 = vmatpush1.bf16.msra.mxu0 %v6675_v2  ;;  %1755 = vmatpush1.bf16.msra.mxu1 %v6676_v48  ;;  %v1504_v48 = vmul.f32 0.5, %v4014_v60 }
 0x27e   :  { %4015 = vtanh.f32 %v5105_v34  ;;  %1715 = vmatprep.subr.bf16.mxu0 %v6677_v26  ;;  %1756 = vmatprep.subr.bf16.mxu1 %v6678_v37 }
 0x281   :  { %1716 = vmatpush1.bf16.msra.mxu0 %v6679_v1  ;;  %1757 = vmatpush1.bf16.msra.mxu1 %v6680_v9  ;;  %v1507_v1 = vadd.f32 0.5, %v1504_v48  ;;  %v5132_v48 = vld [vmem:[#allocation5 + $0xe0] ss:$16 sps:$4 sm:$0xff]  }
 0x282   :  { %1717 = vmatprep.subr.bf16.mxu0 %v6681_v25  ;;  %1758 = vmatprep.subr.bf16.mxu1 %v6682_v36  ;;  %6686 = vst [vmem:[#allocation42_spill] sm:$0xff] %v5132_v48 }
 0x285   :  { %1718 = vmatpush1.bf16.msra.mxu0 %v6683_v3  ;;  %1759 = vmatpush1.bf16.msra.mxu1 %v4948_v13  ;;  %v5126_v13 = vld [vmem:[#allocation5 + $0xe4] ss:$16 sps:$4 sm:$0xff]  }
 0x286   :  { %1719 = vmatprep.subr.bf16.mxu0 %v4952_v32  ;;  %1760 = vmatprep.subr.bf16.mxu1 %v4954_v62  ;;  %6684 = vst [vmem:[#allocation40_spill] sm:$0xff] %v5126_v13  ;;  %v5129_v62 = vld [vmem:[#allocation5 + $0xec] ss:$16 sps:$4 sm:$0xff]  }
 0x287   :  { %6685 = vst [vmem:[#allocation41_spill] sm:$0xff] %v5129_v62  ;;  %v6718_v32 = vld [vmem:[#allocation16_spill] sm:$0xff] }
 0x289   :  { %1720 = vmatpush1.bf16.msra.mxu0 %v4958_v35  ;;  %1761 = vmatpush1.bf16.msra.mxu1 %v4960_v20 }
 0x28a   :  { %1721 = vmatprep.subr.bf16.mxu0 %v4964_v19  ;;  %1762 = vmatprep.subr.bf16.mxu1 %v4966_v14 }
 0x28b   :  { %v4016_v36 = vpop.eup %4015 }
 0x28c   :  { %v1513_v25 = vmul.f32 %v4016_v36, %v1507_v1  ;;  %v5135_v1 = vld [vmem:[#allocation5 + $0xe8] ss:$16 sps:$4 sm:$0xff]   ;;  %v5138_v36 = vld [vmem:[#allocation5 + $0xc4] ss:$16 sps:$4 sm:$0xff]  }
 0x28d   :  { %1722 = vmatpush1.bf16.msra.mxu0 %v4970_v16  ;;  %1763 = vmatpush1.bf16.msra.mxu1 %v4972_v15  ;;  %6687 = vst [vmem:[#allocation43_spill] sm:$0xff] %v5135_v1  ;;  %6688 = vst [vmem:[#allocation44_spill] sm:$0xff] %v5138_v36 }
 0x28e   :  { %v1706_v60 = vpack.c.bf16 %v1513_v25, %v1513_v25  ;;  %1817 = vmatprep.subr.bf16.mxu0 %v5126_v13  ;;  %1858 = vmatprep.subr.bf16.mxu1 %v5129_v62  ;;  %v5141_v25 = vld [vmem:[#allocation5 + $0xcc] ss:$16 sps:$4 sm:$0xff]   ;;  %v5161_v62 = vld [vmem:[#allocation5 + $0xa8] ss:$16 sps:$4 sm:$0xff]   ;;  %v6716_v13 = vld [vmem:[#allocation13_spill] sm:$0xff] }
 0x28f   :  { %6689 = vst [vmem:[#allocation45_spill] sm:$0xff] %v5141_v25  ;;  %6695 = vst [vmem:[#allocation51_spill] sm:$0xff] %v5161_v62 }
 0x290   :  { %1740 = vmatmul.mubr.bf16.vlgmr.msra.gmra.mxu0 %v1706_v60  ;;  %1781 = vmatmul.mubr.bf16.vlgmr.msra.gmra.mxu1 %v1706_v60  ;;  %v5146_v60 = vld [vmem:[#allocation5 + $0xc0] ss:$16 sps:$4 sm:$0xff]  }
 0x291   :  { %1818 = vmatpush1.bf16.msra.mxu0 %v5132_v48  ;;  %1859 = vmatpush1.bf16.msra.mxu1 %v5135_v1  ;;  %6690 = vst [vmem:[#allocation46_spill] sm:$0xff] %v5146_v60  ;;  %v5149_v48 = vld [vmem:[#allocation5 + $0xc8] ss:$16 sps:$4 sm:$0xff]   ;;  %v5152_v1 = vld [vmem:[#allocation5 + $0xa4] ss:$16 sps:$4 sm:$0xff]  }
 0x292   :  { %1819 = vmatprep.subr.bf16.mxu0 %v5138_v36  ;;  %1860 = vmatprep.subr.bf16.mxu1 %v5141_v25  ;;  %6691 = vst [vmem:[#allocation47_spill] sm:$0xff] %v5149_v48  ;;  %6692 = vst [vmem:[#allocation48_spill] sm:$0xff] %v5152_v1  ;;  %v5155_v36 = vld [vmem:[#allocation5 + $0xac] ss:$16 sps:$4 sm:$0xff]   ;;  %v5158_v25 = vld [vmem:[#allocation5 + $0xa0] ss:$16 sps:$4 sm:$0xff]  }
 0x293   :  { %1849 = vmatprep.mubr.bf16.mxu0 %v6586_v27  ;;  %1890 = vmatprep.mubr.bf16.mxu1 %v6586_v27  ;;  %6693 = vst [vmem:[#allocation49_spill] sm:$0xff] %v5155_v36  ;;  %6694 = vst [vmem:[#allocation50_spill] sm:$0xff] %v5158_v25 }
 0x295   :  { %1820 = vmatpush1.bf16.msra.mxu0 %v5146_v60  ;;  %1861 = vmatpush1.bf16.msra.mxu1 %v5149_v48  ;;  %v5164_v60 = vld [vmem:[#allocation5 + $0x84] ss:$16 sps:$4 sm:$0xff]   ;;  %v5167_v48 = vld [vmem:[#allocation5 + $0x8c] ss:$16 sps:$4 sm:$0xff]  }
 0x296   :  { %1821 = vmatprep.subr.bf16.mxu0 %v5152_v1  ;;  %1862 = vmatprep.subr.bf16.mxu1 %v5155_v36  ;;  %6696 = vst [vmem:[#allocation52_spill] sm:$0xff] %v5164_v60  ;;  %6697 = vst [vmem:[#allocation53_spill] sm:$0xff] %v5167_v48  ;;  %v5170_v1 = vld [vmem:[#allocation5 + $0x80] ss:$16 sps:$4 sm:$0xff]   ;;  %v5173_v36 = vld [vmem:[#allocation5 + $0x88] ss:$16 sps:$4 sm:$0xff]  }
 0x297   :  { %6698 = vst [vmem:[#allocation54_spill] sm:$0xff] %v5170_v1  ;;  %6699 = vst [vmem:[#allocation62_spill] sm:$0xff] %v5173_v36 }
 0x299   :  { %1822 = vmatpush1.bf16.msra.mxu0 %v5158_v25  ;;  %1863 = vmatpush1.bf16.msra.mxu1 %v5161_v62  ;;  %v5176_v25 = vld [vmem:[#allocation5 + $0x64] ss:$16 sps:$4 sm:$0xff]   ;;  %v5179_v62 = vld [vmem:[#allocation5 + $0x6c] ss:$16 sps:$4 sm:$0xff]  }
 0x29a   :  { %1823 = vmatprep.subr.bf16.mxu0 %v5164_v60  ;;  %1864 = vmatprep.subr.bf16.mxu1 %v5167_v48  ;;  %6700 = vst [vmem:[#allocation63_spill] sm:$0xff] %v5176_v25  ;;  %6701 = vst [vmem:[#allocation65_spill] sm:$0xff] %v5179_v62  ;;  %v5182_v60 = vld [vmem:[#allocation5 + $0x60] ss:$16 sps:$4 sm:$0xff]   ;;  %v5185_v48 = vld [vmem:[#allocation5 + $0x68] ss:$16 sps:$4 sm:$0xff]  }
 0x29b   :  { %6702 = vst [vmem:[#allocation66_spill] sm:$0xff] %v5182_v60  ;;  %6703 = vst [vmem:[#allocation67_spill] sm:$0xff] %v5185_v48 }
 0x29d   :  { %1824 = vmatpush1.bf16.msra.mxu0 %v5170_v1  ;;  %1865 = vmatpush1.bf16.msra.mxu1 %v5173_v36  ;;  %v5188_v1 = vld [vmem:[#allocation5 + $0x44] ss:$16 sps:$4 sm:$0xff]   ;;  %v5191_v36 = vld [vmem:[#allocation5 + $0x4c] ss:$16 sps:$4 sm:$0xff]  }
 0x29e   :  { %1825 = vmatprep.subr.bf16.mxu0 %v5176_v25  ;;  %1866 = vmatprep.subr.bf16.mxu1 %v5179_v62  ;;  %6704 = vst [vmem:[#allocation87_spill] sm:$0xff] %v5188_v1  ;;  %6705 = vst [vmem:[#allocation88_spill] sm:$0xff] %v5191_v36  ;;  %v5194_v25 = vld [vmem:[#allocation5 + $0x40] ss:$16 sps:$4 sm:$0xff]   ;;  %v5197_v62 = vld [vmem:[#allocation5 + $0x48] ss:$16 sps:$4 sm:$0xff]  }
 0x29f   :  { %6706 = vst [vmem:[#allocation89_spill] sm:$0xff] %v5194_v25  ;;  %6707 = vst [vmem:[#allocation90_spill] sm:$0xff] %v5197_v62 }
 0x2a1   :  { %1826 = vmatpush1.bf16.msra.mxu0 %v5182_v60  ;;  %1867 = vmatpush1.bf16.msra.mxu1 %v5185_v48  ;;  %v5200_v60 = vld [vmem:[#allocation5 + $0x24] ss:$16 sps:$4 sm:$0xff]   ;;  %v5203_v48 = vld [vmem:[#allocation5 + $0x2c] ss:$16 sps:$4 sm:$0xff]  }
 0x2a2   :  { %1827 = vmatprep.subr.bf16.mxu0 %v5188_v1  ;;  %1868 = vmatprep.subr.bf16.mxu1 %v5191_v36  ;;  %6708 = vst [vmem:[#allocation91_spill] sm:$0xff] %v5200_v60  ;;  %6709 = vst [vmem:[#allocation92_spill] sm:$0xff] %v5203_v48  ;;  %v5206_v1 = vld [vmem:[#allocation5 + $0x20] ss:$16 sps:$4 sm:$0xff]   ;;  %v5209_v36 = vld [vmem:[#allocation5 + $0x28] ss:$16 sps:$4 sm:$0xff]  }
 0x2a3   :  { %6710 = vst [vmem:[#allocation93_spill] sm:$0xff] %v5206_v1  ;;  %6711 = vst [vmem:[#allocation94_spill] sm:$0xff] %v5209_v36 }
 0x2a5   :  { %1828 = vmatpush1.bf16.msra.mxu0 %v5194_v25  ;;  %1869 = vmatpush1.bf16.msra.mxu1 %v5197_v62  ;;  %v5212_v25 = vld [vmem:[#allocation5 + $0x4] ss:$16 sps:$4 sm:$0xff]   ;;  %v5215_v62 = vld [vmem:[#allocation5 + $0xc] ss:$16 sps:$4 sm:$0xff]  }
 0x2a6   :  { %1829 = vmatprep.subr.bf16.mxu0 %v5200_v60  ;;  %1870 = vmatprep.subr.bf16.mxu1 %v5203_v48  ;;  %6712 = vst [vmem:[#allocation95_spill] sm:$0xff] %v5212_v25  ;;  %6713 = vst [vmem:[#allocation96_spill] sm:$0xff] %v5215_v62  ;;  %v5218_v60 = vld [vmem:[#allocation5] ss:$16 sps:$4 sm:$0xff]   ;;  %v5221_v48 = vld [vmem:[#allocation5 + $0x8] ss:$16 sps:$4 sm:$0xff]  }
 0x2a7   :  { %6714 = vst [vmem:[#allocation97_spill] sm:$0xff] %v5218_v60  ;;  %6715 = vst [vmem:[#allocation98_spill] sm:$0xff] %v5221_v48 }
 0x2a9   :  { %1830 = vmatpush1.bf16.msra.mxu0 %v5206_v1  ;;  %1871 = vmatpush1.bf16.msra.mxu1 %v5209_v36 }
 0x2aa   :  { %1831 = vmatprep.subr.bf16.mxu0 %v5212_v25  ;;  %1872 = vmatprep.subr.bf16.mxu1 %v5215_v62  ;;  %v6717_v62 = vld [vmem:[#allocation15_spill] sm:$0xff] }
 0x2ad   :  { %1832 = vmatpush1.bf16.msra.mxu0 %v5218_v60  ;;  %1873 = vmatpush1.bf16.msra.mxu1 %v5221_v48 }
 0x2ae   :  { %1921 = vmatprep.subr.bf16.mxu0 %v4662_v6  ;;  %1962 = vmatprep.subr.bf16.mxu1 %v4664_v7  ;;  %v6719_v6 = vld [vmem:[#allocation14_spill] sm:$0xff] }
 0x310   :  { %v1554_v36 = vpop.f32.mrf.mxu0  ;;  %v1595_v1 = vpop.f32.mrf.mxu1 }
 0x311   :  { %v1602_v25 = vadd.f32 %v1554_v36, %v6716_v13  ;;  %v1604_v7 = vadd.f32 %v1595_v1, %v6719_v6 }
 0x312   :  { %v1556_v15 = vpop.f32.mrf.mxu0  ;;  %v1597_v16 = vpop.f32.mrf.mxu1 }
 0x313   :  { %v1606_v14 = vmul.f32 0.5, %v1602_v25  ;;  %v1603_v19 = vadd.f32 %v1556_v15, %v6717_v62  ;;  %v1605_v3 = vadd.f32 %v1597_v16, %v6718_v32  ;;  %v1608_v37 = vmul.f32 0.5, %v1604_v7 }
 0x314   :  { %v1558_v20 = vpop.f32.mrf.mxu0  ;;  %v1599_v35 = vpop.f32.mrf.mxu1 }
 0x315   :  { %4017 = vtanh.f32 %v1606_v14  ;;  %v1607_v60 = vmul.f32 0.5, %v1603_v19 }
 0x316   :  { %v1559_v48 = vpop.f32.mrf.mxu0  ;;  %v1600_v9 = vpop.f32.mrf.mxu1 }
 0x317   :  { %4019 = vtanh.f32 %v1607_v60 }
 0x318   :  { %4021 = vtanh.f32 %v1605_v3 }
 0x319   :  { %4023 = vtanh.f32 %v1608_v37 }
 0x322   :  { %v4018_v26 = vpop.eup %4017 }
 0x323   :  { %v1612_v13 = vmul.f32 0.5, %v4018_v26 }
 0x324   :  { %v4020_v36 = vpop.eup %4019 }
 0x325   :  { %v1615_v2 = vadd.f32 0.5, %v1612_v13  ;;  %v1613_v25 = vmul.f32 0.5, %v4020_v36  ;;  %v4022_v62 = vpop.eup %4021 }
 0x326   :  { %v4024_v19 = vpop.eup %4023 }
 0x327   :  { %v1616_v20 = vadd.f32 0.5, %v1613_v25  ;;  %v1620_v35 = vmul.f32 %v4022_v62, %v1615_v2  ;;  %v1614_v1 = vmul.f32 0.5, %v4024_v19  ;;  %v6727_v25 = vld [vmem:[#allocation64_spill] sm:$0xff] }
 0x328   :  { %v6736_v19 = vld [vmem:[#allocation76_spill] sm:$0xff] }
 0x329   :  { %v1619_v14 = vmul.f32 %v1616_v20, %v5022_v61  ;;  %v1617_v6 = vadd.f32 0.5, %v1614_v1  ;;  %v6740_v1 = vld [vmem:[#allocation80_spill] sm:$0xff] }
 0x32b   :  { %v5231_v15 = vadd.f32 %v1620_v35, %v1619_v14  ;;  %v6728_v14 = vld [vmem:[#allocation68_spill] sm:$0xff] }
 0x32d   :  { %4025 = vtanh.f32 %v5231_v15 }
 0x330   :  { %v1658_v32 = vpop.f32.mrf.mxu0  ;;  %v5234_v16 = vpop.f32.mrf.mxu1 }
 0x332   :  { %v1660_v9 = vpop.f32.mrf.mxu0  ;;  %v1701_v3 = vpop.f32.mrf.mxu1 }
 0x334   :  { %v1662_v26 = vpop.f32.mrf.mxu0  ;;  %v1703_v48 = vpop.f32.mrf.mxu1 }
 0x335   :  { %v6738_v26 = vld [vmem:[#allocation78_spill] sm:$0xff]  ;;  %v6739_v48 = vld [vmem:[#allocation79_spill] sm:$0xff] }
 0x336   :  { %v1663_v37 = vpop.f32.mrf.mxu0  ;;  %v1704_v60 = vpop.f32.mrf.mxu1 }
 0x337   :  { %v6741_v37 = vld [vmem:[#allocation81_spill] sm:$0xff] }
 0x33a   :  { %v4026_v7 = vpop.eup %4025 }
 0x33b   :  { %v1623_v2 = vmul.f32 %v4026_v7, %v1617_v6  ;;  %v6742_v6 = vld [vmem:[#allocation82_spill] sm:$0xff]  ;;  %v6743_v7 = vld [vmem:[#allocation83_spill] sm:$0xff] }
 0x33d   :  { %v1816_v13 = vpack.c.bf16 %v1623_v2, %v1623_v2 }
 0x33f   :  { %1850 = vmatmul.mubr.bf16.vlgmr.msra.gmra.mxu0 %v1816_v13  ;;  %1891 = vmatmul.mubr.bf16.vlgmr.msra.gmra.mxu1 %v1816_v13 }
 0x340   :  { %1922 = vmatpush1.bf16.msra.mxu0 %v4782_v30  ;;  %1963 = vmatpush1.bf16.msra.mxu1 %v4784_v22  ;;  %v1659_v30 = vadd.f32 %v1658_v32, %v5050_v38  ;;  %v6731_v32 = vld [vmem:[#allocation71_spill] sm:$0xff] }
 0x341   :  { %1923 = vmatprep.subr.bf16.mxu0 %v4788_v21  ;;  %1964 = vmatprep.subr.bf16.mxu1 %v4790_v12  ;;  %v1661_v12 = vadd.f32 %v1660_v9, %v5056_v42  ;;  %v6737_v9 = vld [vmem:[#allocation77_spill] sm:$0xff] }
 0x342   :  { %1953 = vmatprep.mubr.bf16.mxu0 %v6586_v27  ;;  %1994 = vmatprep.mubr.bf16.mxu1 %v6586_v27 }
 0x344   :  { %1924 = vmatpush1.bf16.msra.mxu0 %v4796_v17  ;;  %1965 = vmatpush1.bf16.msra.mxu1 %v4798_v53 }
 0x345   :  { %1925 = vmatprep.subr.bf16.mxu0 %v4802_v29  ;;  %1966 = vmatprep.subr.bf16.mxu1 %v4804_v10 }
 0x348   :  { %1926 = vmatpush1.bf16.msra.mxu0 %v4810_v11  ;;  %1967 = vmatpush1.bf16.msra.mxu1 %v4812_v8 }
 0x349   :  { %1927 = vmatprep.subr.bf16.mxu0 %v4816_v44  ;;  %1968 = vmatprep.subr.bf16.mxu1 %v4818_v18  ;;  %v1702_v18 = vadd.f32 %v1701_v3, %v5066_v54 }
 0x34c   :  { %1928 = vmatpush1.bf16.msra.mxu0 %v6638_v39  ;;  %1969 = vmatpush1.bf16.msra.mxu1 %v6639_v40 }
 0x34d   :  { %1929 = vmatprep.subr.bf16.mxu0 %v6642_v43  ;;  %1970 = vmatprep.subr.bf16.mxu1 %v6643_v45  ;;  %v1700_v45 = vadd.f32 %v5234_v16, %v5077_v41  ;;  %v6734_v16 = vld [vmem:[#allocation74_spill] sm:$0xff] }
 0x350   :  { %v1741_v22 = vpop.f32.mrf.mxu0  ;;  %v1782_v21 = vpop.f32.mrf.mxu1  ;;  %1930 = vmatpush1.bf16.msra.mxu0 %v6644_v49  ;;  %1971 = vmatpush1.bf16.msra.mxu1 %v6645_v50  ;;  %v6720_v50 = vld [vmem:[#allocation55_spill] sm:$0xff] }
 0x351   :  { %v1789_v17 = vadd.f32 %v1741_v22, %v1659_v30  ;;  %1931 = vmatprep.subr.bf16.mxu0 %v6648_v56  ;;  %1972 = vmatprep.subr.bf16.mxu1 %v6649_v57  ;;  %v1791_v49 = vadd.f32 %v1782_v21, %v1700_v45  ;;  %v6721_v56 = vld [vmem:[#allocation56_spill] sm:$0xff]  ;;  %v6722_v57 = vld [vmem:[#allocation57_spill] sm:$0xff] }
 0x352   :  { %v1743_v53 = vpop.f32.mrf.mxu0  ;;  %v1784_v29 = vpop.f32.mrf.mxu1  ;;  %v6744_v30 = vld [vmem:[#allocation84_spill] sm:$0xff]  ;;  %v6745_v22 = vld [vmem:[#allocation85_spill] sm:$0xff] }
 0x353   :  { %v1793_v10 = vmul.f32 0.5, %v1789_v17  ;;  %v1790_v11 = vadd.f32 %v1743_v53, %v1661_v12  ;;  %v1792_v43 = vadd.f32 %v1784_v29, %v1702_v18  ;;  %v6746_v12 = vld [vmem:[#allocation40_spill] sm:$0xff]  ;;  %v6747_v17 = vld [vmem:[#allocation41_spill] sm:$0xff]  ;;  %v6748_v53 = vld [vmem:[#allocation42_spill] sm:$0xff] }
 0x354   :  { %v1745_v8 = vpop.f32.mrf.mxu0  ;;  %v1786_v44 = vpop.f32.mrf.mxu1  ;;  %1932 = vmatpush1.bf16.msra.mxu0 %v6650_v5  ;;  %1973 = vmatpush1.bf16.msra.mxu1 %v6651_v24  ;;  %v6723_v5 = vld [vmem:[#allocation58_spill] sm:$0xff]  ;;  %v6724_v24 = vld [vmem:[#allocation59_spill] sm:$0xff]  ;;  %v6754_v18 = vld [vmem:[#allocation48_spill] sm:$0xff] }
 0x355   :  { %4027 = vtanh.f32 %v1793_v10  ;;  %v1794_v61 = vmul.f32 0.5, %v1790_v11  ;;  %1933 = vmatprep.subr.bf16.mxu0 %v6652_v28  ;;  %1974 = vmatprep.subr.bf16.mxu1 %v6653_v31  ;;  %v6749_v29 = vld [vmem:[#allocation43_spill] sm:$0xff]  ;;  %v6750_v10 = vld [vmem:[#allocation44_spill] sm:$0xff]  ;;  %v6751_v11 = vld [vmem:[#allocation45_spill] sm:$0xff] }
 0x356   :  { %v1746_v39 = vpop.f32.mrf.mxu0  ;;  %v1787_v40 = vpop.f32.mrf.mxu1  ;;  %v6752_v8 = vld [vmem:[#allocation46_spill] sm:$0xff]  ;;  %v6753_v44 = vld [vmem:[#allocation47_spill] sm:$0xff]  ;;  %v6759_v45 = vld [vmem:[#allocation53_spill] sm:$0xff] }
 0x357   :  { %4029 = vtanh.f32 %v1794_v61  ;;  %v6755_v61 = vld [vmem:[#allocation49_spill] sm:$0xff]  ;;  %v6756_v39 = vld [vmem:[#allocation50_spill] sm:$0xff]  ;;  %v6757_v40 = vld [vmem:[#allocation51_spill] sm:$0xff] }
 0x358   :  { %1934 = vmatpush1.bf16.msra.mxu0 %v6656_v47  ;;  %1975 = vmatpush1.bf16.msra.mxu1 %v6657_v51  ;;  %4031 = vtanh.f32 %v1792_v43  ;;  %v6725_v51 = vld [vmem:[#allocation60_spill] sm:$0xff] }
 0x359   :  { %1935 = vmatprep.subr.bf16.mxu0 %v6658_v52  ;;  %1976 = vmatprep.subr.bf16.mxu1 %v4866_v0  ;;  %v1795_v0 = vmul.f32 0.5, %v1791_v49  ;;  %v6726_v52 = vld [vmem:[#allocation61_spill] sm:$0xff]  ;;  %v6758_v43 = vld [vmem:[#allocation52_spill] sm:$0xff]  ;;  %v6760_v49 = vld [vmem:[#allocation54_spill] sm:$0xff] }
 0x35b   :  { %4033 = vtanh.f32 %v1795_v0  ;;  %v6764_v0 = vld [vmem:[#allocation66_spill] sm:$0xff] }
 0x35c   :  { %1936 = vmatpush1.bf16.msra.mxu0 %v6659_v55  ;;  %1977 = vmatpush1.bf16.msra.mxu1 %v6660_v58 }
 0x35d   :  { %2004 = vmatprep.subr.bf16.mxu0 %v6661_v23  ;;  %2045 = vmatprep.subr.bf16.mxu1 %v6720_v50  ;;  %v6761_v50 = vld [vmem:[#allocation62_spill] sm:$0xff] }
 0x35f   :  { %1954 = vmatmul.mubr.bf16.vlgmr.msra.gmra.mxu0 %v1816_v13  ;;  %1995 = vmatmul.mubr.bf16.vlgmr.msra.gmra.mxu1 %v1816_v13 }
 0x360   :  { %2005 = vmatpush1.bf16.msra.mxu0 %v6721_v56  ;;  %2046 = vmatpush1.bf16.msra.mxu1 %v6722_v57  ;;  %v6762_v56 = vld [vmem:[#allocation63_spill] sm:$0xff]  ;;  %v6763_v57 = vld [vmem:[#allocation65_spill] sm:$0xff] }
 0x361   :  { %2006 = vmatprep.subr.bf16.mxu0 %v6723_v5  ;;  %2047 = vmatprep.subr.bf16.mxu1 %v6724_v24  ;;  %v6765_v5 = vld [vmem:[#allocation67_spill] sm:$0xff] }
 0x362   :  { %v4028_v28 = vpop.eup %4027  ;;  %2036 = vmatprep.mubr.bf16.mxu0 %v6586_v27  ;;  %2077 = vmatprep.mubr.bf16.mxu1 %v6586_v27  ;;  %v6766_v24 = vld [vmem:[#allocation87_spill] sm:$0xff] }
 0x363   :  { %v1799_v31 = vmul.f32 0.5, %v4028_v28  ;;  %v6767_v28 = vld [vmem:[#allocation88_spill] sm:$0xff] }
 0x364   :  { %v4030_v47 = vpop.eup %4029  ;;  %2007 = vmatpush1.bf16.msra.mxu0 %v6725_v51  ;;  %2048 = vmatpush1.bf16.msra.mxu1 %v6726_v52  ;;  %v6770_v51 = vld [vmem:[#allocation91_spill] sm:$0xff]  ;;  %v6771_v52 = vld [vmem:[#allocation92_spill] sm:$0xff] }
 0x365   :  { %v1802_v55 = vadd.f32 0.5, %v1799_v31  ;;  %v1800_v58 = vmul.f32 0.5, %v4030_v47  ;;  %2008 = vmatprep.subr.bf16.mxu0 %v6669_v46  ;;  %2049 = vmatprep.subr.bf16.mxu1 %v6670_v4  ;;  %v4032_v36 = vpop.eup %4031  ;;  %v6729_v46 = vld [vmem:[#allocation69_spill] sm:$0xff]  ;;  %v6730_v4 = vld [vmem:[#allocation70_spill] sm:$0xff] }
 0x366   :  { %v6768_v31 = vld [vmem:[#allocation89_spill] sm:$0xff]  ;;  %v6769_v47 = vld [vmem:[#allocation90_spill] sm:$0xff] }
 0x367   :  { %v1803_v23 = vadd.f32 0.5, %v1800_v58  ;;  %v1807_v20 = vmul.f32 %v4032_v36, %v1802_v55  ;;  %v6772_v55 = vld [vmem:[#allocation93_spill] sm:$0xff]  ;;  %v6773_v58 = vld [vmem:[#allocation94_spill] sm:$0xff]  ;;  %v6775_v36 = vld [vmem:[#allocation96_spill] sm:$0xff] }
 0x368   :  { %2009 = vmatpush1.bf16.msra.mxu0 %v6727_v25  ;;  %2050 = vmatpush1.bf16.msra.mxu1 %v6672_v63  ;;  %v6732_v63 = vld [vmem:[#allocation72_spill] sm:$0xff]  ;;  %v6776_v25 = vld [vmem:[#allocation97_spill] sm:$0xff] }
 0x369   :  { %v1806_v62 = vmul.f32 %v1803_v23, %v5105_v34  ;;  %2010 = vmatprep.subr.bf16.mxu0 %v6673_v59  ;;  %2051 = vmatprep.subr.bf16.mxu1 %v6674_v33  ;;  %v6733_v34 = vld [vmem:[#allocation73_spill] sm:$0xff]  ;;  %v6735_v59 = vld [vmem:[#allocation75_spill] sm:$0xff]  ;;  %v4034_v33 = vpop.eup %4033 }
 0x36a   :  { %v1801_v3 = vmul.f32 0.5, %v4034_v33  ;;  %v6774_v23 = vld [vmem:[#allocation95_spill] sm:$0xff] }
 0x36b   :  { %v5290_v35 = vadd.f32 %v1807_v20, %v1806_v62  ;;  %v6777_v62 = vld [vmem:[#allocation98_spill] sm:$0xff]  ;;  %v5345_v20 = vld [vmem:[#allocation7 + $0xe4] ss:$16 sps:$4 sm:$0xff]  }
 0x36c   :  { %2011 = vmatpush1.bf16.msra.mxu0 %v6728_v14  ;;  %2052 = vmatpush1.bf16.msra.mxu1 %v6729_v46  ;;  %v1804_v60 = vadd.f32 0.5, %v1801_v3  ;;  %v5348_v14 = vld [vmem:[#allocation7 + $0xec] ss:$16 sps:$4 sm:$0xff]   ;;  %v6779_v33 = vld [vmem:[#allocation19_spill] sm:$0xff] }
 0x36d   :  { %4035 = vtanh.f32 %v5290_v35  ;;  %2012 = vmatprep.subr.bf16.mxu0 %v6730_v4  ;;  %2053 = vmatprep.subr.bf16.mxu1 %v6731_v32  ;;  %v6778_v32 = vld [vmem:[#allocation17_spill] sm:$0xff] }
 0x370   :  { %2013 = vmatpush1.bf16.msra.mxu0 %v6732_v63  ;;  %2054 = vmatpush1.bf16.msra.mxu1 %v6733_v34 }
 0x371   :  { %2014 = vmatprep.subr.bf16.mxu0 %v6734_v16  ;;  %2055 = vmatprep.subr.bf16.mxu1 %v6735_v59 }
 0x374   :  { %2015 = vmatpush1.bf16.msra.mxu0 %v6736_v19  ;;  %2056 = vmatpush1.bf16.msra.mxu1 %v6737_v9 }
 0x375   :  { %2016 = vmatprep.subr.bf16.mxu0 %v6738_v26  ;;  %2057 = vmatprep.subr.bf16.mxu1 %v6739_v48  ;;  %v6780_v48 = vld [vmem:[#allocation20_spill] sm:$0xff] }
 0x378   :  { %2017 = vmatpush1.bf16.msra.mxu0 %v6740_v1  ;;  %2058 = vmatpush1.bf16.msra.mxu1 %v6741_v37 }
 0x379   :  { %2018 = vmatprep.subr.bf16.mxu0 %v6742_v6  ;;  %2059 = vmatprep.subr.bf16.mxu1 %v6743_v7  ;;  %v6781_v6 = vld [vmem:[#allocation18_spill] sm:$0xff] }
 0x37a   :  { %v4036_v2 = vpop.eup %4035 }
 0x37b   :  { %v1810_v13 = vmul.f32 %v4036_v2, %v1804_v60 }
 0x37c   :  { %2019 = vmatpush1.bf16.msra.mxu0 %v6744_v30  ;;  %2060 = vmatpush1.bf16.msra.mxu1 %v6745_v22 }
 0x37d   :  { %v2003_v21 = vpack.c.bf16 %v1810_v13, %v1810_v13  ;;  %2114 = vmatprep.subr.bf16.mxu0 %v6746_v12  ;;  %2155 = vmatprep.subr.bf16.mxu1 %v6747_v17 }
 0x37f   :  { %2037 = vmatmul.mubr.bf16.vlgmr.msra.gmra.mxu0 %v2003_v21  ;;  %2078 = vmatmul.mubr.bf16.vlgmr.msra.gmra.mxu1 %v2003_v21 }
 0x380   :  { %2115 = vmatpush1.bf16.msra.mxu0 %v6748_v53  ;;  %2156 = vmatpush1.bf16.msra.mxu1 %v6749_v29 }
 0x381   :  { %2116 = vmatprep.subr.bf16.mxu0 %v6750_v10  ;;  %2157 = vmatprep.subr.bf16.mxu1 %v6751_v11 }
 0x382   :  { %2146 = vmatprep.mubr.bf16.mxu0 %v6586_v27  ;;  %2187 = vmatprep.mubr.bf16.mxu1 %v6586_v27 }
 0x384   :  { %2117 = vmatpush1.bf16.msra.mxu0 %v6752_v8  ;;  %2158 = vmatpush1.bf16.msra.mxu1 %v6753_v44 }
 0x385   :  { %2118 = vmatprep.subr.bf16.mxu0 %v6754_v18  ;;  %2159 = vmatprep.subr.bf16.mxu1 %v6755_v61 }
 0x388   :  { %2119 = vmatpush1.bf16.msra.mxu0 %v6756_v39  ;;  %2160 = vmatpush1.bf16.msra.mxu1 %v6757_v40 }
 0x389   :  { %2120 = vmatprep.subr.bf16.mxu0 %v6758_v43  ;;  %2161 = vmatprep.subr.bf16.mxu1 %v6759_v45 }
 0x38c   :  { %2121 = vmatpush1.bf16.msra.mxu0 %v6760_v49  ;;  %2162 = vmatpush1.bf16.msra.mxu1 %v6761_v50 }
 0x38d   :  { %2122 = vmatprep.subr.bf16.mxu0 %v6762_v56  ;;  %2163 = vmatprep.subr.bf16.mxu1 %v6763_v57 }
 0x390   :  { %2123 = vmatpush1.bf16.msra.mxu0 %v6764_v0  ;;  %2164 = vmatpush1.bf16.msra.mxu1 %v6765_v5 }
 0x391   :  { %2124 = vmatprep.subr.bf16.mxu0 %v6766_v24  ;;  %2165 = vmatprep.subr.bf16.mxu1 %v6767_v28 }
 0x394   :  { %2125 = vmatpush1.bf16.msra.mxu0 %v6768_v31  ;;  %2166 = vmatpush1.bf16.msra.mxu1 %v6769_v47 }
 0x395   :  { %2126 = vmatprep.subr.bf16.mxu0 %v6770_v51  ;;  %2167 = vmatprep.subr.bf16.mxu1 %v6771_v52 }
 0x398   :  { %2127 = vmatpush1.bf16.msra.mxu0 %v6772_v55  ;;  %2168 = vmatpush1.bf16.msra.mxu1 %v6773_v58 }
 0x399   :  { %2128 = vmatprep.subr.bf16.mxu0 %v6774_v23  ;;  %2169 = vmatprep.subr.bf16.mxu1 %v6775_v36 }
 0x39c   :  { %2129 = vmatpush1.bf16.msra.mxu0 %v6776_v25  ;;  %2170 = vmatpush1.bf16.msra.mxu1 %v6777_v62 }
 0x39d   :  { %2218 = vmatprep.subr.bf16.mxu0 %v5345_v20  ;;  %2259 = vmatprep.subr.bf16.mxu1 %v5348_v14 }
 0x3ff   :  { %v1851_v46 = vpop.f32.mrf.mxu0  ;;  %v1892_v4 = vpop.f32.mrf.mxu1 }
 0x400   :  { %v1899_v63 = vadd.f32 %v1851_v46, %v6778_v32  ;;  %v1901_v7 = vadd.f32 %v1892_v4, %v6781_v6 }
 0x401   :  { %v1853_v34 = vpop.f32.mrf.mxu0  ;;  %v1894_v16 = vpop.f32.mrf.mxu1 }
 0x402   :  { %v1903_v59 = vmul.f32 0.5, %v1899_v63  ;;  %v1900_v19 = vadd.f32 %v1853_v34, %v6779_v33  ;;  %v1902_v1 = vadd.f32 %v1894_v16, %v6780_v48  ;;  %v1905_v2 = vmul.f32 0.5, %v1901_v7 }
 0x403   :  { %v1855_v9 = vpop.f32.mrf.mxu0  ;;  %v1896_v3 = vpop.f32.mrf.mxu1 }
 0x404   :  { %4037 = vtanh.f32 %v1903_v59  ;;  %v1904_v26 = vmul.f32 0.5, %v1900_v19 }
 0x405   :  { %v1856_v37 = vpop.f32.mrf.mxu0  ;;  %v1897_v60 = vpop.f32.mrf.mxu1 }
 0x406   :  { %4039 = vtanh.f32 %v1904_v26 }
 0x407   :  { %4041 = vtanh.f32 %v1902_v1 }
 0x408   :  { %4043 = vtanh.f32 %v1905_v2 }
 0x411   :  { %v4038_v13 = vpop.eup %4037 }
 0x412   :  { %v1909_v30 = vmul.f32 0.5, %v4038_v13  ;;  %v5367_v13 = vld [vmem:[#allocation7 + $0xe0] ss:$16 sps:$4 sm:$0xff]  }
 0x413   :  { %v4040_v22 = vpop.eup %4039 }
 0x414   :  { %v1912_v21 = vadd.f32 0.5, %v1909_v30  ;;  %v1910_v46 = vmul.f32 0.5, %v4040_v22  ;;  %v4042_v32 = vpop.eup %4041  ;;  %v5370_v30 = vld [vmem:[#allocation7 + $0xe8] ss:$16 sps:$4 sm:$0xff]   ;;  %v5373_v22 = vld [vmem:[#allocation7 + $0xc4] ss:$16 sps:$4 sm:$0xff]  }
 0x415   :  { %v4044_v4 = vpop.eup %4043 }
 0x416   :  { %v1913_v63 = vadd.f32 0.5, %v1910_v46  ;;  %v1917_v34 = vmul.f32 %v4042_v32, %v1912_v21  ;;  %v1911_v1 = vmul.f32 0.5, %v4044_v4  ;;  %v5376_v21 = vld [vmem:[#allocation7 + $0xcc] ss:$16 sps:$4 sm:$0xff]   ;;  %v5381_v46 = vld [vmem:[#allocation7 + $0xc0] ss:$16 sps:$4 sm:$0xff]  }
 0x417   :  { %v5384_v32 = vld [vmem:[#allocation7 + $0xc8] ss:$16 sps:$4 sm:$0xff]  }
 0x418   :  { %v1916_v59 = vmul.f32 %v1913_v63, %v5231_v15  ;;  %v1914_v6 = vadd.f32 0.5, %v1911_v1  ;;  %6782 = vst [vmem:[#allocation13_spill] sm:$0xff] %v5384_v32  ;;  %v5387_v63 = vld [vmem:[#allocation7 + $0xa4] ss:$16 sps:$4 sm:$0xff]   ;;  %v5396_v4 = vld [vmem:[#allocation7 + $0xa8] ss:$16 sps:$4 sm:$0xff]  }
 0x419   :  { %6783 = vst [vmem:[#allocation15_spill] sm:$0xff] %v5387_v63  ;;  %6786 = vst [vmem:[#allocation55_spill] sm:$0xff] %v5396_v4  ;;  %v5405_v1 = vld [vmem:[#allocation7 + $0x80] ss:$16 sps:$4 sm:$0xff]  }
 0x41a   :  { %v5356_v33 = vadd.f32 %v1917_v34, %v1916_v59  ;;  %v5390_v34 = vld [vmem:[#allocation7 + $0xac] ss:$16 sps:$4 sm:$0xff]   ;;  %v5393_v59 = vld [vmem:[#allocation7 + $0xa0] ss:$16 sps:$4 sm:$0xff]   ;;  %6789 = vst [vmem:[#allocation58_spill] sm:$0xff] %v5405_v1 }
 0x41b   :  { %6784 = vst [vmem:[#allocation16_spill] sm:$0xff] %v5390_v34  ;;  %6785 = vst [vmem:[#allocation14_spill] sm:$0xff] %v5393_v59 }
 0x41c   :  { %4045 = vtanh.f32 %v5356_v33 }
 0x41f   :  { %v1955_v16 = vpop.f32.mrf.mxu0  ;;  %v5359_v19 = vpop.f32.mrf.mxu1 }
 0x421   :  { %v1957_v9 = vpop.f32.mrf.mxu0  ;;  %v5361_v3 = vpop.f32.mrf.mxu1 }
 0x423   :  { %v1959_v26 = vpop.f32.mrf.mxu0  ;;  %v2000_v48 = vpop.f32.mrf.mxu1 }
 0x424   :  { %v5399_v26 = vld [vmem:[#allocation7 + $0x84] ss:$16 sps:$4 sm:$0xff]   ;;  %v5402_v48 = vld [vmem:[#allocation7 + $0x8c] ss:$16 sps:$4 sm:$0xff]  }
 0x425   :  { %v1960_v37 = vpop.f32.mrf.mxu0  ;;  %v2001_v60 = vpop.f32.mrf.mxu1  ;;  %6787 = vst [vmem:[#allocation56_spill] sm:$0xff] %v5399_v26  ;;  %6788 = vst [vmem:[#allocation57_spill] sm:$0xff] %v5402_v48 }
 0x426   :  { %v5408_v37 = vld [vmem:[#allocation7 + $0x88] ss:$16 sps:$4 sm:$0xff]   ;;  %v5411_v60 = vld [vmem:[#allocation7 + $0x64] ss:$16 sps:$4 sm:$0xff]  }
 0x427   :  { %6790 = vst [vmem:[#allocation59_spill] sm:$0xff] %v5408_v37  ;;  %6791 = vst [vmem:[#allocation60_spill] sm:$0xff] %v5411_v60 }
 0x429   :  { %v4046_v7 = vpop.eup %4045 }
 0x42a   :  { %v1920_v2 = vmul.f32 %v4046_v7, %v1914_v6  ;;  %v5414_v6 = vld [vmem:[#allocation7 + $0x6c] ss:$16 sps:$4 sm:$0xff]   ;;  %v1956_v7 = vadd.f32 %v1955_v16, %v5050_v38 }
 0x42b   :  { %6792 = vst [vmem:[#allocation61_spill] sm:$0xff] %v5414_v6 }
 0x42c   :  { %v5363_v15 = vpack.c.bf16 %v1920_v2, %v1920_v2 }
 0x42e   :  { %2147 = vmatmul.mubr.bf16.vlgmr.msra.gmra.mxu0 %v5363_v15  ;;  %2188 = vmatmul.mubr.bf16.vlgmr.msra.gmra.mxu1 %v5363_v15 }
 0x42f   :  { %2219 = vmatpush1.bf16.msra.mxu0 %v5367_v13  ;;  %2260 = vmatpush1.bf16.msra.mxu1 %v5370_v30 }
 0x430   :  { %2220 = vmatprep.subr.bf16.mxu0 %v5373_v22  ;;  %2261 = vmatprep.subr.bf16.mxu1 %v5376_v21 }
 0x431   :  { %2250 = vmatprep.mubr.bf16.mxu0 %v6586_v27  ;;  %2291 = vmatprep.mubr.bf16.mxu1 %v6586_v27 }
 0x433   :  { %2221 = vmatpush1.bf16.msra.mxu0 %v5381_v46  ;;  %2262 = vmatpush1.bf16.msra.mxu1 %v5384_v32  ;;  %v5431_v32 = vld [vmem:[#allocation7 + $0x40] ss:$16 sps:$4 sm:$0xff]  }
 0x434   :  { %2222 = vmatprep.subr.bf16.mxu0 %v5387_v63  ;;  %2263 = vmatprep.subr.bf16.mxu1 %v5390_v34 }
 0x437   :  { %2223 = vmatpush1.bf16.msra.mxu0 %v5393_v59  ;;  %2264 = vmatpush1.bf16.msra.mxu1 %v5396_v4 }
 0x438   :  { %2224 = vmatprep.subr.bf16.mxu0 %v5399_v26  ;;  %2265 = vmatprep.subr.bf16.mxu1 %v5402_v48  ;;  %v5418_v26 = vld [vmem:[#allocation7 + $0x60] ss:$16 sps:$4 sm:$0xff]  }
 0x439   :  { %6793 = vst [vmem:[#allocation64_spill] sm:$0xff] %v5418_v26 }
 0x43b   :  { %2225 = vmatpush1.bf16.msra.mxu0 %v5405_v1  ;;  %2266 = vmatpush1.bf16.msra.mxu1 %v5408_v37  ;;  %v5421_v1 = vld [vmem:[#allocation7 + $0x68] ss:$16 sps:$4 sm:$0xff]   ;;  %v1958_v37 = vadd.f32 %v1957_v9, %v5056_v42 }
 0x43c   :  { %2226 = vmatprep.subr.bf16.mxu0 %v5411_v60  ;;  %2267 = vmatprep.subr.bf16.mxu1 %v5414_v6  ;;  %v5425_v60 = vld [vmem:[#allocation7 + $0x44] ss:$16 sps:$4 sm:$0xff]   ;;  %v5428_v6 = vld [vmem:[#allocation7 + $0x4c] ss:$16 sps:$4 sm:$0xff]   ;;  %v5434_v9 = vld [vmem:[#allocation7 + $0x48] ss:$16 sps:$4 sm:$0xff]  }
 0x43d   :  { %6794 = vst [vmem:[#allocation68_spill] sm:$0xff] %v5428_v6  ;;  %6795 = vst [vmem:[#allocation69_spill] sm:$0xff] %v5434_v9 }
 0x43f   :  { %v2038_v2 = vpop.f32.mrf.mxu0  ;;  %v2079_v48 = vpop.f32.mrf.mxu1  ;;  %2227 = vmatpush1.bf16.msra.mxu0 %v5418_v26  ;;  %2268 = vmatpush1.bf16.msra.mxu1 %v5421_v1 }
 0x440   :  { %v2086_v4 = vadd.f32 %v2038_v2, %v1956_v7  ;;  %2228 = vmatprep.subr.bf16.mxu0 %v5425_v60  ;;  %2269 = vmatprep.subr.bf16.mxu1 %v5428_v6  ;;  %v1999_v7 = vadd.f32 %v5361_v3, %v5066_v54  ;;  %v5439_v6 = vld [vmem:[#allocation7 + $0x24] ss:$16 sps:$4 sm:$0xff]  }
 0x441   :  { %v2040_v16 = vpop.f32.mrf.mxu0  ;;  %v2081_v38 = vpop.f32.mrf.mxu1  ;;  %v5451_v3 = vld [vmem:[#allocation7 + $0x4] ss:$16 sps:$4 sm:$0xff]  }
 0x442   :  { %v2090_v59 = vmul.f32 0.5, %v2086_v4  ;;  %v2087_v34 = vadd.f32 %v2040_v16, %v1958_v37  ;;  %v5442_v4 = vld [vmem:[#allocation7 + $0x2c] ss:$16 sps:$4 sm:$0xff]   ;;  %v2089_v37 = vadd.f32 %v2081_v38, %v1999_v7  ;;  %v5445_v16 = vld [vmem:[#allocation7 + $0x20] ss:$16 sps:$4 sm:$0xff]  }
 0x443   :  { %v2042_v26 = vpop.f32.mrf.mxu0  ;;  %v2083_v63 = vpop.f32.mrf.mxu1  ;;  %2229 = vmatpush1.bf16.msra.mxu0 %v5431_v32  ;;  %2270 = vmatpush1.bf16.msra.mxu1 %v5434_v9  ;;  %v5448_v9 = vld [vmem:[#allocation7 + $0x28] ss:$16 sps:$4 sm:$0xff]   ;;  %v5459_v38 = vld [vmem:[#allocation7] ss:$16 sps:$4 sm:$0xff]  }
 0x444   :  { %4047 = vtanh.f32 %v2090_v59  ;;  %v2091_v2 = vmul.f32 0.5, %v2087_v34  ;;  %2230 = vmatprep.subr.bf16.mxu0 %v5439_v6  ;;  %2271 = vmatprep.subr.bf16.mxu1 %v5442_v4  ;;  %v5454_v34 = vld [vmem:[#allocation7 + $0xc] ss:$16 sps:$4 sm:$0xff]   ;;  %v1997_v59 = vadd.f32 %v5359_v19, %v5077_v41  ;;  %6797 = vst [vmem:[#allocation71_spill] sm:$0xff] %v5459_v38  ;;  %v5462_v7 = vld [vmem:[#allocation7 + $0x8] ss:$16 sps:$4 sm:$0xff]  }
 0x445   :  { %v2043_v63 = vpop.f32.mrf.mxu0  ;;  %v2084_v26 = vpop.f32.mrf.mxu1  ;;  %6796 = vst [vmem:[#allocation70_spill] sm:$0xff] %v5454_v34  ;;  %6798 = vst [vmem:[#allocation72_spill] sm:$0xff] %v5462_v7  ;;  %v5473_v19 = vld [vmem:[#allocation8 + $0xe0] ss:$16 sps:$4 sm:$0xff]  }
 0x446   :  { %4049 = vtanh.f32 %v2091_v2  ;;  %v2088_v2 = vadd.f32 %v2079_v48, %v1997_v59  ;;  %v5465_v63 = vld [vmem:[#allocation8 + $0xe4] ss:$16 sps:$4 sm:$0xff]   ;;  %v5468_v26 = vld [vmem:[#allocation8 + $0xec] ss:$16 sps:$4 sm:$0xff]   ;;  %6801 = vst [vmem:[#allocation75_spill] sm:$0xff] %v5473_v19 }
 0x447   :  { %2231 = vmatpush1.bf16.msra.mxu0 %v5445_v16  ;;  %2272 = vmatpush1.bf16.msra.mxu1 %v5448_v9  ;;  %4051 = vtanh.f32 %v2089_v37  ;;  %6799 = vst [vmem:[#allocation73_spill] sm:$0xff] %v5465_v63  ;;  %6800 = vst [vmem:[#allocation74_spill] sm:$0xff] %v5468_v26  ;;  %v5476_v37 = vld [vmem:[#allocation8 + $0xe8] ss:$16 sps:$4 sm:$0xff]   ;;  %v5479_v59 = vld [vmem:[#allocation8 + $0xc4] ss:$16 sps:$4 sm:$0xff]  }
 0x448   :  { %2232 = vmatprep.subr.bf16.mxu0 %v5451_v3  ;;  %2273 = vmatprep.subr.bf16.mxu1 %v5454_v34  ;;  %6802 = vst [vmem:[#allocation76_spill] sm:$0xff] %v5476_v37  ;;  %v2092_v48 = vmul.f32 0.5, %v2088_v2  ;;  %6803 = vst [vmem:[#allocation77_spill] sm:$0xff] %v5479_v59  ;;  %v5490_v2 = vld [vmem:[#allocation8 + $0xc8] ss:$16 sps:$4 sm:$0xff]  }
 0x449   :  { %v5499_v34 = vld [vmem:[#allocation8 + $0xa0] ss:$16 sps:$4 sm:$0xff]  }
 0x44a   :  { %4053 = vtanh.f32 %v2092_v48  ;;  %6808 = vst [vmem:[#allocation82_spill] sm:$0xff] %v5499_v34 }
 0x44b   :  { %2233 = vmatpush1.bf16.msra.mxu0 %v5459_v38  ;;  %2274 = vmatpush1.bf16.msra.mxu1 %v5462_v7  ;;  %v5487_v7 = vld [vmem:[#allocation8 + $0xc0] ss:$16 sps:$4 sm:$0xff]   ;;  %v5493_v38 = vld [vmem:[#allocation8 + $0xa4] ss:$16 sps:$4 sm:$0xff]  }
 0x44c   :  { %2301 = vmatprep.subr.bf16.mxu0 %v5465_v63  ;;  %2342 = vmatprep.subr.bf16.mxu1 %v5468_v26  ;;  %v5482_v63 = vld [vmem:[#allocation8 + $0xcc] ss:$16 sps:$4 sm:$0xff]   ;;  %6805 = vst [vmem:[#allocation79_spill] sm:$0xff] %v5487_v7  ;;  %6806 = vst [vmem:[#allocation80_spill] sm:$0xff] %v5493_v38 }
 0x44d   :  { %6804 = vst [vmem:[#allocation78_spill] sm:$0xff] %v5482_v63 }
 0x44e   :  { %2251 = vmatmul.mubr.bf16.vlgmr.msra.gmra.mxu0 %v5363_v15  ;;  %2292 = vmatmul.mubr.bf16.vlgmr.msra.gmra.mxu1 %v5363_v15 }
 0x44f   :  { %2302 = vmatpush1.bf16.msra.mxu0 %v5473_v19  ;;  %2343 = vmatpush1.bf16.msra.mxu1 %v5476_v37 }
 0x450   :  { %2303 = vmatprep.subr.bf16.mxu0 %v5479_v59  ;;  %2344 = vmatprep.subr.bf16.mxu1 %v5482_v63  ;;  %v5496_v63 = vld [vmem:[#allocation8 + $0xac] ss:$16 sps:$4 sm:$0xff]  }
 0x451   :  { %v4048_v26 = vpop.eup %4047  ;;  %2333 = vmatprep.mubr.bf16.mxu0 %v6586_v27  ;;  %2374 = vmatprep.mubr.bf16.mxu1 %v6586_v27  ;;  %6807 = vst [vmem:[#allocation81_spill] sm:$0xff] %v5496_v63 }
 0x452   :  { %v2096_v15 = vmul.f32 0.5, %v4048_v26 }
 0x453   :  { %v4050_v19 = vpop.eup %4049  ;;  %2304 = vmatpush1.bf16.msra.mxu0 %v5487_v7  ;;  %2345 = vmatpush1.bf16.msra.mxu1 %v5490_v2  ;;  %v5502_v7 = vld [vmem:[#allocation8 + $0xa8] ss:$16 sps:$4 sm:$0xff]  }
 0x454   :  { %v2099_v59 = vadd.f32 0.5, %v2096_v15  ;;  %v2097_v37 = vmul.f32 0.5, %v4050_v19  ;;  %2305 = vmatprep.subr.bf16.mxu0 %v5493_v38  ;;  %2346 = vmatprep.subr.bf16.mxu1 %v5496_v63  ;;  %v4052_v41 = vpop.eup %4051  ;;  %6809 = vst [vmem:[#allocation83_spill] sm:$0xff] %v5502_v7  ;;  %v5506_v15 = vld [vmem:[#allocation8 + $0x84] ss:$16 sps:$4 sm:$0xff]  }
 0x455   :  { %6810 = vst [vmem:[#allocation84_spill] sm:$0xff] %v5506_v15  ;;  %v5509_v38 = vld [vmem:[#allocation8 + $0x8c] ss:$16 sps:$4 sm:$0xff]   ;;  %v5514_v63 = vld [vmem:[#allocation8 + $0x80] ss:$16 sps:$4 sm:$0xff]  }
 0x456   :  { %v2100_v26 = vadd.f32 0.5, %v2097_v37  ;;  %v2104_v48 = vmul.f32 %v4052_v41, %v2099_v59  ;;  %6811 = vst [vmem:[#allocation85_spill] sm:$0xff] %v5509_v38  ;;  %6812 = vst [vmem:[#allocation40_spill] sm:$0xff] %v5514_v63  ;;  %v5521_v41 = vld [vmem:[#allocation8 + $0x64] ss:$16 sps:$4 sm:$0xff]  }
 0x457   :  { %2306 = vmatpush1.bf16.msra.mxu0 %v5499_v34  ;;  %2347 = vmatpush1.bf16.msra.mxu1 %v5502_v7  ;;  %v5517_v34 = vld [vmem:[#allocation8 + $0x88] ss:$16 sps:$4 sm:$0xff]   ;;  %6814 = vst [vmem:[#allocation42_spill] sm:$0xff] %v5521_v41  ;;  %v5527_v59 = vld [vmem:[#allocation8 + $0x60] ss:$16 sps:$4 sm:$0xff]  }
 0x458   :  { %v2103_v19 = vmul.f32 %v2100_v26, %v5290_v35  ;;  %2307 = vmatprep.subr.bf16.mxu0 %v5506_v15  ;;  %2348 = vmatprep.subr.bf16.mxu1 %v5509_v38  ;;  %6813 = vst [vmem:[#allocation41_spill] sm:$0xff] %v5517_v34  ;;  %v5524_v35 = vld [vmem:[#allocation8 + $0x6c] ss:$16 sps:$4 sm:$0xff]   ;;  %6816 = vst [vmem:[#allocation44_spill] sm:$0xff] %v5527_v59  ;;  %v5530_v26 = vld [vmem:[#allocation8 + $0x68] ss:$16 sps:$4 sm:$0xff]  }
 0x459   :  { %6815 = vst [vmem:[#allocation43_spill] sm:$0xff] %v5524_v35  ;;  %6817 = vst [vmem:[#allocation45_spill] sm:$0xff] %v5530_v26  ;;  %v5557_v38 = vld [vmem:[#allocation8 + $0x4] ss:$16 sps:$4 sm:$0xff]  }
 0x45a   :  { %v5512_v37 = vadd.f32 %v2104_v48, %v2103_v19  ;;  %v5533_v19 = vld [vmem:[#allocation8 + $0x44] ss:$16 sps:$4 sm:$0xff]   ;;  %v5536_v48 = vld [vmem:[#allocation8 + $0x4c] ss:$16 sps:$4 sm:$0xff]   ;;  %6826 = vst [vmem:[#allocation54_spill] sm:$0xff] %v5557_v38 }
 0x45b   :  { %2308 = vmatpush1.bf16.msra.mxu0 %v5514_v63  ;;  %2349 = vmatpush1.bf16.msra.mxu1 %v5517_v34  ;;  %6818 = vst [vmem:[#allocation46_spill] sm:$0xff] %v5533_v19  ;;  %6819 = vst [vmem:[#allocation47_spill] sm:$0xff] %v5536_v48  ;;  %v5539_v34 = vld [vmem:[#allocation8 + $0x40] ss:$16 sps:$4 sm:$0xff]   ;;  %v5545_v63 = vld [vmem:[#allocation8 + $0x24] ss:$16 sps:$4 sm:$0xff]  }
 0x45c   :  { %4055 = vtanh.f32 %v5512_v37  ;;  %2309 = vmatprep.subr.bf16.mxu0 %v5521_v41  ;;  %2350 = vmatprep.subr.bf16.mxu1 %v5524_v35  ;;  %v4054_v41 = vpop.eup %4053  ;;  %6820 = vst [vmem:[#allocation48_spill] sm:$0xff] %v5539_v34  ;;  %v5542_v35 = vld [vmem:[#allocation8 + $0x48] ss:$16 sps:$4 sm:$0xff]   ;;  %6822 = vst [vmem:[#allocation50_spill] sm:$0xff] %v5545_v63 }
 0x45d   :  { %6821 = vst [vmem:[#allocation49_spill] sm:$0xff] %v5542_v35 }
 0x45f   :  { %2310 = vmatpush1.bf16.msra.mxu0 %v5527_v59  ;;  %2351 = vmatpush1.bf16.msra.mxu1 %v5530_v26  ;;  %v2098_v59 = vmul.f32 0.5, %v4054_v41  ;;  %v5548_v26 = vld [vmem:[#allocation8 + $0x2c] ss:$16 sps:$4 sm:$0xff]  }
 0x460   :  { %2311 = vmatprep.subr.bf16.mxu0 %v5533_v19  ;;  %2352 = vmatprep.subr.bf16.mxu1 %v5536_v48  ;;  %6823 = vst [vmem:[#allocation51_spill] sm:$0xff] %v5548_v26  ;;  %v5551_v19 = vld [vmem:[#allocation8 + $0x20] ss:$16 sps:$4 sm:$0xff]   ;;  %v5554_v48 = vld [vmem:[#allocation8 + $0x28] ss:$16 sps:$4 sm:$0xff]  }
 0x461   :  { %6824 = vst [vmem:[#allocation52_spill] sm:$0xff] %v5551_v19  ;;  %6825 = vst [vmem:[#allocation53_spill] sm:$0xff] %v5554_v48  ;;  %v5560_v41 = vld [vmem:[#allocation8 + $0xc] ss:$16 sps:$4 sm:$0xff]  }
 0x462   :  { %6827 = vst [vmem:[#allocation62_spill] sm:$0xff] %v5560_v41 }
 0x463   :  { %2312 = vmatpush1.bf16.msra.mxu0 %v5539_v34  ;;  %2353 = vmatpush1.bf16.msra.mxu1 %v5542_v35  ;;  %v2101_v34 = vadd.f32 0.5, %v2098_v59 }
 0x464   :  { %2313 = vmatprep.subr.bf16.mxu0 %v5545_v63  ;;  %2354 = vmatprep.subr.bf16.mxu1 %v5548_v26  ;;  %v5563_v26 = vld [vmem:[#allocation8] ss:$16 sps:$4 sm:$0xff]  }
 0x465   :  { %6828 = vst [vmem:[#allocation63_spill] sm:$0xff] %v5563_v26 }
 0x467   :  { %2314 = vmatpush1.bf16.msra.mxu0 %v5551_v19  ;;  %2355 = vmatpush1.bf16.msra.mxu1 %v5554_v48  ;;  %v5566_v19 = vld [vmem:[#allocation8 + $0x8] ss:$16 sps:$4 sm:$0xff]  }
 0x468   :  { %2315 = vmatprep.subr.bf16.mxu0 %v5557_v38  ;;  %2356 = vmatprep.subr.bf16.mxu1 %v5560_v41  ;;  %6829 = vst [vmem:[#allocation65_spill] sm:$0xff] %v5566_v19 }
 0x469   :  { %v4056_v63 = vpop.eup %4055 }
 0x46a   :  { %v2107_v35 = vmul.f32 %v4056_v63, %v2101_v34 }
 0x46b   :  { %2316 = vmatpush1.bf16.msra.mxu0 %v5563_v26  ;;  %2357 = vmatpush1.bf16.msra.mxu1 %v5566_v19 }
 0x46c   :  { %v2300_v48 = vpack.c.bf16 %v2107_v35, %v2107_v35  ;;  %2411 = vmatprep.subr.bf16.mxu0 %v6746_v12  ;;  %2452 = vmatprep.subr.bf16.mxu1 %v6747_v17 }
 0x46e   :  { %2334 = vmatmul.mubr.bf16.vlgmr.msra.gmra.mxu0 %v2300_v48  ;;  %2375 = vmatmul.mubr.bf16.vlgmr.msra.gmra.mxu1 %v2300_v48 }
 0x46f   :  { %2412 = vmatpush1.bf16.msra.mxu0 %v6748_v53  ;;  %2453 = vmatpush1.bf16.msra.mxu1 %v6749_v29  ;;  %v6830_v53 = vld [vmem:[#allocation21_spill] sm:$0xff] }
 0x470   :  { %2413 = vmatprep.subr.bf16.mxu0 %v6750_v10  ;;  %2454 = vmatprep.subr.bf16.mxu1 %v6751_v11 }
 0x471   :  { %2443 = vmatprep.mubr.bf16.mxu0 %v6586_v27  ;;  %2484 = vmatprep.mubr.bf16.mxu1 %v6586_v27 }
 0x473   :  { %2414 = vmatpush1.bf16.msra.mxu0 %v6752_v8  ;;  %2455 = vmatpush1.bf16.msra.mxu1 %v6753_v44  ;;  %v6831_v44 = vld [vmem:[#allocation23_spill] sm:$0xff] }
 0x474   :  { %2415 = vmatprep.subr.bf16.mxu0 %v6754_v18  ;;  %2456 = vmatprep.subr.bf16.mxu1 %v6755_v61 }
 0x477   :  { %2416 = vmatpush1.bf16.msra.mxu0 %v6756_v39  ;;  %2457 = vmatpush1.bf16.msra.mxu1 %v6757_v40 }
 0x478   :  { %2417 = vmatprep.subr.bf16.mxu0 %v6758_v43  ;;  %2458 = vmatprep.subr.bf16.mxu1 %v6759_v45  ;;  %v6832_v43 = vld [vmem:[#allocation24_spill] sm:$0xff] }
 0x47b   :  { %2418 = vmatpush1.bf16.msra.mxu0 %v6760_v49  ;;  %2459 = vmatpush1.bf16.msra.mxu1 %v6761_v50 }
 0x47c   :  { %2419 = vmatprep.subr.bf16.mxu0 %v6762_v56  ;;  %2460 = vmatprep.subr.bf16.mxu1 %v6763_v57  ;;  %v6833_v56 = vld [vmem:[#allocation22_spill] sm:$0xff] }
 0x47f   :  { %2420 = vmatpush1.bf16.msra.mxu0 %v6764_v0  ;;  %2461 = vmatpush1.bf16.msra.mxu1 %v6765_v5 }
 0x480   :  { %2421 = vmatprep.subr.bf16.mxu0 %v6766_v24  ;;  %2462 = vmatprep.subr.bf16.mxu1 %v6767_v28 }
 0x483   :  { %2422 = vmatpush1.bf16.msra.mxu0 %v6768_v31  ;;  %2463 = vmatpush1.bf16.msra.mxu1 %v6769_v47 }
 0x484   :  { %2423 = vmatprep.subr.bf16.mxu0 %v6770_v51  ;;  %2464 = vmatprep.subr.bf16.mxu1 %v6771_v52 }
 0x487   :  { %2424 = vmatpush1.bf16.msra.mxu0 %v6772_v55  ;;  %2465 = vmatpush1.bf16.msra.mxu1 %v6773_v58 }
 0x488   :  { %2425 = vmatprep.subr.bf16.mxu0 %v6774_v23  ;;  %2466 = vmatprep.subr.bf16.mxu1 %v6775_v36 }
 0x48b   :  { %2426 = vmatpush1.bf16.msra.mxu0 %v6776_v25  ;;  %2467 = vmatpush1.bf16.msra.mxu1 %v6777_v62 }
 0x48c   :  { %2515 = vmatprep.subr.bf16.mxu0 %v5345_v20  ;;  %2556 = vmatprep.subr.bf16.mxu1 %v5348_v14 }
 0x4ee   :  { %v2148_v12 = vpop.f32.mrf.mxu0  ;;  %v2189_v17 = vpop.f32.mrf.mxu1 }
 0x4ef   :  { %v2196_v29 = vadd.f32 %v2148_v12, %v6830_v53  ;;  %v2198_v57 = vadd.f32 %v2189_v17, %v6833_v56  ;;  %v6845_v56 = vld [vmem:[#allocation86_spill] sm:$0xff] }
 0x4f0   :  { %v2150_v10 = vpop.f32.mrf.mxu0  ;;  %v2191_v11 = vpop.f32.mrf.mxu1 }
 0x4f1   :  { %v2200_v8 = vmul.f32 0.5, %v2196_v29  ;;  %v2197_v18 = vadd.f32 %v2150_v10, %v6831_v44  ;;  %v2199_v45 = vadd.f32 %v2191_v11, %v6832_v43  ;;  %v2202_v0 = vmul.f32 0.5, %v2198_v57  ;;  %v6836_v44 = vld [vmem:[#allocation16_spill] sm:$0xff]  ;;  %v6841_v43 = vld [vmem:[#allocation58_spill] sm:$0xff] }
 0x4f2   :  { %v2152_v61 = vpop.f32.mrf.mxu0  ;;  %v2193_v39 = vpop.f32.mrf.mxu1 }
 0x4f3   :  { %4057 = vtanh.f32 %v2200_v8  ;;  %v2201_v40 = vmul.f32 0.5, %v2197_v18  ;;  %v6835_v8 = vld [vmem:[#allocation15_spill] sm:$0xff]  ;;  %v6837_v18 = vld [vmem:[#allocation14_spill] sm:$0xff]  ;;  %v6839_v39 = vld [vmem:[#allocation56_spill] sm:$0xff] }
 0x4f4   :  { %v2153_v49 = vpop.f32.mrf.mxu0  ;;  %v2194_v50 = vpop.f32.mrf.mxu1  ;;  %v6838_v61 = vld [vmem:[#allocation55_spill] sm:$0xff] }
 0x4f5   :  { %4059 = vtanh.f32 %v2201_v40  ;;  %v6840_v40 = vld [vmem:[#allocation57_spill] sm:$0xff]  ;;  %v6843_v49 = vld [vmem:[#allocation60_spill] sm:$0xff] }
 0x4f6   :  { %4061 = vtanh.f32 %v2199_v45  ;;  %v6842_v45 = vld [vmem:[#allocation59_spill] sm:$0xff]  ;;  %v6844_v50 = vld [vmem:[#allocation61_spill] sm:$0xff] }
 0x4f7   :  { %4063 = vtanh.f32 %v2202_v0 }
 0x500   :  { %v4058_v5 = vpop.eup %4057 }
 0x501   :  { %v2206_v24 = vmul.f32 0.5, %v4058_v5 }
 0x502   :  { %v4060_v28 = vpop.eup %4059 }
 0x503   :  { %v2209_v31 = vadd.f32 0.5, %v2206_v24  ;;  %v2207_v47 = vmul.f32 0.5, %v4060_v28  ;;  %v4062_v51 = vpop.eup %4061  ;;  %v6846_v24 = vld [vmem:[#allocation64_spill] sm:$0xff] }
 0x504   :  { %v4064_v62 = vpop.eup %4063 }
 0x505   :  { %v2210_v52 = vadd.f32 0.5, %v2207_v47  ;;  %v2214_v55 = vmul.f32 %v4062_v51, %v2209_v31  ;;  %v2208_v48 = vmul.f32 0.5, %v4064_v62  ;;  %v6847_v47 = vld [vmem:[#allocation68_spill] sm:$0xff] }
 0x507   :  { %v2213_v58 = vmul.f32 %v2210_v52, %v5356_v33  ;;  %v2211_v53 = vadd.f32 0.5, %v2208_v48  ;;  %v6834_v33 = vld [vmem:[#allocation13_spill] sm:$0xff] }
 0x509   :  { %v5610_v23 = vadd.f32 %v2214_v55, %v2213_v58 }
 0x50b   :  { %4065 = vtanh.f32 %v5610_v23 }
 0x50e   :  { %v2252_v36 = vpop.f32.mrf.mxu0  ;;  %v5613_v25 = vpop.f32.mrf.mxu1 }
 0x50f   :  { %v2253_v57 = vadd.f32 %v2252_v36, %v6845_v56  ;;  %v6848_v36 = vld [vmem:[#allocation69_spill] sm:$0xff] }
 0x510   :  { %v2254_v34 = vpop.f32.mrf.mxu0  ;;  %v2295_v63 = vpop.f32.mrf.mxu1 }
 0x511   :  { %v2255_v28 = vadd.f32 %v2254_v34, %v5056_v42 }
 0x512   :  { %v2256_v35 = vpop.f32.mrf.mxu0  ;;  %v2297_v59 = vpop.f32.mrf.mxu1 }
 0x513   :  { %v2296_v59 = vadd.f32 %v2295_v63, %v5066_v54 }
 0x514   :  { %v2257_v12 = vpop.f32.mrf.mxu0  ;;  %v2298_v17 = vpop.f32.mrf.mxu1 }
 0x518   :  { %v4066_v29 = vpop.eup %4065 }
 0x519   :  { %v2217_v10 = vmul.f32 %v4066_v29, %v2211_v53  ;;  %v6849_v53 = vld [vmem:[#allocation70_spill] sm:$0xff]  ;;  %v6850_v29 = vld [vmem:[#allocation39_spill] sm:$0xff] }
 0x51a   :  { %v2294_v63 = vadd.f32 %v5613_v25, %v6850_v29  ;;  %v6858_v25 = vld [vmem:[#allocation78_spill] sm:$0xff] }
 0x51b   :  { %v2410_v11 = vpack.c.bf16 %v2217_v10, %v2217_v10  ;;  %v6851_v10 = vld [vmem:[#allocation71_spill] sm:$0xff] }
 0x51d   :  { %2444 = vmatmul.mubr.bf16.vlgmr.msra.gmra.mxu0 %v2410_v11  ;;  %2485 = vmatmul.mubr.bf16.vlgmr.msra.gmra.mxu1 %v2410_v11 }
 0x51e   :  { %2516 = vmatpush1.bf16.msra.mxu0 %v5367_v13  ;;  %2557 = vmatpush1.bf16.msra.mxu1 %v5370_v30 }
 0x51f   :  { %2517 = vmatprep.subr.bf16.mxu0 %v5373_v22  ;;  %2558 = vmatprep.subr.bf16.mxu1 %v5376_v21 }
 0x520   :  { %2547 = vmatprep.mubr.bf16.mxu0 %v6586_v27  ;;  %2588 = vmatprep.mubr.bf16.mxu1 %v6586_v27 }
 0x522   :  { %2518 = vmatpush1.bf16.msra.mxu0 %v5381_v46  ;;  %2559 = vmatpush1.bf16.msra.mxu1 %v6834_v33 }
 0x523   :  { %2519 = vmatprep.subr.bf16.mxu0 %v6835_v8  ;;  %2560 = vmatprep.subr.bf16.mxu1 %v6836_v44 }
 0x526   :  { %2520 = vmatpush1.bf16.msra.mxu0 %v6837_v18  ;;  %2561 = vmatpush1.bf16.msra.mxu1 %v6838_v61 }
 0x527   :  { %2521 = vmatprep.subr.bf16.mxu0 %v6839_v39  ;;  %2562 = vmatprep.subr.bf16.mxu1 %v6840_v40 }
 0x52a   :  { %2522 = vmatpush1.bf16.msra.mxu0 %v6841_v43  ;;  %2563 = vmatpush1.bf16.msra.mxu1 %v6842_v45 }
 0x52b   :  { %2523 = vmatprep.subr.bf16.mxu0 %v6843_v49  ;;  %2564 = vmatprep.subr.bf16.mxu1 %v6844_v50 }
 0x52e   :  { %v2335_v0 = vpop.f32.mrf.mxu0  ;;  %v2376_v5 = vpop.f32.mrf.mxu1  ;;  %2524 = vmatpush1.bf16.msra.mxu0 %v6846_v24  ;;  %2565 = vmatpush1.bf16.msra.mxu1 %v5421_v1 }
 0x52f   :  { %v2383_v31 = vadd.f32 %v2335_v0, %v2253_v57  ;;  %2525 = vmatprep.subr.bf16.mxu0 %v5425_v60  ;;  %2566 = vmatprep.subr.bf16.mxu1 %v6847_v47  ;;  %v6852_v57 = vld [vmem:[#allocation72_spill] sm:$0xff]  ;;  %v2385_v0 = vadd.f32 %v2376_v5, %v2294_v63 }
 0x530   :  { %v2337_v51 = vpop.f32.mrf.mxu0  ;;  %v2378_v52 = vpop.f32.mrf.mxu1 }
 0x531   :  { %v2387_v55 = vmul.f32 0.5, %v2383_v31  ;;  %v2384_v58 = vadd.f32 %v2337_v51, %v2255_v28  ;;  %v2386_v17 = vadd.f32 %v2378_v52, %v2296_v59  ;;  %v6853_v28 = vld [vmem:[#allocation73_spill] sm:$0xff]  ;;  %v6854_v31 = vld [vmem:[#allocation74_spill] sm:$0xff]  ;;  %v6855_v51 = vld [vmem:[#allocation75_spill] sm:$0xff] }
 0x532   :  { %v2339_v62 = vpop.f32.mrf.mxu0  ;;  %v2380_v35 = vpop.f32.mrf.mxu1  ;;  %2526 = vmatpush1.bf16.msra.mxu0 %v5431_v32  ;;  %2567 = vmatpush1.bf16.msra.mxu1 %v6848_v36  ;;  %v6856_v52 = vld [vmem:[#allocation76_spill] sm:$0xff]  ;;  %v6859_v59 = vld [vmem:[#allocation79_spill] sm:$0xff] }
 0x533   :  { %4067 = vtanh.f32 %v2387_v55  ;;  %v2388_v48 = vmul.f32 0.5, %v2384_v58  ;;  %2527 = vmatprep.subr.bf16.mxu0 %v5439_v6  ;;  %2568 = vmatprep.subr.bf16.mxu1 %v5442_v4  ;;  %v2389_v55 = vmul.f32 0.5, %v2385_v0  ;;  %v6857_v58 = vld [vmem:[#allocation77_spill] sm:$0xff]  ;;  %v6862_v0 = vld [vmem:[#allocation82_spill] sm:$0xff] }
 0x534   :  { %v2340_v34 = vpop.f32.mrf.mxu0  ;;  %v2381_v12 = vpop.f32.mrf.mxu1 }
 0x535   :  { %4069 = vtanh.f32 %v2388_v48  ;;  %v6860_v34 = vld [vmem:[#allocation80_spill] sm:$0xff]  ;;  %v6861_v12 = vld [vmem:[#allocation81_spill] sm:$0xff] }
 0x536   :  { %2528 = vmatpush1.bf16.msra.mxu0 %v5445_v16  ;;  %2569 = vmatpush1.bf16.msra.mxu1 %v5448_v9  ;;  %4071 = vtanh.f32 %v2386_v17 }
 0x537   :  { %2529 = vmatprep.subr.bf16.mxu0 %v5451_v3  ;;  %2570 = vmatprep.subr.bf16.mxu1 %v6849_v53  ;;  %4073 = vtanh.f32 %v2389_v55  ;;  %v6865_v55 = vld [vmem:[#allocation40_spill] sm:$0xff] }
 0x53a   :  { %2530 = vmatpush1.bf16.msra.mxu0 %v6851_v10  ;;  %2571 = vmatpush1.bf16.msra.mxu1 %v6852_v57 }
 0x53b   :  { %2598 = vmatprep.subr.bf16.mxu0 %v6853_v28  ;;  %2639 = vmatprep.subr.bf16.mxu1 %v6854_v31 }
 0x53d   :  { %2548 = vmatmul.mubr.bf16.vlgmr.msra.gmra.mxu0 %v2410_v11  ;;  %2589 = vmatmul.mubr.bf16.vlgmr.msra.gmra.mxu1 %v2410_v11 }
 0x53e   :  { %2599 = vmatpush1.bf16.msra.mxu0 %v6855_v51  ;;  %2640 = vmatpush1.bf16.msra.mxu1 %v6856_v52 }
 0x53f   :  { %2600 = vmatprep.subr.bf16.mxu0 %v6857_v58  ;;  %2641 = vmatprep.subr.bf16.mxu1 %v6858_v25 }
 0x540   :  { %v4068_v62 = vpop.eup %4067  ;;  %2630 = vmatprep.mubr.bf16.mxu0 %v6586_v27  ;;  %2671 = vmatprep.mubr.bf16.mxu1 %v6586_v27 }
 0x541   :  { %v2393_v5 = vmul.f32 0.5, %v4068_v62 }
 0x542   :  { %v4070_v35 = vpop.eup %4069  ;;  %2601 = vmatpush1.bf16.msra.mxu0 %v6859_v59  ;;  %2642 = vmatpush1.bf16.msra.mxu1 %v5490_v2  ;;  %v6863_v59 = vld [vmem:[#allocation85_spill] sm:$0xff] }
 0x543   :  { %v2396_v11 = vadd.f32 0.5, %v2393_v5  ;;  %v2394_v48 = vmul.f32 0.5, %v4070_v35  ;;  %2602 = vmatprep.subr.bf16.mxu0 %v6860_v34  ;;  %2643 = vmatprep.subr.bf16.mxu1 %v6861_v12  ;;  %v4072_v63 = vpop.eup %4071  ;;  %v6866_v35 = vld [vmem:[#allocation41_spill] sm:$0xff] }
 0x545   :  { %v2397_v17 = vadd.f32 0.5, %v2394_v48  ;;  %v2401_v25 = vmul.f32 %v4072_v63, %v2396_v11  ;;  %v6867_v48 = vld [vmem:[#allocation42_spill] sm:$0xff]  ;;  %v6873_v63 = vld [vmem:[#allocation48_spill] sm:$0xff] }
 0x546   :  { %2603 = vmatpush1.bf16.msra.mxu0 %v6862_v0  ;;  %2644 = vmatpush1.bf16.msra.mxu1 %v5502_v7  ;;  %v6868_v0 = vld [vmem:[#allocation43_spill] sm:$0xff]  ;;  %v6869_v7 = vld [vmem:[#allocation44_spill] sm:$0xff]  ;;  %v6871_v11 = vld [vmem:[#allocation46_spill] sm:$0xff] }
 0x547   :  { %v2400_v62 = vmul.f32 %v2397_v17, %v5512_v37  ;;  %2604 = vmatprep.subr.bf16.mxu0 %v5506_v15  ;;  %2645 = vmatprep.subr.bf16.mxu1 %v6863_v59  ;;  %v6870_v37 = vld [vmem:[#allocation45_spill] sm:$0xff]  ;;  %v6872_v17 = vld [vmem:[#allocation47_spill] sm:$0xff] }
 0x548   :  { %v6876_v59 = vld [vmem:[#allocation51_spill] sm:$0xff] }
 0x549   :  { %v5669_v5 = vadd.f32 %v2401_v25, %v2400_v62  ;;  %v4074_v25 = vpop.eup %4073  ;;  %v6874_v62 = vld [vmem:[#allocation49_spill] sm:$0xff] }
 0x54a   :  { %2605 = vmatpush1.bf16.msra.mxu0 %v6865_v55  ;;  %2646 = vmatpush1.bf16.msra.mxu1 %v6866_v35  ;;  %v2395_v35 = vmul.f32 0.5, %v4074_v25  ;;  %v6875_v55 = vld [vmem:[#allocation50_spill] sm:$0xff] }
 0x54b   :  { %6864 = vst [vmem:[#allocation66_spill] sm:$0xff] %v5669_v5  ;;  %4075 = vtanh.f32 %v5669_v5  ;;  %2606 = vmatprep.subr.bf16.mxu0 %v6867_v48  ;;  %2647 = vmatprep.subr.bf16.mxu1 %v6868_v0  ;;  %v6877_v48 = vld [vmem:[#allocation52_spill] sm:$0xff]  ;;  %v6878_v0 = vld [vmem:[#allocation53_spill] sm:$0xff] }
 0x54e   :  { %2607 = vmatpush1.bf16.msra.mxu0 %v6869_v7  ;;  %2648 = vmatpush1.bf16.msra.mxu1 %v6870_v37  ;;  %v2398_v7 = vadd.f32 0.5, %v2395_v35  ;;  %v5696_v35 = vld [vmem:[#allocation5 + $0xe0] ss:$16 sps:$4 sm:$0xff]  }
 0x54f   :  { %2608 = vmatprep.subr.bf16.mxu0 %v6871_v11  ;;  %2649 = vmatprep.subr.bf16.mxu1 %v6872_v17  ;;  %6881 = vst [vmem:[#allocation88_spill] sm:$0xff] %v5696_v35 }
 0x552   :  { %2609 = vmatpush1.bf16.msra.mxu0 %v6873_v63  ;;  %2650 = vmatpush1.bf16.msra.mxu1 %v6874_v62  ;;  %v5690_v62 = vld [vmem:[#allocation5 + $0xe4] ss:$16 sps:$4 sm:$0xff]  }
 0x553   :  { %2610 = vmatprep.subr.bf16.mxu0 %v6875_v55  ;;  %2651 = vmatprep.subr.bf16.mxu1 %v6876_v59  ;;  %6879 = vst [vmem:[#allocation67_spill] sm:$0xff] %v5690_v62  ;;  %v5693_v59 = vld [vmem:[#allocation5 + $0xec] ss:$16 sps:$4 sm:$0xff]  }
 0x554   :  { %6880 = vst [vmem:[#allocation87_spill] sm:$0xff] %v5693_v59  ;;  %v6913_v55 = vld [vmem:[#allocation28_spill] sm:$0xff] }
 0x556   :  { %2611 = vmatpush1.bf16.msra.mxu0 %v6877_v48  ;;  %2652 = vmatpush1.bf16.msra.mxu1 %v6878_v0 }
 0x557   :  { %2612 = vmatprep.subr.bf16.mxu0 %v5557_v38  ;;  %2653 = vmatprep.subr.bf16.mxu1 %v5560_v41 }
 0x558   :  { %v4076_v17 = vpop.eup %4075 }
 0x559   :  { %v2404_v11 = vmul.f32 %v4076_v17, %v2398_v7  ;;  %v5699_v7 = vld [vmem:[#allocation5 + $0xe8] ss:$16 sps:$4 sm:$0xff]   ;;  %v5702_v17 = vld [vmem:[#allocation5 + $0xc4] ss:$16 sps:$4 sm:$0xff]  }
 0x55a   :  { %2613 = vmatpush1.bf16.msra.mxu0 %v5563_v26  ;;  %2654 = vmatpush1.bf16.msra.mxu1 %v5566_v19  ;;  %6882 = vst [vmem:[#allocation89_spill] sm:$0xff] %v5699_v7  ;;  %6883 = vst [vmem:[#allocation90_spill] sm:$0xff] %v5702_v17 }
 0x55b   :  { %v2597_v25 = vpack.c.bf16 %v2404_v11, %v2404_v11  ;;  %2708 = vmatprep.subr.bf16.mxu0 %v5690_v62  ;;  %2749 = vmatprep.subr.bf16.mxu1 %v5693_v59  ;;  %v5705_v11 = vld [vmem:[#allocation5 + $0xcc] ss:$16 sps:$4 sm:$0xff]   ;;  %v5725_v59 = vld [vmem:[#allocation5 + $0xa8] ss:$16 sps:$4 sm:$0xff]   ;;  %v6911_v62 = vld [vmem:[#allocation25_spill] sm:$0xff] }
 0x55c   :  { %6884 = vst [vmem:[#allocation91_spill] sm:$0xff] %v5705_v11  ;;  %6890 = vst [vmem:[#allocation97_spill] sm:$0xff] %v5725_v59 }
 0x55d   :  { %2631 = vmatmul.mubr.bf16.vlgmr.msra.gmra.mxu0 %v2597_v25  ;;  %2672 = vmatmul.mubr.bf16.vlgmr.msra.gmra.mxu1 %v2597_v25  ;;  %v5710_v25 = vld [vmem:[#allocation5 + $0xc0] ss:$16 sps:$4 sm:$0xff]  }
 0x55e   :  { %2709 = vmatpush1.bf16.msra.mxu0 %v5696_v35  ;;  %2750 = vmatpush1.bf16.msra.mxu1 %v5699_v7  ;;  %6885 = vst [vmem:[#allocation92_spill] sm:$0xff] %v5710_v25  ;;  %v5713_v35 = vld [vmem:[#allocation5 + $0xc8] ss:$16 sps:$4 sm:$0xff]   ;;  %v5716_v7 = vld [vmem:[#allocation5 + $0xa4] ss:$16 sps:$4 sm:$0xff]  }
 0x55f   :  { %2710 = vmatprep.subr.bf16.mxu0 %v5702_v17  ;;  %2751 = vmatprep.subr.bf16.mxu1 %v5705_v11  ;;  %6886 = vst [vmem:[#allocation93_spill] sm:$0xff] %v5713_v35  ;;  %6887 = vst [vmem:[#allocation94_spill] sm:$0xff] %v5716_v7  ;;  %v5719_v17 = vld [vmem:[#allocation5 + $0xac] ss:$16 sps:$4 sm:$0xff]   ;;  %v5722_v11 = vld [vmem:[#allocation5 + $0xa0] ss:$16 sps:$4 sm:$0xff]  }
 0x560   :  { %2740 = vmatprep.mubr.bf16.mxu0 %v6586_v27  ;;  %2781 = vmatprep.mubr.bf16.mxu1 %v6586_v27  ;;  %6888 = vst [vmem:[#allocation95_spill] sm:$0xff] %v5719_v17  ;;  %6889 = vst [vmem:[#allocation96_spill] sm:$0xff] %v5722_v11 }
 0x562   :  { %2711 = vmatpush1.bf16.msra.mxu0 %v5710_v25  ;;  %2752 = vmatpush1.bf16.msra.mxu1 %v5713_v35  ;;  %v5728_v25 = vld [vmem:[#allocation5 + $0x84] ss:$16 sps:$4 sm:$0xff]   ;;  %v5731_v35 = vld [vmem:[#allocation5 + $0x8c] ss:$16 sps:$4 sm:$0xff]  }
 0x563   :  { %2712 = vmatprep.subr.bf16.mxu0 %v5716_v7  ;;  %2753 = vmatprep.subr.bf16.mxu1 %v5719_v17  ;;  %6891 = vst [vmem:[#allocation98_spill] sm:$0xff] %v5728_v25  ;;  %6892 = vst [vmem:[#allocation17_spill] sm:$0xff] %v5731_v35  ;;  %v5734_v7 = vld [vmem:[#allocation5 + $0x80] ss:$16 sps:$4 sm:$0xff]   ;;  %v5737_v17 = vld [vmem:[#allocation5 + $0x88] ss:$16 sps:$4 sm:$0xff]  }
 0x564   :  { %6893 = vst [vmem:[#allocation19_spill] sm:$0xff] %v5734_v7  ;;  %6894 = vst [vmem:[#allocation20_spill] sm:$0xff] %v5737_v17 }
 0x566   :  { %2713 = vmatpush1.bf16.msra.mxu0 %v5722_v11  ;;  %2754 = vmatpush1.bf16.msra.mxu1 %v5725_v59  ;;  %v5740_v11 = vld [vmem:[#allocation5 + $0x64] ss:$16 sps:$4 sm:$0xff]   ;;  %v5743_v59 = vld [vmem:[#allocation5 + $0x6c] ss:$16 sps:$4 sm:$0xff]  }
 0x567   :  { %2714 = vmatprep.subr.bf16.mxu0 %v5728_v25  ;;  %2755 = vmatprep.subr.bf16.mxu1 %v5731_v35  ;;  %6895 = vst [vmem:[#allocation18_spill] sm:$0xff] %v5740_v11  ;;  %6896 = vst [vmem:[#allocation21_spill] sm:$0xff] %v5743_v59  ;;  %v5746_v25 = vld [vmem:[#allocation5 + $0x60] ss:$16 sps:$4 sm:$0xff]   ;;  %v5749_v35 = vld [vmem:[#allocation5 + $0x68] ss:$16 sps:$4 sm:$0xff]  }
 0x568   :  { %6897 = vst [vmem:[#allocation23_spill] sm:$0xff] %v5746_v25  ;;  %6898 = vst [vmem:[#allocation24_spill] sm:$0xff] %v5749_v35 }
 0x56a   :  { %2715 = vmatpush1.bf16.msra.mxu0 %v5734_v7  ;;  %2756 = vmatpush1.bf16.msra.mxu1 %v5737_v17  ;;  %v5752_v7 = vld [vmem:[#allocation5 + $0x44] ss:$16 sps:$4 sm:$0xff]   ;;  %v5755_v17 = vld [vmem:[#allocation5 + $0x4c] ss:$16 sps:$4 sm:$0xff]  }
 0x56b   :  { %2716 = vmatprep.subr.bf16.mxu0 %v5740_v11  ;;  %2757 = vmatprep.subr.bf16.mxu1 %v5743_v59  ;;  %6899 = vst [vmem:[#allocation22_spill] sm:$0xff] %v5752_v7  ;;  %6900 = vst [vmem:[#allocation13_spill] sm:$0xff] %v5755_v17  ;;  %v5758_v11 = vld [vmem:[#allocation5 + $0x40] ss:$16 sps:$4 sm:$0xff]   ;;  %v5761_v59 = vld [vmem:[#allocation5 + $0x48] ss:$16 sps:$4 sm:$0xff]  }
 0x56c   :  { %6901 = vst [vmem:[#allocation15_spill] sm:$0xff] %v5758_v11  ;;  %6902 = vst [vmem:[#allocation16_spill] sm:$0xff] %v5761_v59 }
 0x56e   :  { %2717 = vmatpush1.bf16.msra.mxu0 %v5746_v25  ;;  %2758 = vmatpush1.bf16.msra.mxu1 %v5749_v35  ;;  %v5764_v25 = vld [vmem:[#allocation5 + $0x24] ss:$16 sps:$4 sm:$0xff]   ;;  %v5767_v35 = vld [vmem:[#allocation5 + $0x2c] ss:$16 sps:$4 sm:$0xff]  }
 0x56f   :  { %2718 = vmatprep.subr.bf16.mxu0 %v5752_v7  ;;  %2759 = vmatprep.subr.bf16.mxu1 %v5755_v17  ;;  %6903 = vst [vmem:[#allocation14_spill] sm:$0xff] %v5764_v25  ;;  %6904 = vst [vmem:[#allocation55_spill] sm:$0xff] %v5767_v35  ;;  %v5770_v7 = vld [vmem:[#allocation5 + $0x20] ss:$16 sps:$4 sm:$0xff]   ;;  %v5773_v17 = vld [vmem:[#allocation5 + $0x28] ss:$16 sps:$4 sm:$0xff]  }
 0x570   :  { %6905 = vst [vmem:[#allocation56_spill] sm:$0xff] %v5770_v7  ;;  %6906 = vst [vmem:[#allocation57_spill] sm:$0xff] %v5773_v17 }
 0x572   :  { %2719 = vmatpush1.bf16.msra.mxu0 %v5758_v11  ;;  %2760 = vmatpush1.bf16.msra.mxu1 %v5761_v59  ;;  %v5776_v11 = vld [vmem:[#allocation5 + $0x4] ss:$16 sps:$4 sm:$0xff]   ;;  %v5779_v59 = vld [vmem:[#allocation5 + $0xc] ss:$16 sps:$4 sm:$0xff]  }
 0x573   :  { %2720 = vmatprep.subr.bf16.mxu0 %v5764_v25  ;;  %2761 = vmatprep.subr.bf16.mxu1 %v5767_v35  ;;  %6907 = vst [vmem:[#allocation58_spill] sm:$0xff] %v5776_v11  ;;  %6908 = vst [vmem:[#allocation59_spill] sm:$0xff] %v5779_v59  ;;  %v5782_v25 = vld [vmem:[#allocation5] ss:$16 sps:$4 sm:$0xff]   ;;  %v5785_v35 = vld [vmem:[#allocation5 + $0x8] ss:$16 sps:$4 sm:$0xff]  }
 0x574   :  { %6909 = vst [vmem:[#allocation60_spill] sm:$0xff] %v5782_v25  ;;  %6910 = vst [vmem:[#allocation61_spill] sm:$0xff] %v5785_v35 }
 0x576   :  { %2721 = vmatpush1.bf16.msra.mxu0 %v5770_v7  ;;  %2762 = vmatpush1.bf16.msra.mxu1 %v5773_v17 }
 0x577   :  { %2722 = vmatprep.subr.bf16.mxu0 %v5776_v11  ;;  %2763 = vmatprep.subr.bf16.mxu1 %v5779_v59  ;;  %v6912_v59 = vld [vmem:[#allocation27_spill] sm:$0xff] }
 0x57a   :  { %2723 = vmatpush1.bf16.msra.mxu0 %v5782_v25  ;;  %2764 = vmatpush1.bf16.msra.mxu1 %v5785_v35 }
 0x57b   :  { %2812 = vmatprep.subr.bf16.mxu0 %v5345_v20  ;;  %2853 = vmatprep.subr.bf16.mxu1 %v5348_v14  ;;  %v6914_v20 = vld [vmem:[#allocation26_spill] sm:$0xff] }
 0x5dd   :  { %v2445_v17 = vpop.f32.mrf.mxu0  ;;  %v2486_v7 = vpop.f32.mrf.mxu1 }
 0x5de   :  { %v2493_v11 = vadd.f32 %v2445_v17, %v6911_v62  ;;  %v2495_v14 = vadd.f32 %v2486_v7, %v6914_v20 }
 0x5df   :  { %v2447_v19 = vpop.f32.mrf.mxu0  ;;  %v2488_v26 = vpop.f32.mrf.mxu1 }
 0x5e0   :  { %v2497_v41 = vmul.f32 0.5, %v2493_v11  ;;  %v2494_v38 = vadd.f32 %v2447_v19, %v6912_v59  ;;  %v2496_v63 = vadd.f32 %v2488_v26, %v6913_v55  ;;  %v2499_v15 = vmul.f32 0.5, %v2495_v14 }
 0x5e1   :  { %v2449_v0 = vpop.f32.mrf.mxu0  ;;  %v2490_v48 = vpop.f32.mrf.mxu1 }
 0x5e2   :  { %4077 = vtanh.f32 %v2497_v41  ;;  %v2498_v25 = vmul.f32 0.5, %v2494_v38 }
 0x5e3   :  { %v2450_v35 = vpop.f32.mrf.mxu0  ;;  %v2491_v37 = vpop.f32.mrf.mxu1 }
 0x5e4   :  { %4079 = vtanh.f32 %v2498_v25 }
 0x5e5   :  { %4081 = vtanh.f32 %v2496_v63 }
 0x5e6   :  { %4083 = vtanh.f32 %v2499_v15 }
 0x5ef   :  { %v4078_v5 = vpop.eup %4077 }
 0x5f0   :  { %v2503_v62 = vmul.f32 0.5, %v4078_v5 }
 0x5f1   :  { %v4080_v17 = vpop.eup %4079 }
 0x5f2   :  { %v2506_v12 = vadd.f32 0.5, %v2503_v62  ;;  %v2504_v11 = vmul.f32 0.5, %v4080_v17  ;;  %v4082_v19 = vpop.eup %4081  ;;  %v6923_v17 = vld [vmem:[#allocation40_spill] sm:$0xff] }
 0x5f3   :  { %v4084_v48 = vpop.eup %4083 }
 0x5f4   :  { %v2507_v59 = vadd.f32 0.5, %v2504_v11  ;;  %v2511_v0 = vmul.f32 %v4082_v19, %v2506_v12  ;;  %v2505_v7 = vmul.f32 0.5, %v4084_v48  ;;  %v6925_v11 = vld [vmem:[#allocation42_spill] sm:$0xff]  ;;  %v6926_v19 = vld [vmem:[#allocation43_spill] sm:$0xff]  ;;  %v6931_v48 = vld [vmem:[#allocation48_spill] sm:$0xff] }
 0x5f6   :  { %v2510_v38 = vmul.f32 %v2507_v59, %v5610_v23  ;;  %v2508_v20 = vadd.f32 0.5, %v2505_v7  ;;  %v6927_v59 = vld [vmem:[#allocation44_spill] sm:$0xff] }
 0x5f7   :  { %v6935_v7 = vld [vmem:[#allocation52_spill] sm:$0xff] }
 0x5f8   :  { %v5795_v41 = vadd.f32 %v2511_v0, %v2510_v38  ;;  %v6928_v0 = vld [vmem:[#allocation45_spill] sm:$0xff]  ;;  %v6929_v38 = vld [vmem:[#allocation46_spill] sm:$0xff] }
 0x5fa   :  { %4085 = vtanh.f32 %v5795_v41 }
 0x5fd   :  { %v2549_v26 = vpop.f32.mrf.mxu0  ;;  %v5798_v55 = vpop.f32.mrf.mxu1 }
 0x5ff   :  { %v2551_v37 = vpop.f32.mrf.mxu0  ;;  %v2592_v63 = vpop.f32.mrf.mxu1 }
 0x601   :  { %v2553_v5 = vpop.f32.mrf.mxu0  ;;  %v2594_v35 = vpop.f32.mrf.mxu1 }
 0x602   :  { %v6933_v5 = vld [vmem:[#allocation50_spill] sm:$0xff]  ;;  %v6934_v35 = vld [vmem:[#allocation51_spill] sm:$0xff] }
 0x603   :  { %v2554_v15 = vpop.f32.mrf.mxu0  ;;  %v2595_v25 = vpop.f32.mrf.mxu1 }
 0x604   :  { %v6936_v15 = vld [vmem:[#allocation53_spill] sm:$0xff] }
 0x607   :  { %v4086_v14 = vpop.eup %4085 }
 0x608   :  { %v2514_v12 = vmul.f32 %v4086_v14, %v2508_v20  ;;  %v6937_v20 = vld [vmem:[#allocation54_spill] sm:$0xff] }
 0x609   :  { %v6938_v14 = vld [vmem:[#allocation62_spill] sm:$0xff] }
 0x60a   :  { %v2707_v62 = vpack.c.bf16 %v2514_v12, %v2514_v12 }
 0x60c   :  { %2741 = vmatmul.mubr.bf16.vlgmr.msra.gmra.mxu0 %v2707_v62  ;;  %2782 = vmatmul.mubr.bf16.vlgmr.msra.gmra.mxu1 %v2707_v62 }
 0x60d   :  { %2813 = vmatpush1.bf16.msra.mxu0 %v5367_v13  ;;  %2854 = vmatpush1.bf16.msra.mxu1 %v5370_v30  ;;  %v2550_v13 = vadd.f32 %v2549_v26, %v6845_v56  ;;  %v6930_v26 = vld [vmem:[#allocation47_spill] sm:$0xff] }
 0x60e   :  { %2814 = vmatprep.subr.bf16.mxu0 %v5373_v22  ;;  %2855 = vmatprep.subr.bf16.mxu1 %v5376_v21  ;;  %v2552_v21 = vadd.f32 %v2551_v37, %v5056_v42  ;;  %v6932_v37 = vld [vmem:[#allocation49_spill] sm:$0xff] }
 0x60f   :  { %2844 = vmatprep.mubr.bf16.mxu0 %v6586_v27  ;;  %2885 = vmatprep.mubr.bf16.mxu1 %v6586_v27 }
 0x611   :  { %2815 = vmatpush1.bf16.msra.mxu0 %v5381_v46  ;;  %2856 = vmatpush1.bf16.msra.mxu1 %v6834_v33 }
 0x612   :  { %2816 = vmatprep.subr.bf16.mxu0 %v6835_v8  ;;  %2857 = vmatprep.subr.bf16.mxu1 %v6836_v44 }
 0x615   :  { %2817 = vmatpush1.bf16.msra.mxu0 %v6837_v18  ;;  %2858 = vmatpush1.bf16.msra.mxu1 %v6838_v61 }
 0x616   :  { %2818 = vmatprep.subr.bf16.mxu0 %v6839_v39  ;;  %2859 = vmatprep.subr.bf16.mxu1 %v6840_v40  ;;  %v2593_v39 = vadd.f32 %v2592_v63, %v5066_v54 }
 0x619   :  { %2819 = vmatpush1.bf16.msra.mxu0 %v6841_v43  ;;  %2860 = vmatpush1.bf16.msra.mxu1 %v6842_v45 }
 0x61a   :  { %2820 = vmatprep.subr.bf16.mxu0 %v6843_v49  ;;  %2861 = vmatprep.subr.bf16.mxu1 %v6844_v50  ;;  %v6916_v49 = vld [vmem:[#allocation79_spill] sm:$0xff] }
 0x61d   :  { %v2632_v30 = vpop.f32.mrf.mxu0  ;;  %v2673_v22 = vpop.f32.mrf.mxu1  ;;  %2821 = vmatpush1.bf16.msra.mxu0 %v6846_v24  ;;  %2862 = vmatpush1.bf16.msra.mxu1 %v5421_v1 }
 0x61e   :  { %v2680_v46 = vadd.f32 %v2632_v30, %v2550_v13  ;;  %2822 = vmatprep.subr.bf16.mxu0 %v5425_v60  ;;  %2863 = vmatprep.subr.bf16.mxu1 %v6847_v47  ;;  %v6917_v47 = vld [vmem:[#allocation81_spill] sm:$0xff]  ;;  %v6939_v13 = vld [vmem:[#allocation63_spill] sm:$0xff] }
 0x61f   :  { %v2634_v23 = vpop.f32.mrf.mxu0  ;;  %v2675_v33 = vpop.f32.mrf.mxu1  ;;  %v6940_v30 = vld [vmem:[#allocation65_spill] sm:$0xff] }
 0x620   :  { %v2684_v8 = vmul.f32 0.5, %v2680_v46  ;;  %v2681_v44 = vadd.f32 %v2634_v23, %v2552_v21  ;;  %v2683_v43 = vadd.f32 %v2675_v33, %v2593_v39  ;;  %v6941_v21 = vld [vmem:[#allocation67_spill] sm:$0xff]  ;;  %v6943_v23 = vld [vmem:[#allocation88_spill] sm:$0xff]  ;;  %v6944_v33 = vld [vmem:[#allocation89_spill] sm:$0xff] }
 0x621   :  { %v2636_v18 = vpop.f32.mrf.mxu0  ;;  %v2677_v61 = vpop.f32.mrf.mxu1  ;;  %2823 = vmatpush1.bf16.msra.mxu0 %v5431_v32  ;;  %2864 = vmatpush1.bf16.msra.mxu1 %v6848_v36  ;;  %v2591_v32 = vadd.f32 %v5798_v55, %v6850_v29  ;;  %v6942_v46 = vld [vmem:[#allocation87_spill] sm:$0xff]  ;;  %v6949_v39 = vld [vmem:[#allocation94_spill] sm:$0xff] }
 0x622   :  { %4087 = vtanh.f32 %v2684_v8  ;;  %v2685_v1 = vmul.f32 0.5, %v2681_v44  ;;  %2824 = vmatprep.subr.bf16.mxu0 %v5439_v6  ;;  %2865 = vmatprep.subr.bf16.mxu1 %v5442_v4  ;;  %v6915_v4 = vld [vmem:[#allocation78_spill] sm:$0xff]  ;;  %v6946_v44 = vld [vmem:[#allocation91_spill] sm:$0xff]  ;;  %v6947_v18 = vld [vmem:[#allocation92_spill] sm:$0xff] }
 0x623   :  { %v2637_v60 = vpop.f32.mrf.mxu0  ;;  %v2678_v40 = vpop.f32.mrf.mxu1  ;;  %v2682_v6 = vadd.f32 %v2673_v22, %v2591_v32  ;;  %v6945_v8 = vld [vmem:[#allocation90_spill] sm:$0xff]  ;;  %v6948_v61 = vld [vmem:[#allocation93_spill] sm:$0xff] }
 0x624   :  { %4089 = vtanh.f32 %v2685_v1  ;;  %v6950_v1 = vld [vmem:[#allocation95_spill] sm:$0xff]  ;;  %v6951_v60 = vld [vmem:[#allocation96_spill] sm:$0xff]  ;;  %v6952_v40 = vld [vmem:[#allocation97_spill] sm:$0xff] }
 0x625   :  { %2825 = vmatpush1.bf16.msra.mxu0 %v5445_v16  ;;  %2866 = vmatpush1.bf16.msra.mxu1 %v5448_v9  ;;  %4091 = vtanh.f32 %v2683_v43  ;;  %v2686_v9 = vmul.f32 0.5, %v2682_v6  ;;  %v6953_v43 = vld [vmem:[#allocation98_spill] sm:$0xff]  ;;  %v6954_v32 = vld [vmem:[#allocation17_spill] sm:$0xff]  ;;  %v6955_v6 = vld [vmem:[#allocation19_spill] sm:$0xff] }
 0x626   :  { %2826 = vmatprep.subr.bf16.mxu0 %v5451_v3  ;;  %2867 = vmatprep.subr.bf16.mxu1 %v6849_v53 }
 0x627   :  { %4093 = vtanh.f32 %v2686_v9  ;;  %v6956_v9 = vld [vmem:[#allocation20_spill] sm:$0xff] }
 0x629   :  { %2827 = vmatpush1.bf16.msra.mxu0 %v6851_v10  ;;  %2868 = vmatpush1.bf16.msra.mxu1 %v6852_v57  ;;  %v6918_v10 = vld [vmem:[#allocation82_spill] sm:$0xff]  ;;  %v6919_v57 = vld [vmem:[#allocation83_spill] sm:$0xff] }
 0x62a   :  { %2895 = vmatprep.subr.bf16.mxu0 %v6853_v28  ;;  %2936 = vmatprep.subr.bf16.mxu1 %v6854_v31  ;;  %v6920_v28 = vld [vmem:[#allocation66_spill] sm:$0xff] }
 0x62c   :  { %2845 = vmatmul.mubr.bf16.vlgmr.msra.gmra.mxu0 %v2707_v62  ;;  %2886 = vmatmul.mubr.bf16.vlgmr.msra.gmra.mxu1 %v2707_v62 }
 0x62d   :  { %2896 = vmatpush1.bf16.msra.mxu0 %v6855_v51  ;;  %2937 = vmatpush1.bf16.msra.mxu1 %v6856_v52  ;;  %v6921_v52 = vld [vmem:[#allocation84_spill] sm:$0xff] }
 0x62e   :  { %2897 = vmatprep.subr.bf16.mxu0 %v6857_v58  ;;  %2938 = vmatprep.subr.bf16.mxu1 %v6915_v4  ;;  %v6922_v58 = vld [vmem:[#allocation85_spill] sm:$0xff]  ;;  %v6957_v4 = vld [vmem:[#allocation18_spill] sm:$0xff] }
 0x62f   :  { %v4088_v16 = vpop.eup %4087  ;;  %2927 = vmatprep.mubr.bf16.mxu0 %v6586_v27  ;;  %2968 = vmatprep.mubr.bf16.mxu1 %v6586_v27 }
 0x630   :  { %v2690_v3 = vmul.f32 0.5, %v4088_v16  ;;  %v6958_v16 = vld [vmem:[#allocation21_spill] sm:$0xff] }
 0x631   :  { %v4090_v45 = vpop.eup %4089  ;;  %2898 = vmatpush1.bf16.msra.mxu0 %v6916_v49  ;;  %2939 = vmatpush1.bf16.msra.mxu1 %v5490_v2  ;;  %v6961_v49 = vld [vmem:[#allocation22_spill] sm:$0xff] }
 0x632   :  { %v2693_v50 = vadd.f32 0.5, %v2690_v3  ;;  %v2691_v24 = vmul.f32 0.5, %v4090_v45  ;;  %2899 = vmatprep.subr.bf16.mxu0 %v6860_v34  ;;  %2940 = vmatprep.subr.bf16.mxu1 %v6917_v47  ;;  %v4092_v53 = vpop.eup %4091  ;;  %v6924_v34 = vld [vmem:[#allocation41_spill] sm:$0xff]  ;;  %v6959_v3 = vld [vmem:[#allocation23_spill] sm:$0xff]  ;;  %v6960_v45 = vld [vmem:[#allocation24_spill] sm:$0xff] }
 0x633   :  { %v6964_v47 = vld [vmem:[#allocation16_spill] sm:$0xff] }
 0x634   :  { %v2694_v36 = vadd.f32 0.5, %v2691_v24  ;;  %v2698_v51 = vmul.f32 %v4092_v53, %v2693_v50  ;;  %v4094_v55 = vpop.eup %4093  ;;  %v6962_v50 = vld [vmem:[#allocation13_spill] sm:$0xff]  ;;  %v6963_v24 = vld [vmem:[#allocation15_spill] sm:$0xff] }
 0x635   :  { %2900 = vmatpush1.bf16.msra.mxu0 %v6918_v10  ;;  %2941 = vmatpush1.bf16.msra.mxu1 %v6919_v57  ;;  %v2692_v63 = vmul.f32 0.5, %v4094_v55  ;;  %v6966_v53 = vld [vmem:[#allocation55_spill] sm:$0xff]  ;;  %v6967_v10 = vld [vmem:[#allocation56_spill] sm:$0xff]  ;;  %v6968_v57 = vld [vmem:[#allocation57_spill] sm:$0xff] }
 0x636   :  { %v2697_v31 = vmul.f32 %v2694_v36, %v6920_v28  ;;  %2901 = vmatprep.subr.bf16.mxu0 %v6921_v52  ;;  %2942 = vmatprep.subr.bf16.mxu1 %v6922_v58  ;;  %v6965_v36 = vld [vmem:[#allocation14_spill] sm:$0xff]  ;;  %v6972_v52 = vld [vmem:[#allocation61_spill] sm:$0xff]  ;;  %v6974_v55 = vld [vmem:[#allocation31_spill] sm:$0xff] }
 0x637   :  { %v2695_v25 = vadd.f32 0.5, %v2692_v63  ;;  %v6969_v28 = vld [vmem:[#allocation58_spill] sm:$0xff]  ;;  %v5909_v58 = vld [vmem:[#allocation7 + $0xe4] ss:$16 sps:$4 sm:$0xff]  }
 0x638   :  { %v5854_v2 = vadd.f32 %v2698_v51, %v2697_v31  ;;  %v6970_v31 = vld [vmem:[#allocation59_spill] sm:$0xff]  ;;  %v6971_v51 = vld [vmem:[#allocation60_spill] sm:$0xff] }
 0x639   :  { %2902 = vmatpush1.bf16.msra.mxu0 %v6923_v17  ;;  %2943 = vmatpush1.bf16.msra.mxu1 %v6924_v34  ;;  %v5912_v17 = vld [vmem:[#allocation7 + $0xec] ss:$16 sps:$4 sm:$0xff]  }
 0x63a   :  { %4095 = vtanh.f32 %v5854_v2  ;;  %2903 = vmatprep.subr.bf16.mxu0 %v6925_v11  ;;  %2944 = vmatprep.subr.bf16.mxu1 %v6926_v19  ;;  %v6973_v19 = vld [vmem:[#allocation29_spill] sm:$0xff] }
 0x63d   :  { %2904 = vmatpush1.bf16.msra.mxu0 %v6927_v59  ;;  %2945 = vmatpush1.bf16.msra.mxu1 %v6928_v0 }
 0x63e   :  { %2905 = vmatprep.subr.bf16.mxu0 %v6929_v38  ;;  %2946 = vmatprep.subr.bf16.mxu1 %v6930_v26 }
 0x641   :  { %2906 = vmatpush1.bf16.msra.mxu0 %v6931_v48  ;;  %2947 = vmatpush1.bf16.msra.mxu1 %v6932_v37 }
 0x642   :  { %2907 = vmatprep.subr.bf16.mxu0 %v6933_v5  ;;  %2948 = vmatprep.subr.bf16.mxu1 %v6934_v35  ;;  %v6975_v35 = vld [vmem:[#allocation32_spill] sm:$0xff] }
 0x645   :  { %2908 = vmatpush1.bf16.msra.mxu0 %v6935_v7  ;;  %2949 = vmatpush1.bf16.msra.mxu1 %v6936_v15 }
 0x646   :  { %2909 = vmatprep.subr.bf16.mxu0 %v6937_v20  ;;  %2950 = vmatprep.subr.bf16.mxu1 %v6938_v14  ;;  %v6976_v20 = vld [vmem:[#allocation30_spill] sm:$0xff] }
 0x647   :  { %v4096_v12 = vpop.eup %4095 }
 0x648   :  { %v2701_v62 = vmul.f32 %v4096_v12, %v2695_v25 }
 0x649   :  { %2910 = vmatpush1.bf16.msra.mxu0 %v6939_v13  ;;  %2951 = vmatpush1.bf16.msra.mxu1 %v6940_v30 }
 0x64a   :  { %v2894_v22 = vpack.c.bf16 %v2701_v62, %v2701_v62  ;;  %3005 = vmatprep.subr.bf16.mxu0 %v6941_v21  ;;  %3046 = vmatprep.subr.bf16.mxu1 %v6942_v46 }
 0x64c   :  { %2928 = vmatmul.mubr.bf16.vlgmr.msra.gmra.mxu0 %v2894_v22  ;;  %2969 = vmatmul.mubr.bf16.vlgmr.msra.gmra.mxu1 %v2894_v22 }
 0x64d   :  { %3006 = vmatpush1.bf16.msra.mxu0 %v6943_v23  ;;  %3047 = vmatpush1.bf16.msra.mxu1 %v6944_v33 }
 0x64e   :  { %3007 = vmatprep.subr.bf16.mxu0 %v6945_v8  ;;  %3048 = vmatprep.subr.bf16.mxu1 %v6946_v44 }
 0x64f   :  { %3037 = vmatprep.mubr.bf16.mxu0 %v6586_v27  ;;  %3078 = vmatprep.mubr.bf16.mxu1 %v6586_v27 }
 0x651   :  { %3008 = vmatpush1.bf16.msra.mxu0 %v6947_v18  ;;  %3049 = vmatpush1.bf16.msra.mxu1 %v6948_v61 }
 0x652   :  { %3009 = vmatprep.subr.bf16.mxu0 %v6949_v39  ;;  %3050 = vmatprep.subr.bf16.mxu1 %v6950_v1 }
 0x655   :  { %3010 = vmatpush1.bf16.msra.mxu0 %v6951_v60  ;;  %3051 = vmatpush1.bf16.msra.mxu1 %v6952_v40 }
 0x656   :  { %3011 = vmatprep.subr.bf16.mxu0 %v6953_v43  ;;  %3052 = vmatprep.subr.bf16.mxu1 %v6954_v32 }
 0x659   :  { %3012 = vmatpush1.bf16.msra.mxu0 %v6955_v6  ;;  %3053 = vmatpush1.bf16.msra.mxu1 %v6956_v9 }
 0x65a   :  { %3013 = vmatprep.subr.bf16.mxu0 %v6957_v4  ;;  %3054 = vmatprep.subr.bf16.mxu1 %v6958_v16 }
 0x65d   :  { %3014 = vmatpush1.bf16.msra.mxu0 %v6959_v3  ;;  %3055 = vmatpush1.bf16.msra.mxu1 %v6960_v45  ;;  %v5931_v45 = vld [vmem:[#allocation7 + $0xe0] ss:$16 sps:$4 sm:$0xff]  }
 0x65e   :  { %3015 = vmatprep.subr.bf16.mxu0 %v6961_v49  ;;  %3056 = vmatprep.subr.bf16.mxu1 %v6962_v50  ;;  %v5934_v49 = vld [vmem:[#allocation7 + $0xe8] ss:$16 sps:$4 sm:$0xff]   ;;  %v5937_v50 = vld [vmem:[#allocation7 + $0xc4] ss:$16 sps:$4 sm:$0xff]  }
 0x661   :  { %3016 = vmatpush1.bf16.msra.mxu0 %v6963_v24  ;;  %3057 = vmatpush1.bf16.msra.mxu1 %v6964_v47  ;;  %v5940_v24 = vld [vmem:[#allocation7 + $0xcc] ss:$16 sps:$4 sm:$0xff]   ;;  %v5945_v47 = vld [vmem:[#allocation7 + $0xc0] ss:$16 sps:$4 sm:$0xff]  }
 0x662   :  { %3017 = vmatprep.subr.bf16.mxu0 %v6965_v36  ;;  %3058 = vmatprep.subr.bf16.mxu1 %v6966_v53  ;;  %v5948_v36 = vld [vmem:[#allocation7 + $0xc8] ss:$16 sps:$4 sm:$0xff]   ;;  %v5951_v53 = vld [vmem:[#allocation7 + $0xa4] ss:$16 sps:$4 sm:$0xff]  }
 0x665   :  { %3018 = vmatpush1.bf16.msra.mxu0 %v6967_v10  ;;  %3059 = vmatpush1.bf16.msra.mxu1 %v6968_v57  ;;  %v5954_v10 = vld [vmem:[#allocation7 + $0xac] ss:$16 sps:$4 sm:$0xff]   ;;  %v5957_v57 = vld [vmem:[#allocation7 + $0xa0] ss:$16 sps:$4 sm:$0xff]  }
 0x666   :  { %3019 = vmatprep.subr.bf16.mxu0 %v6969_v28  ;;  %3060 = vmatprep.subr.bf16.mxu1 %v6970_v31  ;;  %v5960_v28 = vld [vmem:[#allocation7 + $0xa8] ss:$16 sps:$4 sm:$0xff]   ;;  %v5963_v31 = vld [vmem:[#allocation7 + $0x84] ss:$16 sps:$4 sm:$0xff]  }
 0x669   :  { %3020 = vmatpush1.bf16.msra.mxu0 %v6971_v51  ;;  %3061 = vmatpush1.bf16.msra.mxu1 %v6972_v52  ;;  %v5966_v51 = vld [vmem:[#allocation7 + $0x8c] ss:$16 sps:$4 sm:$0xff]   ;;  %v5969_v52 = vld [vmem:[#allocation7 + $0x80] ss:$16 sps:$4 sm:$0xff]  }
 0x66a   :  { %3109 = vmatprep.subr.bf16.mxu0 %v5909_v58  ;;  %3150 = vmatprep.subr.bf16.mxu1 %v5912_v17 }
 0x6cc   :  { %v2742_v34 = vpop.f32.mrf.mxu0  ;;  %v2783_v11 = vpop.f32.mrf.mxu1 }
 0x6cd   :  { %v2790_v59 = vadd.f32 %v2742_v34, %v6973_v19  ;;  %v2792_v14 = vadd.f32 %v2783_v11, %v6976_v20  ;;  %v5972_v34 = vld [vmem:[#allocation7 + $0x88] ss:$16 sps:$4 sm:$0xff]   ;;  %v5975_v11 = vld [vmem:[#allocation7 + $0x64] ss:$16 sps:$4 sm:$0xff]   ;;  %v5978_v19 = vld [vmem:[#allocation7 + $0x6c] ss:$16 sps:$4 sm:$0xff]  }
 0x6ce   :  { %v2744_v0 = vpop.f32.mrf.mxu0  ;;  %v2785_v38 = vpop.f32.mrf.mxu1 }
 0x6cf   :  { %v2794_v26 = vmul.f32 0.5, %v2790_v59  ;;  %v2791_v48 = vadd.f32 %v2744_v0, %v6974_v55  ;;  %v2793_v7 = vadd.f32 %v2785_v38, %v6975_v35  ;;  %v2796_v12 = vmul.f32 0.5, %v2792_v14  ;;  %v5985_v55 = vld [vmem:[#allocation7 + $0x68] ss:$16 sps:$4 sm:$0xff]  }
 0x6d0   :  { %v2746_v37 = vpop.f32.mrf.mxu0  ;;  %v2787_v63 = vpop.f32.mrf.mxu1 }
 0x6d1   :  { %4097 = vtanh.f32 %v2794_v26  ;;  %v2795_v5 = vmul.f32 0.5, %v2791_v48  ;;  %v5982_v26 = vld [vmem:[#allocation7 + $0x60] ss:$16 sps:$4 sm:$0xff]   ;;  %v5989_v63 = vld [vmem:[#allocation7 + $0x44] ss:$16 sps:$4 sm:$0xff]  }
 0x6d2   :  { %v2747_v15 = vpop.f32.mrf.mxu0  ;;  %v2788_v25 = vpop.f32.mrf.mxu1 }
 0x6d3   :  { %4099 = vtanh.f32 %v2795_v5  ;;  %v5992_v5 = vld [vmem:[#allocation7 + $0x4c] ss:$16 sps:$4 sm:$0xff]  }
 0x6d4   :  { %4101 = vtanh.f32 %v2793_v7 }
 0x6d5   :  { %4103 = vtanh.f32 %v2796_v12  ;;  %v5995_v12 = vld [vmem:[#allocation7 + $0x40] ss:$16 sps:$4 sm:$0xff]  }
 0x6de   :  { %v4098_v62 = vpop.eup %4097 }
 0x6df   :  { %v2800_v13 = vmul.f32 0.5, %v4098_v62  ;;  %v5998_v62 = vld [vmem:[#allocation7 + $0x48] ss:$16 sps:$4 sm:$0xff]  }
 0x6e0   :  { %v4100_v30 = vpop.eup %4099 }
 0x6e1   :  { %v2803_v22 = vadd.f32 0.5, %v2800_v13  ;;  %v2801_v21 = vmul.f32 0.5, %v4100_v30  ;;  %v4102_v46 = vpop.eup %4101 }
 0x6e2   :  { %v4104_v39 = vpop.eup %4103 }
 0x6e3   :  { %v2804_v23 = vadd.f32 0.5, %v2801_v21  ;;  %v2808_v33 = vmul.f32 %v4102_v46, %v2803_v22  ;;  %v2802_v32 = vmul.f32 0.5, %v4104_v39  ;;  %v6003_v22 = vld [vmem:[#allocation7 + $0x24] ss:$16 sps:$4 sm:$0xff]   ;;  %v6006_v21 = vld [vmem:[#allocation7 + $0x2c] ss:$16 sps:$4 sm:$0xff]  }
 0x6e4   :  { %v6015_v39 = vld [vmem:[#allocation7 + $0x4] ss:$16 sps:$4 sm:$0xff]  }
 0x6e5   :  { %v2807_v8 = vmul.f32 %v2804_v23, %v5795_v41  ;;  %v2805_v4 = vadd.f32 0.5, %v2802_v32 }
 0x6e7   :  { %v5920_v44 = vadd.f32 %v2808_v33, %v2807_v8  ;;  %v6009_v8 = vld [vmem:[#allocation7 + $0x20] ss:$16 sps:$4 sm:$0xff]  }
 0x6e9   :  { %4105 = vtanh.f32 %v5920_v44 }
 0x6ec   :  { %v2846_v18 = vpop.f32.mrf.mxu0  ;;  %v5923_v61 = vpop.f32.mrf.mxu1 }
 0x6ed   :  { %v2847_v59 = vadd.f32 %v2846_v18, %v6845_v56  ;;  %v6012_v18 = vld [vmem:[#allocation7 + $0x28] ss:$16 sps:$4 sm:$0xff]  }
 0x6ee   :  { %v2848_v1 = vpop.f32.mrf.mxu0  ;;  %v5925_v60 = vpop.f32.mrf.mxu1 }
 0x6ef   :  { %v2849_v48 = vadd.f32 %v2848_v1, %v5056_v42  ;;  %v2890_v13 = vadd.f32 %v5925_v60, %v5066_v54  ;;  %v6018_v1 = vld [vmem:[#allocation7 + $0xc] ss:$16 sps:$4 sm:$0xff]   ;;  %v2888_v60 = vadd.f32 %v5923_v61, %v6850_v29  ;;  %v6037_v61 = vld [vmem:[#allocation8 + $0xe0] ss:$16 sps:$4 sm:$0xff]   ;;  %v6109_v29 = vld [vmem:[#allocation8 + $0x24] ss:$16 sps:$4 sm:$0xff]  }
 0x6f0   :  { %v2850_v40 = vpop.f32.mrf.mxu0  ;;  %v2891_v43 = vpop.f32.mrf.mxu1  ;;  %6982 = vst [vmem:[#allocation71_spill] sm:$0xff] %v6109_v29  ;;  %v6112_v54 = vld [vmem:[#allocation8 + $0x2c] ss:$16 sps:$4 sm:$0xff]   ;;  %v6121_v42 = vld [vmem:[#allocation8 + $0x4] ss:$16 sps:$4 sm:$0xff]  }
 0x6f1   :  { %v6023_v40 = vld [vmem:[#allocation7] ss:$16 sps:$4 sm:$0xff]   ;;  %v6026_v43 = vld [vmem:[#allocation7 + $0x8] ss:$16 sps:$4 sm:$0xff]   ;;  %6983 = vst [vmem:[#allocation72_spill] sm:$0xff] %v6112_v54 }
 0x6f2   :  { %v2851_v6 = vpop.f32.mrf.mxu0  ;;  %v2892_v9 = vpop.f32.mrf.mxu1 }
 0x6f3   :  { %v6029_v6 = vld [vmem:[#allocation8 + $0xe4] ss:$16 sps:$4 sm:$0xff]   ;;  %v6032_v9 = vld [vmem:[#allocation8 + $0xec] ss:$16 sps:$4 sm:$0xff]  }
 0x6f6   :  { %v4106_v16 = vpop.eup %4105 }
 0x6f7   :  { %v2811_v3 = vmul.f32 %v4106_v16, %v2805_v4  ;;  %v6040_v4 = vld [vmem:[#allocation8 + $0xe8] ss:$16 sps:$4 sm:$0xff]  }
 0x6f9   :  { %v5927_v41 = vpack.c.bf16 %v2811_v3, %v2811_v3  ;;  %v6043_v3 = vld [vmem:[#allocation8 + $0xc4] ss:$16 sps:$4 sm:$0xff]  }
 0x6fb   :  { %3038 = vmatmul.mubr.bf16.vlgmr.msra.gmra.mxu0 %v5927_v41  ;;  %3079 = vmatmul.mubr.bf16.vlgmr.msra.gmra.mxu1 %v5927_v41 }
 0x6fc   :  { %3110 = vmatpush1.bf16.msra.mxu0 %v5931_v45  ;;  %3151 = vmatpush1.bf16.msra.mxu1 %v5934_v49 }
 0x6fd   :  { %3111 = vmatprep.subr.bf16.mxu0 %v5937_v50  ;;  %3152 = vmatprep.subr.bf16.mxu1 %v5940_v24 }
 0x6fe   :  { %3141 = vmatprep.mubr.bf16.mxu0 %v6586_v27  ;;  %3182 = vmatprep.mubr.bf16.mxu1 %v6586_v27 }
 0x700   :  { %3112 = vmatpush1.bf16.msra.mxu0 %v5945_v47  ;;  %3153 = vmatpush1.bf16.msra.mxu1 %v5948_v36 }
 0x701   :  { %3113 = vmatprep.subr.bf16.mxu0 %v5951_v53  ;;  %3154 = vmatprep.subr.bf16.mxu1 %v5954_v10 }
 0x704   :  { %3114 = vmatpush1.bf16.msra.mxu0 %v5957_v57  ;;  %3155 = vmatpush1.bf16.msra.mxu1 %v5960_v28 }
 0x705   :  { %3115 = vmatprep.subr.bf16.mxu0 %v5963_v31  ;;  %3156 = vmatprep.subr.bf16.mxu1 %v5966_v51 }
 0x708   :  { %3116 = vmatpush1.bf16.msra.mxu0 %v5969_v52  ;;  %3157 = vmatpush1.bf16.msra.mxu1 %v5972_v34 }
 0x709   :  { %3117 = vmatprep.subr.bf16.mxu0 %v5975_v11  ;;  %3158 = vmatprep.subr.bf16.mxu1 %v5978_v19 }
 0x70c   :  { %v2929_v0 = vpop.f32.mrf.mxu0  ;;  %v2970_v38 = vpop.f32.mrf.mxu1  ;;  %3118 = vmatpush1.bf16.msra.mxu0 %v5982_v26  ;;  %3159 = vmatpush1.bf16.msra.mxu1 %v5985_v55 }
 0x70d   :  { %v2977_v37 = vadd.f32 %v2929_v0, %v2847_v59  ;;  %3119 = vmatprep.subr.bf16.mxu0 %v5989_v63  ;;  %3160 = vmatprep.subr.bf16.mxu1 %v5992_v5  ;;  %v2979_v32 = vadd.f32 %v2970_v38, %v2888_v60  ;;  %v6046_v59 = vld [vmem:[#allocation8 + $0xcc] ss:$16 sps:$4 sm:$0xff]  }
 0x70e   :  { %v2931_v35 = vpop.f32.mrf.mxu0  ;;  %v2972_v7 = vpop.f32.mrf.mxu1  ;;  %v6073_v60 = vld [vmem:[#allocation8 + $0x8c] ss:$16 sps:$4 sm:$0xff]  }
 0x70f   :  { %v2981_v15 = vmul.f32 0.5, %v2977_v37  ;;  %v2978_v25 = vadd.f32 %v2931_v35, %v2849_v48  ;;  %v2980_v33 = vadd.f32 %v2972_v7, %v2890_v13  ;;  %v2983_v16 = vmul.f32 0.5, %v2979_v32  ;;  %v6051_v48 = vld [vmem:[#allocation8 + $0xc0] ss:$16 sps:$4 sm:$0xff]   ;;  %v6054_v37 = vld [vmem:[#allocation8 + $0xc8] ss:$16 sps:$4 sm:$0xff]  }
 0x710   :  { %v2933_v20 = vpop.f32.mrf.mxu0  ;;  %v2974_v14 = vpop.f32.mrf.mxu1  ;;  %3120 = vmatpush1.bf16.msra.mxu0 %v5995_v12  ;;  %3161 = vmatpush1.bf16.msra.mxu1 %v5998_v62  ;;  %v6063_v13 = vld [vmem:[#allocation8 + $0xa0] ss:$16 sps:$4 sm:$0xff]  }
 0x711   :  { %4107 = vtanh.f32 %v2981_v15  ;;  %v2982_v30 = vmul.f32 0.5, %v2978_v25  ;;  %3121 = vmatprep.subr.bf16.mxu0 %v6003_v22  ;;  %3162 = vmatprep.subr.bf16.mxu1 %v6006_v21  ;;  %v6057_v15 = vld [vmem:[#allocation8 + $0xa4] ss:$16 sps:$4 sm:$0xff]   ;;  %v6060_v25 = vld [vmem:[#allocation8 + $0xac] ss:$16 sps:$4 sm:$0xff]  }
 0x712   :  { %v2934_v46 = vpop.f32.mrf.mxu0  ;;  %v2975_v23 = vpop.f32.mrf.mxu1 }
 0x713   :  { %4109 = vtanh.f32 %v2982_v30  ;;  %v6066_v30 = vld [vmem:[#allocation8 + $0xa8] ss:$16 sps:$4 sm:$0xff]  }
 0x714   :  { %3122 = vmatpush1.bf16.msra.mxu0 %v6009_v8  ;;  %3163 = vmatpush1.bf16.msra.mxu1 %v6012_v18  ;;  %4111 = vtanh.f32 %v2980_v33  ;;  %v6070_v33 = vld [vmem:[#allocation8 + $0x84] ss:$16 sps:$4 sm:$0xff]  }
 0x715   :  { %3123 = vmatprep.subr.bf16.mxu0 %v6015_v39  ;;  %3164 = vmatprep.subr.bf16.mxu1 %v6018_v1  ;;  %4113 = vtanh.f32 %v2983_v16  ;;  %v6078_v16 = vld [vmem:[#allocation8 + $0x80] ss:$16 sps:$4 sm:$0xff]  }
 0x718   :  { %3124 = vmatpush1.bf16.msra.mxu0 %v6023_v40  ;;  %3165 = vmatpush1.bf16.msra.mxu1 %v6026_v43 }
 0x719   :  { %3192 = vmatprep.subr.bf16.mxu0 %v6029_v6  ;;  %3233 = vmatprep.subr.bf16.mxu1 %v6032_v9 }
 0x71b   :  { %3142 = vmatmul.mubr.bf16.vlgmr.msra.gmra.mxu0 %v5927_v41  ;;  %3183 = vmatmul.mubr.bf16.vlgmr.msra.gmra.mxu1 %v5927_v41 }
 0x71c   :  { %3193 = vmatpush1.bf16.msra.mxu0 %v6037_v61  ;;  %3234 = vmatpush1.bf16.msra.mxu1 %v6040_v4 }
 0x71d   :  { %3194 = vmatprep.subr.bf16.mxu0 %v6043_v3  ;;  %3235 = vmatprep.subr.bf16.mxu1 %v6046_v59 }
 0x71e   :  { %v4108_v0 = vpop.eup %4107  ;;  %3224 = vmatprep.mubr.bf16.mxu0 %v6586_v27  ;;  %3265 = vmatprep.mubr.bf16.mxu1 %v6586_v27 }
 0x71f   :  { %v2987_v41 = vmul.f32 0.5, %v4108_v0  ;;  %v6081_v0 = vld [vmem:[#allocation8 + $0x88] ss:$16 sps:$4 sm:$0xff]  }
 0x720   :  { %v4110_v38 = vpop.eup %4109  ;;  %3195 = vmatpush1.bf16.msra.mxu0 %v6051_v48  ;;  %3236 = vmatpush1.bf16.msra.mxu1 %v6054_v37 }
 0x721   :  { %v2990_v35 = vadd.f32 0.5, %v2987_v41  ;;  %v2988_v7 = vmul.f32 0.5, %v4110_v38  ;;  %3196 = vmatprep.subr.bf16.mxu0 %v6057_v15  ;;  %3237 = vmatprep.subr.bf16.mxu1 %v6060_v25  ;;  %v4112_v14 = vpop.eup %4111  ;;  %v6088_v41 = vld [vmem:[#allocation8 + $0x6c] ss:$16 sps:$4 sm:$0xff]   ;;  %v6091_v38 = vld [vmem:[#allocation8 + $0x60] ss:$16 sps:$4 sm:$0xff]  }
 0x723   :  { %v2991_v20 = vadd.f32 0.5, %v2988_v7  ;;  %v2995_v23 = vmul.f32 %v4112_v14, %v2990_v35  ;;  %v6094_v35 = vld [vmem:[#allocation8 + $0x68] ss:$16 sps:$4 sm:$0xff]   ;;  %v6097_v7 = vld [vmem:[#allocation8 + $0x44] ss:$16 sps:$4 sm:$0xff]   ;;  %v4114_v14 = vpop.eup %4113 }
 0x724   :  { %3197 = vmatpush1.bf16.msra.mxu0 %v6063_v13  ;;  %3238 = vmatpush1.bf16.msra.mxu1 %v6066_v30  ;;  %6978 = vst [vmem:[#allocation64_spill] sm:$0xff] %v6097_v7 }
 0x725   :  { %v2994_v46 = vmul.f32 %v2991_v20, %v5854_v2  ;;  %3198 = vmatprep.subr.bf16.mxu0 %v6070_v33  ;;  %3239 = vmatprep.subr.bf16.mxu1 %v6073_v60  ;;  %v6085_v2 = vld [vmem:[#allocation8 + $0x64] ss:$16 sps:$4 sm:$0xff]   ;;  %v6100_v20 = vld [vmem:[#allocation8 + $0x4c] ss:$16 sps:$4 sm:$0xff]  }
 0x726   :  { %6979 = vst [vmem:[#allocation68_spill] sm:$0xff] %v6100_v20 }
 0x727   :  { %v6076_v32 = vadd.f32 %v2995_v23, %v2994_v46  ;;  %v6103_v46 = vld [vmem:[#allocation8 + $0x40] ss:$16 sps:$4 sm:$0xff]   ;;  %v6106_v23 = vld [vmem:[#allocation8 + $0x48] ss:$16 sps:$4 sm:$0xff]  }
 0x728   :  { %3199 = vmatpush1.bf16.msra.mxu0 %v6078_v16  ;;  %3240 = vmatpush1.bf16.msra.mxu1 %v6081_v0  ;;  %6980 = vst [vmem:[#allocation69_spill] sm:$0xff] %v6103_v46  ;;  %6981 = vst [vmem:[#allocation70_spill] sm:$0xff] %v6106_v23 }
 0x729   :  { %6977 = vst [vmem:[#allocation86_spill] sm:$0xff] %v6076_v32  ;;  %4115 = vtanh.f32 %v6076_v32  ;;  %3200 = vmatprep.subr.bf16.mxu0 %v6085_v2  ;;  %3241 = vmatprep.subr.bf16.mxu1 %v6088_v41  ;;  %v2989_v32 = vmul.f32 0.5, %v4114_v14  ;;  %v6124_v14 = vld [vmem:[#allocation8 + $0xc] ss:$16 sps:$4 sm:$0xff]  }
 0x72c   :  { %3201 = vmatpush1.bf16.msra.mxu0 %v6091_v38  ;;  %3242 = vmatpush1.bf16.msra.mxu1 %v6094_v35 }
 0x72d   :  { %3202 = vmatprep.subr.bf16.mxu0 %v6097_v7  ;;  %3243 = vmatprep.subr.bf16.mxu1 %v6100_v20  ;;  %v6115_v7 = vld [vmem:[#allocation8 + $0x20] ss:$16 sps:$4 sm:$0xff]   ;;  %v6118_v20 = vld [vmem:[#allocation8 + $0x28] ss:$16 sps:$4 sm:$0xff]  }
 0x72e   :  { %6984 = vst [vmem:[#allocation73_spill] sm:$0xff] %v6115_v7  ;;  %6985 = vst [vmem:[#allocation74_spill] sm:$0xff] %v6118_v20 }
 0x730   :  { %3203 = vmatpush1.bf16.msra.mxu0 %v6103_v46  ;;  %3244 = vmatpush1.bf16.msra.mxu1 %v6106_v23  ;;  %v2992_v46 = vadd.f32 0.5, %v2989_v32 }
 0x731   :  { %3204 = vmatprep.subr.bf16.mxu0 %v6109_v29  ;;  %3245 = vmatprep.subr.bf16.mxu1 %v6112_v54  ;;  %v6127_v54 = vld [vmem:[#allocation8] ss:$16 sps:$4 sm:$0xff]  }
 0x734   :  { %3205 = vmatpush1.bf16.msra.mxu0 %v6115_v7  ;;  %3246 = vmatpush1.bf16.msra.mxu1 %v6118_v20  ;;  %v6130_v7 = vld [vmem:[#allocation8 + $0x8] ss:$16 sps:$4 sm:$0xff]  }
 0x735   :  { %3206 = vmatprep.subr.bf16.mxu0 %v6121_v42  ;;  %3247 = vmatprep.subr.bf16.mxu1 %v6124_v14 }
 0x736   :  { %v4116_v29 = vpop.eup %4115 }
 0x737   :  { %v2998_v23 = vmul.f32 %v4116_v29, %v2992_v46 }
 0x738   :  { %3207 = vmatpush1.bf16.msra.mxu0 %v6127_v54  ;;  %3248 = vmatpush1.bf16.msra.mxu1 %v6130_v7 }
 0x739   :  { %v3191_v20 = vpack.c.bf16 %v2998_v23, %v2998_v23  ;;  %3297 = vmatprep.subr.bf16.mxu0 %v5909_v58  ;;  %3338 = vmatprep.subr.bf16.mxu1 %v5912_v17  ;;  %v6986_v17 = vld [vmem:[#allocation33_spill] sm:$0xff] }
 0x73b   :  { %3225 = vmatmul.mubr.bf16.vlgmr.msra.gmra.mxu0 %v3191_v20  ;;  %3266 = vmatmul.mubr.bf16.vlgmr.msra.gmra.mxu1 %v3191_v20 }
 0x73c   :  { %3298 = vmatpush1.bf16.msra.mxu0 %v5931_v45  ;;  %3339 = vmatpush1.bf16.msra.mxu1 %v5934_v49 }
 0x73d   :  { %3299 = vmatprep.subr.bf16.mxu0 %v5937_v50  ;;  %3340 = vmatprep.subr.bf16.mxu1 %v5940_v24 }
 0x73e   :  { %3329 = vmatprep.mubr.bf16.mxu0 %v6586_v27  ;;  %3370 = vmatprep.mubr.bf16.mxu1 %v6586_v27 }
 0x740   :  { %3300 = vmatpush1.bf16.msra.mxu0 %v5945_v47  ;;  %3341 = vmatpush1.bf16.msra.mxu1 %v5948_v36  ;;  %v6987_v47 = vld [vmem:[#allocation35_spill] sm:$0xff] }
 0x741   :  { %3301 = vmatprep.subr.bf16.mxu0 %v5951_v53  ;;  %3342 = vmatprep.subr.bf16.mxu1 %v5954_v10 }
 0x744   :  { %3302 = vmatpush1.bf16.msra.mxu0 %v5957_v57  ;;  %3343 = vmatpush1.bf16.msra.mxu1 %v5960_v28  ;;  %v6988_v28 = vld [vmem:[#allocation36_spill] sm:$0xff] }
 0x745   :  { %3303 = vmatprep.subr.bf16.mxu0 %v5963_v31  ;;  %3344 = vmatprep.subr.bf16.mxu1 %v5966_v51 }
 0x748   :  { %3304 = vmatpush1.bf16.msra.mxu0 %v5969_v52  ;;  %3345 = vmatpush1.bf16.msra.mxu1 %v5972_v34  ;;  %v6989_v34 = vld [vmem:[#allocation34_spill] sm:$0xff] }
 0x749   :  { %3305 = vmatprep.subr.bf16.mxu0 %v5975_v11  ;;  %3346 = vmatprep.subr.bf16.mxu1 %v5978_v19 }
 0x74c   :  { %3306 = vmatpush1.bf16.msra.mxu0 %v5982_v26  ;;  %3347 = vmatpush1.bf16.msra.mxu1 %v5985_v55 }
 0x74d   :  { %3307 = vmatprep.subr.bf16.mxu0 %v5989_v63  ;;  %3348 = vmatprep.subr.bf16.mxu1 %v5992_v5 }
 0x750   :  { %3308 = vmatpush1.bf16.msra.mxu0 %v5995_v12  ;;  %3349 = vmatpush1.bf16.msra.mxu1 %v5998_v62 }
 0x751   :  { %3309 = vmatprep.subr.bf16.mxu0 %v6003_v22  ;;  %3350 = vmatprep.subr.bf16.mxu1 %v6006_v21 }
 0x754   :  { %3310 = vmatpush1.bf16.msra.mxu0 %v6009_v8  ;;  %3351 = vmatpush1.bf16.msra.mxu1 %v6012_v18 }
 0x755   :  { %3311 = vmatprep.subr.bf16.mxu0 %v6015_v39  ;;  %3352 = vmatprep.subr.bf16.mxu1 %v6018_v1 }
 0x758   :  { %3312 = vmatpush1.bf16.msra.mxu0 %v6023_v40  ;;  %3353 = vmatpush1.bf16.msra.mxu1 %v6026_v43 }
 0x759   :  { %3380 = vmatprep.subr.bf16.mxu0 %v6029_v6  ;;  %3421 = vmatprep.subr.bf16.mxu1 %v6032_v9 }
 0x7bb   :  { %v3039_v29 = vpop.f32.mrf.mxu0  ;;  %v3080_v58 = vpop.f32.mrf.mxu1 }
 0x7bc   :  { %v3087_v45 = vadd.f32 %v3039_v29, %v6986_v17  ;;  %v3089_v11 = vadd.f32 %v3080_v58, %v6989_v34 }
 0x7bd   :  { %v3041_v49 = vpop.f32.mrf.mxu0  ;;  %v3082_v50 = vpop.f32.mrf.mxu1 }
 0x7be   :  { %v3091_v24 = vmul.f32 0.5, %v3087_v45  ;;  %v3088_v36 = vadd.f32 %v3041_v49, %v6987_v47  ;;  %v3090_v31 = vadd.f32 %v3082_v50, %v6988_v28  ;;  %v3093_v19 = vmul.f32 0.5, %v3089_v11  ;;  %v6997_v49 = vld [vmem:[#allocation72_spill] sm:$0xff] }
 0x7bf   :  { %v3043_v53 = vpop.f32.mrf.mxu0  ;;  %v3084_v10 = vpop.f32.mrf.mxu1 }
 0x7c0   :  { %4117 = vtanh.f32 %v3091_v24  ;;  %v3092_v57 = vmul.f32 0.5, %v3088_v36  ;;  %v6998_v36 = vld [vmem:[#allocation73_spill] sm:$0xff]  ;;  %v6999_v53 = vld [vmem:[#allocation74_spill] sm:$0xff]  ;;  %v7000_v10 = vld [vmem:[#allocation39_spill] sm:$0xff] }
 0x7c1   :  { %v3044_v51 = vpop.f32.mrf.mxu0  ;;  %v3085_v52 = vpop.f32.mrf.mxu1 }
 0x7c2   :  { %4119 = vtanh.f32 %v3092_v57 }
 0x7c3   :  { %4121 = vtanh.f32 %v3090_v31 }
 0x7c4   :  { %4123 = vtanh.f32 %v3093_v19 }
 0x7cd   :  { %v4118_v26 = vpop.eup %4117 }
 0x7ce   :  { %v3097_v55 = vmul.f32 0.5, %v4118_v26 }
 0x7cf   :  { %v4120_v63 = vpop.eup %4119 }
 0x7d0   :  { %v3100_v5 = vadd.f32 0.5, %v3097_v55  ;;  %v3098_v12 = vmul.f32 0.5, %v4120_v63  ;;  %v4122_v62 = vpop.eup %4121  ;;  %v7001_v55 = vld [vmem:[#allocation86_spill] sm:$0xff] }
 0x7d1   :  { %v4124_v40 = vpop.eup %4123 }
 0x7d2   :  { %v3101_v22 = vadd.f32 0.5, %v3098_v12  ;;  %v3105_v21 = vmul.f32 %v4122_v62, %v3100_v5  ;;  %v3099_v20 = vmul.f32 0.5, %v4124_v40  ;;  %v3982_v40 = vld [vmem:[%s6259_s7 + $0x20] sm:$0xff]  }
 0x7d4   :  { %v3104_v8 = vmul.f32 %v3101_v22, %v5920_v44  ;;  %v3102_v29 = vadd.f32 0.5, %v3099_v20 }
 0x7d6   :  { %v3106_v18 = vadd.f32 %v3105_v21, %v3104_v8  ;;  %v3979_v8 = vld [vmem:[%s6259_s7 + $0x38] sm:$0xff]  }
 0x7d8   :  { %4125 = vtanh.f32 %v3106_v18  ;;  %v4432_v18 = vmov 0.0  }
 0x7db   :  { %v3143_v39 = vpop.f32.mrf.mxu0  ;;  %v6174_v1 = vpop.f32.mrf.mxu1 }
 0x7dc   :  { %v3185_v57 = vadd.f32 %v6174_v1, %v7000_v10  ;;  %v3981_v1 = vld [vmem:[%s6259_s7 + $0x28] sm:$0xff]  }
 0x7dd   :  { %v3145_v43 = vpop.f32.mrf.mxu0  ;;  %v3186_v6 = vpop.f32.mrf.mxu1 }
 0x7df   :  { %v3147_v9 = vpop.f32.mrf.mxu0  ;;  %v3188_v32 = vpop.f32.mrf.mxu1 }
 0x7e0   :  { %v3985_v9 = vld [vmem:[%s6259_s7 + $0x8] sm:$0xff]   ;;  %v3986_v32 = vld [vmem:[%s6259_s7] sm:$0xff]  }
 0x7e1   :  { %v3148_v46 = vpop.f32.mrf.mxu0  ;;  %v3189_v23 = vpop.f32.mrf.mxu1 }
 0x7e5   :  { %v4126_v58 = vpop.eup %4125 }
 0x7e6   :  { %v3108_v17 = vmul.f32 %v4126_v58, %v3102_v29 }
 0x7e8   :  { %v3296_v45 = vpack.c.bf16 %v3108_v17, %v3108_v17 }
 0x7ea   :  { %3330 = vmatmul.mubr.bf16.vlgmr.msra.gmra.mxu0 %v3296_v45  ;;  %3371 = vmatmul.mubr.bf16.vlgmr.msra.gmra.mxu1 %v3296_v45 }
 0x7eb   :  { %3381 = vmatpush1.bf16.msra.mxu0 %v6037_v61  ;;  %3422 = vmatpush1.bf16.msra.mxu1 %v6040_v4  ;;  %v6990_v4 = vld [vmem:[#allocation37_spill] sm:$0xff] }
 0x7ec   :  { %3382 = vmatprep.subr.bf16.mxu0 %v6043_v3  ;;  %3423 = vmatprep.subr.bf16.mxu1 %v6046_v59  ;;  %v3146_v3 = vadd.f32 %v3145_v43, %v6990_v4  ;;  %v3983_v43 = vld [vmem:[%s6259_s7 + $0x18] sm:$0xff]  }
 0x7ed   :  { %3412 = vmatprep.mubr.bf16.mxu0 %v6586_v27  ;;  %3453 = vmatprep.mubr.bf16.mxu1 %v6586_v27  ;;  %v3144_v27 = vadd.f32 %v3143_v39, %v6845_v56  ;;  %v3980_v39 = vld [vmem:[%s6259_s7 + $0x30] sm:$0xff]  }
 0x7ef   :  { %3383 = vmatpush1.bf16.msra.mxu0 %v6051_v48  ;;  %3424 = vmatpush1.bf16.msra.mxu1 %v6054_v37  ;;  %v6991_v48 = vld [vmem:[#allocation64_spill] sm:$0xff] }
 0x7f0   :  { %3384 = vmatprep.subr.bf16.mxu0 %v6057_v15  ;;  %3425 = vmatprep.subr.bf16.mxu1 %v6060_v25  ;;  %v6992_v37 = vld [vmem:[#allocation68_spill] sm:$0xff] }
 0x7f3   :  { %3385 = vmatpush1.bf16.msra.mxu0 %v6063_v13  ;;  %3426 = vmatpush1.bf16.msra.mxu1 %v6066_v30 }
 0x7f4   :  { %3386 = vmatprep.subr.bf16.mxu0 %v6070_v33  ;;  %3427 = vmatprep.subr.bf16.mxu1 %v6073_v60 }
 0x7f7   :  { %3387 = vmatpush1.bf16.msra.mxu0 %v6078_v16  ;;  %3428 = vmatpush1.bf16.msra.mxu1 %v6081_v0  ;;  %v6993_v16 = vld [vmem:[#allocation69_spill] sm:$0xff]  ;;  %v6994_v0 = vld [vmem:[#allocation70_spill] sm:$0xff] }
 0x7f8   :  { %3388 = vmatprep.subr.bf16.mxu0 %v6085_v2  ;;  %3429 = vmatprep.subr.bf16.mxu1 %v6088_v41  ;;  %v6995_v2 = vld [vmem:[#allocation38_spill] sm:$0xff] }
 0x7f9   :  { %v3187_v41 = vadd.f32 %v3186_v6, %v6995_v2  ;;  %v3984_v6 = vld [vmem:[%s6259_s7 + $0x10] sm:$0xff]  }
 0x7fb   :  { %v3226_v44 = vpop.f32.mrf.mxu0  ;;  %v3267_v61 = vpop.f32.mrf.mxu1  ;;  %3389 = vmatpush1.bf16.msra.mxu0 %v6091_v38  ;;  %3430 = vmatpush1.bf16.msra.mxu1 %v6094_v35  ;;  %v6996_v35 = vld [vmem:[#allocation71_spill] sm:$0xff] }
 0x7fc   :  { %v3274_v59 = vadd.f32 %v3226_v44, %v3144_v27  ;;  %3390 = vmatprep.subr.bf16.mxu0 %v6991_v48  ;;  %3431 = vmatprep.subr.bf16.mxu1 %v6992_v37  ;;  %v3276_v28 = vadd.f32 %v3267_v61, %v3185_v57 }
 0x7fd   :  { %v3228_v15 = vpop.f32.mrf.mxu0  ;;  %v3269_v25 = vpop.f32.mrf.mxu1 }
 0x7fe   :  { %v3278_v13 = vmul.f32 0.5, %v3274_v59  ;;  %v3275_v30 = vadd.f32 %v3228_v15, %v3146_v3  ;;  %v3277_v47 = vadd.f32 %v3269_v25, %v3187_v41  ;;  %v3280_v31 = vmul.f32 0.5, %v3276_v28 }
 0x7ff   :  { %v3230_v33 = vpop.f32.mrf.mxu0  ;;  %v3271_v60 = vpop.f32.mrf.mxu1  ;;  %3391 = vmatpush1.bf16.msra.mxu0 %v6993_v16  ;;  %3432 = vmatpush1.bf16.msra.mxu1 %v6994_v0 }
 0x800   :  { %4127 = vtanh.f32 %v3278_v13  ;;  %v3279_v38 = vmul.f32 0.5, %v3275_v30  ;;  %3392 = vmatprep.subr.bf16.mxu0 %v6996_v35  ;;  %3433 = vmatprep.subr.bf16.mxu1 %v6997_v49 }
 0x801   :  { %v3231_v50 = vpop.f32.mrf.mxu0  ;;  %v3272_v24 = vpop.f32.mrf.mxu1 }
 0x802   :  { %4129 = vtanh.f32 %v3279_v38 }
 0x803   :  { %3393 = vmatpush1.bf16.msra.mxu0 %v6998_v36  ;;  %3434 = vmatpush1.bf16.msra.mxu1 %v6999_v53  ;;  %4131 = vtanh.f32 %v3277_v47 }
 0x804   :  { %3394 = vmatprep.subr.bf16.mxu0 %v6121_v42  ;;  %3435 = vmatprep.subr.bf16.mxu1 %v6124_v14  ;;  %4133 = vtanh.f32 %v3280_v31 }
 0x807   :  { %3395 = vmatpush1.bf16.msra.mxu0 %v6127_v54  ;;  %3436 = vmatpush1.bf16.msra.mxu1 %v6130_v7 }
 0x808   :  { %3754 = vmatprep.subr.bf16.mxu0 %v4432_v18 }
 0x80d   :  { %v4128_v51 = vpop.eup %4127 }
 0x80e   :  { %v3284_v52 = vmul.f32 0.5, %v4128_v51 }
 0x80f   :  { %v4130_v34 = vpop.eup %4129 }
 0x810   :  { %v3287_v11 = vadd.f32 0.5, %v3284_v52  ;;  %v3285_v19 = vmul.f32 0.5, %v4130_v34  ;;  %v4132_v42 = vpop.eup %4131 }
 0x811   :  { %v4134_v54 = vpop.eup %4133 }
 0x812   :  { %v3288_v26 = vadd.f32 0.5, %v3285_v19  ;;  %v3292_v63 = vmul.f32 %v4132_v42, %v3287_v11  ;;  %v3286_v12 = vmul.f32 0.5, %v4134_v54 }
 0x814   :  { %v3291_v14 = vmul.f32 %v3288_v26, %v7001_v55  ;;  %v3289_v7 = vadd.f32 0.5, %v3286_v12  ;;  %v3736_v26 = vld [vmem:[%s6260_s8] ss:$0 sm:$0xff] }
 0x816   :  { %v6214_v5 = vadd.f32 %v3292_v63, %v3291_v14 }
 0x818   :  { %4135 = vtanh.f32 %v6214_v5 }
 0x825   :  { %v4136_v62 = vpop.eup %4135 }
 0x826   :  { %v3295_v22 = vmul.f32 %v4136_v62, %v3289_v7 }
 0x828   :  { %v3379_v21 = vpack.c.bf16 %v3295_v22, %v3295_v22 }
 0x82a   :  { %3413 = vmatmul.mubr.bf16.vlgmr.msra.gmra.mxu0 %v3379_v21  ;;  %3454 = vmatmul.mubr.bf16.vlgmr.msra.gmra.mxu1 %v3379_v21 }
 0x82b   :  { %3755 = vmatpush3.bf16.msra.mxu0 %v3979_v8  ;;  %3770 = vmatprep.mubr.msk.bf16.mxu0 %vm4433_vm0, %v4432_v18 }
 0x82c   :  { %3756 = vmatprep.subr.bf16.mxu0 %v4432_v18 }
 0x82f   :  { %3757 = vmatpush3.bf16.msra.mxu0 %v3980_v39 }
 0x830   :  { %3758 = vmatprep.subr.bf16.mxu0 %v4432_v18 }
 0x833   :  { %3759 = vmatpush3.bf16.msra.mxu0 %v3981_v1 }
 0x834   :  { %3760 = vmatprep.subr.bf16.mxu0 %v4432_v18 }
 0x837   :  { %3761 = vmatpush3.bf16.msra.mxu0 %v3982_v40 }
 0x838   :  { %3762 = vmatprep.subr.bf16.mxu0 %v4432_v18 }
 0x83b   :  { %3763 = vmatpush3.bf16.msra.mxu0 %v3983_v43 }
 0x83c   :  { %3764 = vmatprep.subr.bf16.mxu0 %v4432_v18 }
 0x83f   :  { %3765 = vmatpush3.bf16.msra.mxu0 %v3984_v6 }
 0x840   :  { %3766 = vmatprep.subr.bf16.mxu0 %v4432_v18 }
 0x843   :  { %3767 = vmatpush3.bf16.msra.mxu0 %v3985_v9 }
 0x844   :  { %3768 = vmatprep.subr.bf16.mxu0 %v4432_v18 }
 0x847   :  { %3769 = vmatpush3.bf16.msra.mxu0 %v3986_v32 }
 0x8aa   :  { %v3331_v20 = vpop.f32.mrf.mxu0  ;;  %v3372_v46 = vpop.f32.mrf.mxu1 }
 0x8ab   :  { %v3332_v44 = vadd.f32 %v3331_v20, %v6845_v56  ;;  %v3373_v56 = vadd.f32 %v3372_v46, %v7000_v10 }
 0x8ac   :  { %v3333_v23 = vpop.f32.mrf.mxu0  ;;  %v3374_v29 = vpop.f32.mrf.mxu1 }
 0x8ad   :  { %v3334_v59 = vadd.f32 %v3333_v23, %v6990_v4  ;;  %v3375_v25 = vadd.f32 %v3374_v29, %v6995_v2 }
 0x8ae   :  { %v3335_v58 = vpop.f32.mrf.mxu0  ;;  %v3376_v17 = vpop.f32.mrf.mxu1 }
 0x8b0   :  { %v3336_v45 = vpop.f32.mrf.mxu0  ;;  %v3377_v27 = vpop.f32.mrf.mxu1 }
 0x8ea   :  { %v3414_v61 = vpop.f32.mrf.mxu0  ;;  %v3455_v3 = vpop.f32.mrf.mxu1 }
 0x8eb   :  { %v3462_v48 = vadd.f32 %v3414_v61, %v3332_v44  ;;  %v3464_v35 = vadd.f32 %v3455_v3, %v3373_v56 }
 0x8ec   :  { %v3416_v37 = vpop.f32.mrf.mxu0  ;;  %v3457_v15 = vpop.f32.mrf.mxu1 }
 0x8ed   :  { %v3466_v13 = vmul.f32 0.5, %v3462_v48  ;;  %v3463_v30 = vadd.f32 %v3416_v37, %v3334_v59  ;;  %v3465_v0 = vadd.f32 %v3457_v15, %v3375_v25  ;;  %v3468_v4 = vmul.f32 0.5, %v3464_v35 }
 0x8ee   :  { %v3418_v33 = vpop.f32.mrf.mxu0  ;;  %v3459_v60 = vpop.f32.mrf.mxu1 }
 0x8ef   :  { %4137 = vtanh.f32 %v3466_v13  ;;  %v3467_v16 = vmul.f32 0.5, %v3463_v30 }
 0x8f0   :  { %v3419_v41 = vpop.f32.mrf.mxu0  ;;  %v3460_v38 = vpop.f32.mrf.mxu1 }
 0x8f1   :  { %4139 = vtanh.f32 %v3467_v16 }
 0x8f2   :  { %4141 = vtanh.f32 %v3465_v0 }
 0x8f3   :  { %4143 = vtanh.f32 %v3468_v4 }
 0x8fc   :  { %v4138_v49 = vpop.eup %4137 }
 0x8fd   :  { %v3472_v50 = vmul.f32 0.5, %v4138_v49 }
 0x8fe   :  { %v4140_v24 = vpop.eup %4139 }
 0x8ff   :  { %v3475_v47 = vadd.f32 0.5, %v3472_v50  ;;  %v3473_v2 = vmul.f32 0.5, %v4140_v24  ;;  %v4142_v36 = vpop.eup %4141 }
 0x900   :  { %v4144_v51 = vpop.eup %4143 }
 0x901   :  { %v3476_v53 = vadd.f32 0.5, %v3473_v2  ;;  %v3480_v57 = vmul.f32 %v4142_v36, %v3475_v47  ;;  %v3474_v52 = vmul.f32 0.5, %v4144_v51 }
 0x903   :  { %v3479_v28 = vmul.f32 %v3476_v53, %v6214_v5  ;;  %v3477_v34 = vadd.f32 0.5, %v3474_v52 }
 0x905   :  { %v3481_v31 = vadd.f32 %v3480_v57, %v3479_v28 }
 0x907   :  { %4145 = vtanh.f32 %v3481_v31 }
 0x914   :  { %v4146_v11 = vpop.eup %4145 }
 0x915   :  { %v3483_v10 = vmul.f32 %v4146_v11, %v3477_v34 }
 0x917   :  { %v3484_v19 = vpack.c.bf16 %v3483_v10, %v3483_v10 }
 0x919   :  { %3771 = vmatmul.mubr.bf16.vlgmr.msra.gmra.mxu0 %v3484_v19 }
 0x9d9   :  { %v3590_v42 = vpop.f32.mrf.mxu0 }
 0x9da   :  { %v3591_v55 = vadd.f32 %v3736_v26, %v3590_v42 }
 0x9db   :  { %v3772_v14 = vpop.f32.mrf.mxu0 }
 0x9dc   :  { %3596 = vst [vmem:[%s6261_s9] sm:$0xff] %v3591_v55 }
 0x9dd   :  { %v3593_v63 = vpop.f32.mrf.mxu0 }
 0x9df   :  { %v3773_v5 = vpop.f32.mrf.mxu0 }
 0x9e0   :  { %3601 = vsyncpa [#allocation4], 1 }
 0x9e1   :  { %3602 = vsyncpa [#allocation6], 1 }
 0x9e2   :  { %3603 = vsyncpa [#allocation9], 1 }

</bundles_post_ra>
